<compile_context>
chip_gen: v7x
topology: tpu7x:2x2x1
jax: 0.10.0
libtpu: 0.0.40
codegen_flags: <defaults>
</compile_context>

<pallas_src>
import functools

import jax
import jax.numpy as jnp
from jax.experimental import pallas as pl
from jax.experimental.pallas import tpu as pltpu

BF16 = jnp.bfloat16

IMAGENET_MEAN = jnp.array([0.485, 0.456, 0.406], jnp.float32)
IMAGENET_STD = jnp.array([0.229, 0.224, 0.225], jnp.float32)

CFG = dict(
    image_size=32, patch=8, channels=3,
    vit_dim=128, vit_heads=4, vit_layers=2, vit_mlp=512,
    llm_dim=128, llm_heads=4, llm_mlp=512,
    vocab=256, tiles_per_image=2, text_len=8,
)


# ----------------------------------------------------------------------------- helpers

def _row_tile(m, max_tile=512):
    """Largest row tile that is a multiple of 8, divides m, and is <= max_tile."""
    if m % 8 != 0:
        return m
    tm = min(m, max_tile)
    while m % tm != 0:
        tm -= 8
    return tm


def _parallel(n_axes=1):
    return pltpu.CompilerParams(dimension_semantics=("parallel",) * n_axes)


def _ln_f32(x, g, b, eps=1e-6):
    mu = jnp.mean(x, axis=-1, keepdims=True)
    var = jnp.mean(jnp.square(x - mu), axis=-1, keepdims=True)
    return (x - mu) * jax.lax.rsqrt(var + eps) * g + b


# ----------------------------------------------------------------------------- kernels

def _patch_embed_kernel(x_ref, w_ref, b_ref, pos_ref, o_ref):
    # conv(stride=patch) as matmul; ImageNet normalization is pre-folded into w/b; the
    # positional embedding add is fused into the bias path.
    acc = jnp.dot(x_ref[...], w_ref[...], preferred_element_type=jnp.float32)
    acc = acc + b_ref[...].astype(jnp.float32) + pos_ref[...].astype(jnp.float32)
    o_ref[...] = acc.astype(o_ref.dtype)


def patch_embed(patches, w, b, pos_emb, n_tiles, seq):
    M, Kp = patches.shape
    D = w.shape[1]
    return pl.pallas_call(
        _patch_embed_kernel,
        out_shape=jax.ShapeDtypeStruct((M, D), BF16),
        grid=(n_tiles,),
        in_specs=[
            pl.BlockSpec((seq, Kp), lambda i: (i, 0)),
            pl.BlockSpec((Kp, D), lambda i: (0, 0)),
            pl.BlockSpec((1, D), lambda i: (0, 0)),
            pl.BlockSpec((seq, D), lambda i: (0, 0)),
        ],
        out_specs=pl.BlockSpec((seq, D), lambda i: (i, 0)),
        compiler_params=_parallel(),
    )(patches, w, b.reshape(1, D), pos_emb)


def _ln_linear_kernel(x_ref, g_ref, b_ref, w_ref, bias_ref, o_ref):
    # LayerNorm (f32) fused into the following matmul (bf16 operands, f32 accumulate).
    x = x_ref[...].astype(jnp.float32)
    y = _ln_f32(x, g_ref[...].astype(jnp.float32), b_ref[...].astype(jnp.float32))
    acc = jnp.dot(y.astype(w_ref.dtype), w_ref[...], preferred_element_type=jnp.float32)
    acc = acc + bias_ref[...].astype(jnp.float32)
    o_ref[...] = acc.astype(o_ref.dtype)


def ln_linear(x, g, b, w, bias):
    M, D = x.shape
    N = w.shape[1]
    tm = _row_tile(M)
    return pl.pallas_call(
        _ln_linear_kernel,
        out_shape=jax.ShapeDtypeStruct((M, N), x.dtype),
        grid=(M // tm,),
        in_specs=[
            pl.BlockSpec((tm, D), lambda i: (i, 0)),
            pl.BlockSpec((1, D), lambda i: (0, 0)),
            pl.BlockSpec((1, D), lambda i: (0, 0)),
            pl.BlockSpec((D, N), lambda i: (0, 0)),
            pl.BlockSpec((1, N), lambda i: (0, 0)),
        ],
        out_specs=pl.BlockSpec((tm, N), lambda i: (i, 0)),
        compiler_params=_parallel(),
    )(x, g.reshape(1, D), b.reshape(1, D), w, bias.reshape(1, N))


def _linear_resid_kernel(x_ref, w_ref, b_ref, r_ref, o_ref):
    # out = x @ w + b + residual  (residual add fused, no extra HBM round trip)
    acc = jnp.dot(x_ref[...], w_ref[...], preferred_element_type=jnp.float32)
    acc = acc + b_ref[...].astype(jnp.float32) + r_ref[...].astype(jnp.float32)
    o_ref[...] = acc.astype(o_ref.dtype)


def linear_residual(x, w, b, residual):
    M, K = x.shape
    N = w.shape[1]
    tm = _row_tile(M)
    return pl.pallas_call(
        _linear_resid_kernel,
        out_shape=jax.ShapeDtypeStruct((M, N), x.dtype),
        grid=(M // tm,),
        in_specs=[
            pl.BlockSpec((tm, K), lambda i: (i, 0)),
            pl.BlockSpec((K, N), lambda i: (0, 0)),
            pl.BlockSpec((1, N), lambda i: (0, 0)),
            pl.BlockSpec((tm, N), lambda i: (i, 0)),
        ],
        out_specs=pl.BlockSpec((tm, N), lambda i: (i, 0)),
        compiler_params=_parallel(),
    )(x, w, b.reshape(1, N), residual)


def _ln_mlp_kernel(with_residual, x_ref, g_ref, b_ref, w1_ref, b1_ref, w2_ref, b2_ref,
                   o_ref):
    # LN -> matmul -> GELU -> matmul (-> + residual), wide intermediate stays in VMEM.
    x = x_ref[...].astype(jnp.float32)
    y = _ln_f32(x, g_ref[...].astype(jnp.float32), b_ref[...].astype(jnp.float32))
    h = jnp.dot(y.astype(w1_ref.dtype), w1_ref[...], preferred_element_type=jnp.float32)
    # TODO(synk): PyTorch nn.GELU is exact erf GELU; tanh approximation kept here.
    h = jax.nn.gelu(h + b1_ref[...].astype(jnp.float32))
    out = jnp.dot(h.astype(w2_ref.dtype), w2_ref[...], preferred_element_type=jnp.float32)
    out = out + b2_ref[...].astype(jnp.float32)
    if with_residual:
        out = out + x
    o_ref[...] = out.astype(o_ref.dtype)


def ln_mlp(x, g, b, w1, b1, w2, b2, with_residual):
    M, Din = x.shape
    H = w1.shape[1]
    Dout = w2.shape[1]
    tm = _row_tile(M)
    kern = functools.partial(_ln_mlp_kernel, with_residual)
    return pl.pallas_call(
        kern,
        out_shape=jax.ShapeDtypeStruct((M, Dout), x.dtype),
        grid=(M // tm,),
        in_specs=[
            pl.BlockSpec((tm, Din), lambda i: (i, 0)),
            pl.BlockSpec((1, Din), lambda i: (0, 0)),
            pl.BlockSpec((1, Din), lambda i: (0, 0)),
            pl.BlockSpec((Din, H), lambda i: (0, 0)),
            pl.BlockSpec((1, H), lambda i: (0, 0)),
            pl.BlockSpec((H, Dout), lambda i: (0, 0)),
            pl.BlockSpec((1, Dout), lambda i: (0, 0)),
        ],
        out_specs=pl.BlockSpec((tm, Dout), lambda i: (i, 0)),
        compiler_params=_parallel(),
    )(x, g.reshape(1, Din), b.reshape(1, Din), w1, b1.reshape(1, H), w2,
      b2.reshape(1, Dout))


def _attention_kernel(heads, causal, scale, qkv_ref, o_ref):
    # One batch element per grid step; loop over heads inside the kernel so the output
    # block is lane-dense (S, D=heads*dh).  bf16 MXU operands, f32 softmax math.
    S = qkv_ref.shape[1]
    D = qkv_ref.shape[2] // 3
    dh = D // heads
    qkv = qkv_ref[0]                                   # (S, 3D) bf16
    outs = []
    for h in range(heads):
        q = qkv[:, h * dh:(h + 1) * dh]
        k = qkv[:, D + h * dh:D + (h + 1) * dh]
        v = qkv[:, 2 * D + h * dh:2 * D + (h + 1) * dh]
        s = jax.lax.dot_general(q, k, (((1,), (1,)), ((), ())),
                                preferred_element_type=jnp.float32) * scale
        if causal:
            row = jax.lax.broadcasted_iota(jnp.int32, (S, S), 0)
            col = jax.lax.broadcasted_iota(jnp.int32, (S, S), 1)
            s = jnp.where(row >= col, s, -1e30)        # mask in f32, safe
        s = s - jnp.max(s, axis=-1, keepdims=True)
        p = jnp.exp(s)
        p = p * pl.reciprocal(jnp.sum(p, axis=-1, keepdims=True), approx=True)
        outs.append(jnp.dot(p.astype(v.dtype), v, preferred_element_type=jnp.float32))
    o_ref[0] = jnp.concatenate(outs, axis=-1).astype(o_ref.dtype)


def attention(qkv, heads, causal=False):
    """qkv: (batch, S, 3*D) fused projections; returns (batch, S, D)."""
    B, S, D3 = qkv.shape
    D = D3 // 3
    dh = D // heads
    kern = functools.partial(_attention_kernel, heads, causal, 1.0 / (dh ** 0.5))
    return pl.pallas_call(
        kern,
        out_shape=jax.ShapeDtypeStruct((B, S, D), qkv.dtype),
        grid=(B,),
        in_specs=[pl.BlockSpec((1, S, D3), lambda i: (i, 0, 0))],
        out_specs=pl.BlockSpec((1, S, D), lambda i: (i, 0, 0)),
        compiler_params=_parallel(),
    )(qkv)


# ------------------------------------------------------------------------- model pieces

def _transformer_block(x2d, batch, seq, heads, blk, causal):
    D = x2d.shape[-1]
    # LN1 + fused QKV projection (one matmul, N = 3D)
    qkv = ln_linear(x2d, blk["ln1_g"], blk["ln1_b"], blk["wqkv"], blk["bqkv"])
    attn = attention(qkv.reshape(batch, seq, 3 * D), heads, causal)
    # output projection + residual add fused
    x2d = linear_residual(attn.reshape(batch * seq, D), blk["wo"], blk["bo"], x2d)
    # LN2 + MLP + residual fused (wide intermediate never touches HBM)
    x2d = ln_mlp(x2d, blk["ln2_g"], blk["ln2_b"], blk["w1"], blk["b1"],
                 blk["w2"], blk["b2"], with_residual=True)
    return x2d


def vision_encoder(pixel_values, p):
    """pixel_values: (tiles, 3, H, W) float32 in [0,1] NCHW -> (tiles, tokens, vit_dim).

    ImageNet normalization (T.Normalize) is folded into patch_w_fold / patch_b_fold,
    so the raw pixels feed the patch-embed matmul directly.
    """
    Nt, C, H, W = pixel_values.shape
    ps = CFG["patch"]
    Hn, Wn = H // ps, W // ps
    S = Hn * Wn
    patches = (pixel_values.reshape(Nt, C, Hn, ps, Wn, ps)
               .transpose(0, 2, 4, 1, 3, 5)
               .reshape(Nt * S, C * ps * ps)).astype(BF16)          # .to(bfloat16)
    x2d = patch_embed(patches, p["patch_w_fold"], p["patch_b_fold"], p["pos_emb"], Nt, S)
    for blk in p["vit_blocks"]:
        x2d = _transformer_block(x2d, Nt, S, CFG["vit_heads"], blk, causal=False)
    return x2d.reshape(Nt, S, CFG["vit_dim"])


def pixel_shuffle_and_project(vit_tokens, p):
    """(Nt, S, D) -> pixel-shuffle (0.5x) -> mlp1 projector -> (Nt*S/4, llm_dim)."""
    Nt, S, D = vit_tokens.shape
    side = int(S ** 0.5)
    x = vit_tokens.reshape(Nt, side // 2, 2, side // 2, 2, D)
    x = x.transpose(0, 1, 3, 2, 4, 5).reshape(Nt * (side // 2) * (side // 2), 4 * D)
    # LN + linear + GELU + linear fused in one kernel (no residual: dims differ)
    return ln_mlp(x, p["proj_ln_g"], p["proj_ln_b"], p["proj_w1"], p["proj_b1"],
                  p["proj_w2"], p["proj_b2"], with_residual=False)


def llm_forward(img_emb, prompt_ids, p):
    text_emb = p["tok_emb"][prompt_ids]                             # glue: embedding gather
    h = jnp.concatenate([img_emb, text_emb.astype(BF16)], axis=0)   # (S_total, llm_dim)
    S = h.shape[0]
    h = _transformer_block(h, 1, S, CFG["llm_heads"], p["dec"], causal=True)
    # greedy decode: final-LN + lm_head only for the LAST token (1 x vocab matmul)
    last = h[-1:, :]
    logits = ln_linear(last, p["final_ln_g"], p["final_ln_b"],
                       p["lm_head_w"], p["lm_head_b"])              # (1, vocab)
    next_id = jnp.argmax(logits[0])                                 # greedy "response" token
    return next_id, logits


def internvl_forward(images, prompt_ids, params):
    """images: list of 2 tile stacks (tiles, 3, H, W) float32 in [0,1] (NCHW)."""
    pixel_values = jnp.concatenate(images, axis=0)                  # torch.cat(dim=0)
    vit_tokens = vision_encoder(pixel_values, params)
    img_emb = pixel_shuffle_and_project(vit_tokens, params)
    return llm_forward(img_emb, prompt_ids, params)


# ----------------------------------------------------------------------------- params

def _fold_normalization(patch_w, patch_b, ps, C):
    """Fold (x - mean) / std into the patch-embed matmul.

    im2col row layout is (c, py, px) -> the channel of column j is j // (ps*ps).
    """
    col_inv = jnp.repeat(1.0 / IMAGENET_STD, ps * ps)               # (C*ps*ps,)
    col_mean = jnp.repeat(IMAGENET_MEAN, ps * ps)
    w32 = patch_w.astype(jnp.float32)
    w_fold = (w32 * col_inv[:, None]).astype(BF16)
    b_fold = patch_b.astype(jnp.float32) - (col_mean * col_inv) @ w32
    return w_fold, b_fold


def init_params(key):
    D, M = CFG["vit_dim"], CFG["vit_mlp"]
    LD, LM, V = CFG["llm_dim"], CFG["llm_mlp"], CFG["vocab"]
    ps, C = CFG["patch"], CFG["channels"]
    S = (CFG["image_size"] // ps) ** 2
    keys = iter(jax.random.split(key, 128))

    def nrm(shape, scale=0.02):
        return (jax.random.normal(next(keys), shape, jnp.float32) * scale).astype(BF16)

    def zeros(n):
        return jnp.zeros((n,), BF16)

    def ones(n):
        return jnp.ones((n,), BF16)

    def block(dim, mlp):
        return dict(
            ln1_g=ones(dim), ln1_b=zeros(dim),
            wqkv=nrm((dim, 3 * dim)), bqkv=zeros(3 * dim),          # fused Q|K|V
            wo=nrm((dim, dim)), bo=zeros(dim),
            ln2_g=ones(dim), ln2_b=zeros(dim),
            w1=nrm((dim, mlp)), b1=zeros(mlp),
            w2=nrm((mlp, dim)), b2=zeros(dim),
        )

    patch_w = nrm((C * ps * ps, D))
    patch_b = zeros(D)
    patch_w_fold, patch_b_fold = _fold_normalization(patch_w, patch_b, ps, C)

    return dict(
        patch_w_fold=patch_w_fold, patch_b_fold=patch_b_fold,
        pos_emb=nrm((S, D)),
        vit_blocks=[block(D, M) for _ in range(CFG["vit_layers"])],
        proj_ln_g=ones(4 * D), proj_ln_b=zeros(4 * D),
        proj_w1=nrm((4 * D, LD)), proj_b1=zeros(LD),
        proj_w2=nrm((LD, LD)), proj_b2=zeros(LD),
        tok_emb=nrm((V, LD)),
        dec=block(LD, LM),
        final_ln_g=ones(LD), final_ln_b=zeros(LD),
        lm_head_w=nrm((LD, V)), lm_head_b=zeros(V),
    )


# ----------------------------------------------------------------------------- main

if __name__ == "__main__":
    key = jax.random.PRNGKey(0)
    k_img1, k_img2, k_param, k_txt = jax.random.split(key, 4)

    tiles = CFG["tiles_per_image"]
    hw = CFG["image_size"]
    # each "image" is the tile stack produced by dynamic_preprocess (tiles, 3, H, W) in [0,1]
    image_1 = jax.random.uniform(k_img1, (tiles, 3, hw, hw), jnp.float32)
    image_2 = jax.random.uniform(k_img2, (tiles, 3, hw, hw), jnp.float32)
    prompt_ids = jax.random.randint(k_txt, (CFG["text_len"],), 0, CFG["vocab"])

    params = init_params(k_param)

    fwd = jax.jit(internvl_forward)
    next_token, logits = fwd([image_1, image_2], prompt_ids, params)
    jax.block_until_ready((next_token, logits))
    print("KERNEL_OK")
</pallas_src>

<mosaic_0001>
module attributes {stable_mosaic.version = 11 : i64} {
  func.func @_patch_embed_kernel(%arg0: i32, %arg1: memref<16x192xbf16, #tpu.memory_space<vmem>>, %arg2: memref<192x128xbf16, #tpu.memory_space<vmem>>, %arg3: memref<1x128xf32, #tpu.memory_space<vmem>>, %arg4: memref<16x128xbf16, #tpu.memory_space<vmem>>, %arg5: memref<16x128xbf16, #tpu.memory_space<vmem>>) attributes {dimension_semantics = [#tpu.dimension_semantics<parallel>], iteration_bounds = array<i64: 4>, scalar_prefetch = 0 : i64, scratch_operands = 0 : i64, tpu.core_type = #tpu.core_type<tc>, window_params = [{transform_indices = @transform_0, window_bounds = array<i64: 16, 192>}, {pipeline_mode = #tpu.pipeline_mode<synchronous>, transform_indices = @transform_1, window_bounds = array<i64: 192, 128>}, {pipeline_mode = #tpu.pipeline_mode<synchronous>, transform_indices = @transform_2, window_bounds = array<i64: 1, 128>}, {pipeline_mode = #tpu.pipeline_mode<synchronous>, transform_indices = @transform_3, window_bounds = array<i64: 16, 128>}, {transform_indices = @transform_4, window_bounds = array<i64: 16, 128>}]} {
    %c0 = arith.constant 0 : index
    %c0_0 = arith.constant 0 : index
    %0 = vector.load %arg1[%c0, %c0_0] : memref<16x192xbf16, #tpu.memory_space<vmem>>, vector<16x192xbf16>
    %c0_1 = arith.constant 0 : index
    %c0_2 = arith.constant 0 : index
    %1 = vector.load %arg2[%c0_1, %c0_2] : memref<192x128xbf16, #tpu.memory_space<vmem>>, vector<192x128xbf16>
    %cst = arith.constant dense<0.000000e+00> : vector<16x128xf32>
    %2 = tpu.matmul %0, %1, %cst {dimension_numbers = #tpu.dot_dimension_numbers<[1], [0], [0], [1], [0, 0, 1, 1], [], []>} : vector<16x192xbf16>, vector<192x128xbf16>, vector<16x128xf32> -> vector<16x128xf32>
    %c0_3 = arith.constant 0 : index
    %c0_4 = arith.constant 0 : index
    %3 = vector.load %arg3[%c0_3, %c0_4] : memref<1x128xf32, #tpu.memory_space<vmem>>, vector<1x128xf32>
    %4 = vector.broadcast %3 : vector<1x128xf32> to vector<16x128xf32>
    %5 = arith.addf %2, %4 : vector<16x128xf32>
    %c0_5 = arith.constant 0 : index
    %c0_6 = arith.constant 0 : index
    %6 = vector.load %arg4[%c0_5, %c0_6] : memref<16x128xbf16, #tpu.memory_space<vmem>>, vector<16x128xbf16>
    %7 = arith.extf %6 : vector<16x128xbf16> to vector<16x128xf32>
    %8 = arith.addf %5, %7 : vector<16x128xf32>
    %9 = arith.truncf %8 : vector<16x128xf32> to vector<16x128xbf16>
    %c0_7 = arith.constant 0 : index
    %c0_8 = arith.constant 0 : index
    %10 = vector.load %arg5[%c0_7, %c0_8] : memref<16x128xbf16, #tpu.memory_space<vmem>>, vector<16x128xbf16>
    tpu.vector_store %arg5[%c0_7, %c0_8], %9 {strides = array<i32>} : memref<16x128xbf16, #tpu.memory_space<vmem>>, vector<16x128xbf16>,
    return
  }
  func.func @transform_0(%arg0: i32) -> (i32, i32) {
    %c0_i32 = arith.constant 0 : i32
    %c0_i32_0 = arith.constant 0 : i32
    return %arg0, %c0_i32 : i32, i32
  }
  func.func @transform_1(%arg0: i32) -> (i32, i32) {
    %c0_i32 = arith.constant 0 : i32
    %c0_i32_0 = arith.constant 0 : i32
    %c0_i32_1 = arith.constant 0 : i32
    return %c0_i32, %c0_i32_0 : i32, i32
  }
  func.func @transform_2(%arg0: i32) -> (i32, i32) {
    %c0_i32 = arith.constant 0 : i32
    %c0_i32_0 = arith.constant 0 : i32
    %c0_i32_1 = arith.constant 0 : i32
    return %c0_i32, %c0_i32_0 : i32, i32
  }
  func.func @transform_3(%arg0: i32) -> (i32, i32) {
    %c0_i32 = arith.constant 0 : i32
    %c0_i32_0 = arith.constant 0 : i32
    %c0_i32_1 = arith.constant 0 : i32
    return %c0_i32, %c0_i32_0 : i32, i32
  }
  func.func @transform_4(%arg0: i32) -> (i32, i32) {
    %c0_i32 = arith.constant 0 : i32
    %c0_i32_0 = arith.constant 0 : i32
    return %arg0, %c0_i32 : i32, i32
  }
}

module attributes {stable_mosaic.version = 11 : i64} {
  func.func @_ln_linear_kernel(%arg0: i32, %arg1: memref<64x128xbf16, #tpu.memory_space<vmem>>, %arg2: memref<1x128xbf16, #tpu.memory_space<vmem>>, %arg3: memref<1x128xbf16, #tpu.memory_space<vmem>>, %arg4: memref<128x384xbf16, #tpu.memory_space<vmem>>, %arg5: memref<1x384xbf16, #tpu.memory_space<vmem>>, %arg6: memref<64x384xbf16, #tpu.memory_space<vmem>>) attributes {dimension_semantics = [#tpu.dimension_semantics<parallel>], iteration_bounds = array<i64: 1>, scalar_prefetch = 0 : i64, scratch_operands = 0 : i64, tpu.core_type = #tpu.core_type<tc>, window_params = [{transform_indices = @transform_0, window_bounds = array<i64: 64, 128>}, {pipeline_mode = #tpu.pipeline_mode<synchronous>, transform_indices = @transform_1, window_bounds = array<i64: 1, 128>}, {pipeline_mode = #tpu.pipeline_mode<synchronous>, transform_indices = @transform_2, window_bounds = array<i64: 1, 128>}, {pipeline_mode = #tpu.pipeline_mode<synchronous>, transform_indices = @transform_3, window_bounds = array<i64: 128, 384>}, {pipeline_mode = #tpu.pipeline_mode<synchronous>, transform_indices = @transform_4, window_bounds = array<i64: 1, 384>}, {transform_indices = @transform_5, window_bounds = array<i64: 64, 384>}]} {
    %c0 = arith.constant 0 : index
    %c0_0 = arith.constant 0 : index
    %0 = vector.load %arg1[%c0, %c0_0] : memref<64x128xbf16, #tpu.memory_space<vmem>>, vector<64x128xbf16>
    %1 = arith.extf %0 : vector<64x128xbf16> to vector<64x128xf32>
    %c0_1 = arith.constant 0 : index
    %c0_2 = arith.constant 0 : index
    %2 = vector.load %arg2[%c0_1, %c0_2] : memref<1x128xbf16, #tpu.memory_space<vmem>>, vector<1x128xbf16>
    %3 = arith.extf %2 : vector<1x128xbf16> to vector<1x128xf32>
    %c0_3 = arith.constant 0 : index
    %c0_4 = arith.constant 0 : index
    %4 = vector.load %arg3[%c0_3, %c0_4] : memref<1x128xbf16, #tpu.memory_space<vmem>>, vector<1x128xbf16>
    %5 = arith.extf %4 : vector<1x128xbf16> to vector<1x128xf32>
    %cst = arith.constant dense<0.000000e+00> : vector<64xf32>
    %6 = vector.multi_reduction <add>, %1, %cst [1] : vector<64x128xf32> to vector<64xf32>
    %7 = vector.shape_cast %6 : vector<64xf32> to vector<64x1xf32>
    %cst_5 = arith.constant 1.280000e+02 : f32
    %8 = vector.broadcast %cst_5 : f32 to vector<64x1xf32>
    %9 = arith.divf %7, %8 : vector<64x1xf32>
    %10 = vector.broadcast %9 : vector<64x1xf32> to vector<64x128xf32>
    %11 = arith.subf %1, %10 : vector<64x128xf32>
    %12 = arith.mulf %11, %11 : vector<64x128xf32>
    %cst_6 = arith.constant dense<0.000000e+00> : vector<64xf32>
    %13 = vector.multi_reduction <add>, %12, %cst_6 [1] : vector<64x128xf32> to vector<64xf32>
    %14 = vector.shape_cast %13 : vector<64xf32> to vector<64x1xf32>
    %cst_7 = arith.constant 1.280000e+02 : f32
    %15 = vector.broadcast %cst_7 : f32 to vector<64x1xf32>
    %16 = arith.divf %14, %15 : vector<64x1xf32>
    %17 = vector.broadcast %9 : vector<64x1xf32> to vector<64x128xf32>
    %18 = arith.subf %1, %17 : vector<64x128xf32>
    %cst_8 = arith.constant 9.99999997E-7 : f32
    %19 = vector.broadcast %cst_8 : f32 to vector<64x1xf32>
    %20 = arith.addf %16, %19 : vector<64x1xf32>
    %21 = math.rsqrt %20 : vector<64x1xf32>
    %22 = vector.broadcast %21 : vector<64x1xf32> to vector<64x128xf32>
    %23 = arith.mulf %18, %22 : vector<64x128xf32>
    %24 = vector.broadcast %3 : vector<1x128xf32> to vector<64x128xf32>
    %25 = arith.mulf %23, %24 : vector<64x128xf32>
    %26 = vector.broadcast %5 : vector<1x128xf32> to vector<64x128xf32>
    %27 = arith.addf %25, %26 : vector<64x128xf32>
    %28 = arith.truncf %27 : vector<64x128xf32> to vector<64x128xbf16>
    %c0_9 = arith.constant 0 : index
    %c0_10 = arith.constant 0 : index
    %29 = vector.load %arg4[%c0_9, %c0_10] : memref<128x384xbf16, #tpu.memory_space<vmem>>, vector<128x384xbf16>
    %cst_11 = arith.constant dense<0.000000e+00> : vector<64x384xf32>
    %30 = tpu.matmul %28, %29, %cst_11 {dimension_numbers = #tpu.dot_dimension_numbers<[1], [0], [0], [1], [0, 0, 1, 1], [], []>} : vector<64x128xbf16>, vector<128x384xbf16>, vector<64x384xf32> -> vector<64x384xf32>
    %c0_12 = arith.constant 0 : index
    %c0_13 = arith.constant 0 : index
    %31 = vector.load %arg5[%c0_12, %c0_13] : memref<1x384xbf16, #tpu.memory_space<vmem>>, vector<1x384xbf16>
    %32 = arith.extf %31 : vector<1x384xbf16> to vector<1x384xf32>
    %33 = vector.broadcast %32 : vector<1x384xf32> to vector<64x384xf32>
    %34 = arith.addf %30, %33 : vector<64x384xf32>
    %35 = arith.truncf %34 : vector<64x384xf32> to vector<64x384xbf16>
    %c0_14 = arith.constant 0 : index
    %c0_15 = arith.constant 0 : index
    %36 = vector.load %arg6[%c0_14, %c0_15] : memref<64x384xbf16, #tpu.memory_space<vmem>>, vector<64x384xbf16>
    tpu.vector_store %arg6[%c0_14, %c0_15], %35 {strides = array<i32>} : memref<64x384xbf16, #tpu.memory_space<vmem>>, vector<64x384xbf16>,
    return
  }
  func.func @transform_0(%arg0: i32) -> (i32, i32) {
    %c0_i32 = arith.constant 0 : i32
    %c0_i32_0 = arith.constant 0 : i32
    return %arg0, %c0_i32 : i32, i32
  }
  func.func @transform_1(%arg0: i32) -> (i32, i32) {
    %c0_i32 = arith.constant 0 : i32
    %c0_i32_0 = arith.constant 0 : i32
    %c0_i32_1 = arith.constant 0 : i32
    return %c0_i32, %c0_i32_0 : i32, i32
  }
  func.func @transform_2(%arg0: i32) -> (i32, i32) {
    %c0_i32 = arith.constant 0 : i32
    %c0_i32_0 = arith.constant 0 : i32
    %c0_i32_1 = arith.constant 0 : i32
    return %c0_i32, %c0_i32_0 : i32, i32
  }
  func.func @transform_3(%arg0: i32) -> (i32, i32) {
    %c0_i32 = arith.constant 0 : i32
    %c0_i32_0 = arith.constant 0 : i32
    %c0_i32_1 = arith.constant 0 : i32
    return %c0_i32, %c0_i32_0 : i32, i32
  }
  func.func @transform_4(%arg0: i32) -> (i32, i32) {
    %c0_i32 = arith.constant 0 : i32
    %c0_i32_0 = arith.constant 0 : i32
    %c0_i32_1 = arith.constant 0 : i32
    return %c0_i32, %c0_i32_0 : i32, i32
  }
  func.func @transform_5(%arg0: i32) -> (i32, i32) {
    %c0_i32 = arith.constant 0 : i32
    %c0_i32_0 = arith.constant 0 : i32
    return %arg0, %c0_i32 : i32, i32
  }
}

module attributes {stable_mosaic.version = 11 : i64} {
  func.func @_attention_kernel(%arg0: i32, %arg1: memref<1x16x384xbf16, #tpu.memory_space<vmem>>, %arg2: memref<1x16x128xbf16, #tpu.memory_space<vmem>>) attributes {dimension_semantics = [#tpu.dimension_semantics<parallel>], iteration_bounds = array<i64: 4>, scalar_prefetch = 0 : i64, scratch_operands = 0 : i64, tpu.core_type = #tpu.core_type<tc>, window_params = [{transform_indices = @transform_0, window_bounds = array<i64: 1, 16, 384>}, {transform_indices = @transform_1, window_bounds = array<i64: 1, 16, 128>}]} {
    %c0 = arith.constant 0 : index
    %c0_0 = arith.constant 0 : index
    %c0_1 = arith.constant 0 : index
    %0 = vector.load %arg1[%c0, %c0_0, %c0_1] : memref<1x16x384xbf16, #tpu.memory_space<vmem>>, vector<1x16x384xbf16>
    %1 = vector.shape_cast %0 : vector<1x16x384xbf16> to vector<16x384xbf16>
    %2 = vector.extract_strided_slice %1 {offsets = [0, 0], sizes = [16, 32], strides = [1, 1]} : vector<16x384xbf16> to vector<16x32xbf16>
    %3 = vector.extract_strided_slice %1 {offsets = [0, 128], sizes = [16, 32], strides = [1, 1]} : vector<16x384xbf16> to vector<16x32xbf16>
    %4 = vector.extract_strided_slice %1 {offsets = [0, 256], sizes = [16, 32], strides = [1, 1]} : vector<16x384xbf16> to vector<16x32xbf16>
    %cst = arith.constant dense<0.000000e+00> : vector<16x16xf32>
    %5 = tpu.matmul %2, %3, %cst {dimension_numbers = #tpu.dot_dimension_numbers<[1], [1], [0], [0], [0, 0, 1, 0], [], []>} : vector<16x32xbf16>, vector<16x32xbf16>, vector<16x16xf32> -> vector<16x16xf32>
    %cst_2 = arith.constant 0.176776692 : f32
    %6 = vector.broadcast %cst_2 : f32 to vector<16x16xf32>
    %7 = arith.mulf %5, %6 : vector<16x16xf32>
    %cst_3 = arith.constant dense<0xFF800000> : vector<16xf32>
    %8 = vector.multi_reduction <maximumf>, %7, %cst_3 [1] : vector<16x16xf32> to vector<16xf32>
    %9 = vector.shape_cast %8 : vector<16xf32> to vector<16x1xf32>
    %10 = vector.broadcast %9 : vector<16x1xf32> to vector<16x16xf32>
    %11 = arith.subf %7, %10 : vector<16x16xf32>
    %12 = math.exp %11 : vector<16x16xf32>
    %cst_4 = arith.constant dense<0.000000e+00> : vector<16xf32>
    %13 = vector.multi_reduction <add>, %12, %cst_4 [1] : vector<16x16xf32> to vector<16xf32>
    %14 = vector.shape_cast %13 : vector<16xf32> to vector<16x1xf32>
    %15 = tpu.reciprocal %14 {approx = true} : vector<16x1xf32> -> vector<16x1xf32>
    %16 = vector.broadcast %15 : vector<16x1xf32> to vector<16x16xf32>
    %17 = arith.mulf %12, %16 : vector<16x16xf32>
    %18 = arith.truncf %17 : vector<16x16xf32> to vector<16x16xbf16>
    %cst_5 = arith.constant dense<0.000000e+00> : vector<16x32xf32>
    %19 = tpu.matmul %18, %4, %cst_5 {dimension_numbers = #tpu.dot_dimension_numbers<[1], [0], [0], [1], [0, 0, 1, 1], [], []>} : vector<16x16xbf16>, vector<16x32xbf16>, vector<16x32xf32> -> vector<16x32xf32>
    %20 = vector.extract_strided_slice %1 {offsets = [0, 32], sizes = [16, 32], strides = [1, 1]} : vector<16x384xbf16> to vector<16x32xbf16>
    %21 = vector.extract_strided_slice %1 {offsets = [0, 160], sizes = [16, 32], strides = [1, 1]} : vector<16x384xbf16> to vector<16x32xbf16>
    %22 = vector.extract_strided_slice %1 {offsets = [0, 288], sizes = [16, 32], strides = [1, 1]} : vector<16x384xbf16> to vector<16x32xbf16>
    %cst_6 = arith.constant dense<0.000000e+00> : vector<16x16xf32>
    %23 = tpu.matmul %20, %21, %cst_6 {dimension_numbers = #tpu.dot_dimension_numbers<[1], [1], [0], [0], [0, 0, 1, 0], [], []>} : vector<16x32xbf16>, vector<16x32xbf16>, vector<16x16xf32> -> vector<16x16xf32>
    %cst_7 = arith.constant 0.176776692 : f32
    %24 = vector.broadcast %cst_7 : f32 to vector<16x16xf32>
    %25 = arith.mulf %23, %24 : vector<16x16xf32>
    %cst_8 = arith.constant dense<0xFF800000> : vector<16xf32>
    %26 = vector.multi_reduction <maximumf>, %25, %cst_8 [1] : vector<16x16xf32> to vector<16xf32>
    %27 = vector.shape_cast %26 : vector<16xf32> to vector<16x1xf32>
    %28 = vector.broadcast %27 : vector<16x1xf32> to vector<16x16xf32>
    %29 = arith.subf %25, %28 : vector<16x16xf32>
    %30 = math.exp %29 : vector<16x16xf32>
    %cst_9 = arith.constant dense<0.000000e+00> : vector<16xf32>
    %31 = vector.multi_reduction <add>, %30, %cst_9 [1] : vector<16x16xf32> to vector<16xf32>
    %32 = vector.shape_cast %31 : vector<16xf32> to vector<16x1xf32>
    %33 = tpu.reciprocal %32 {approx = true} : vector<16x1xf32> -> vector<16x1xf32>
    %34 = vector.broadcast %33 : vector<16x1xf32> to vector<16x16xf32>
    %35 = arith.mulf %30, %34 : vector<16x16xf32>
    %36 = arith.truncf %35 : vector<16x16xf32> to vector<16x16xbf16>
    %cst_10 = arith.constant dense<0.000000e+00> : vector<16x32xf32>
    %37 = tpu.matmul %36, %22, %cst_10 {dimension_numbers = #tpu.dot_dimension_numbers<[1], [0], [0], [1], [0, 0, 1, 1], [], []>} : vector<16x16xbf16>, vector<16x32xbf16>, vector<16x32xf32> -> vector<16x32xf32>
    %38 = vector.extract_strided_slice %1 {offsets = [0, 64], sizes = [16, 32], strides = [1, 1]} : vector<16x384xbf16> to vector<16x32xbf16>
    %39 = vector.extract_strided_slice %1 {offsets = [0, 192], sizes = [16, 32], strides = [1, 1]} : vector<16x384xbf16> to vector<16x32xbf16>
    %40 = vector.extract_strided_slice %1 {offsets = [0, 320], sizes = [16, 32], strides = [1, 1]} : vector<16x384xbf16> to vector<16x32xbf16>
    %cst_11 = arith.constant dense<0.000000e+00> : vector<16x16xf32>
    %41 = tpu.matmul %38, %39, %cst_11 {dimension_numbers = #tpu.dot_dimension_numbers<[1], [1], [0], [0], [0, 0, 1, 0], [], []>} : vector<16x32xbf16>, vector<16x32xbf16>, vector<16x16xf32> -> vector<16x16xf32>
    %cst_12 = arith.constant 0.176776692 : f32
    %42 = vector.broadcast %cst_12 : f32 to vector<16x16xf32>
    %43 = arith.mulf %41, %42 : vector<16x16xf32>
    %cst_13 = arith.constant dense<0xFF800000> : vector<16xf32>
    %44 = vector.multi_reduction <maximumf>, %43, %cst_13 [1] : vector<16x16xf32> to vector<16xf32>
    %45 = vector.shape_cast %44 : vector<16xf32> to vector<16x1xf32>
    %46 = vector.broadcast %45 : vector<16x1xf32> to vector<16x16xf32>
    %47 = arith.subf %43, %46 : vector<16x16xf32>
    %48 = math.exp %47 : vector<16x16xf32>
    %cst_14 = arith.constant dense<0.000000e+00> : vector<16xf32>
    %49 = vector.multi_reduction <add>, %48, %cst_14 [1] : vector<16x16xf32> to vector<16xf32>
    %50 = vector.shape_cast %49 : vector<16xf32> to vector<16x1xf32>
    %51 = tpu.reciprocal %50 {approx = true} : vector<16x1xf32> -> vector<16x1xf32>
    %52 = vector.broadcast %51 : vector<16x1xf32> to vector<16x16xf32>
    %53 = arith.mulf %48, %52 : vector<16x16xf32>
    %54 = arith.truncf %53 : vector<16x16xf32> to vector<16x16xbf16>
    %cst_15 = arith.constant dense<0.000000e+00> : vector<16x32xf32>
    %55 = tpu.matmul %54, %40, %cst_15 {dimension_numbers = #tpu.dot_dimension_numbers<[1], [0], [0], [1], [0, 0, 1, 1], [], []>} : vector<16x16xbf16>, vector<16x32xbf16>, vector<16x32xf32> -> vector<16x32xf32>
    %56 = vector.extract_strided_slice %1 {offsets = [0, 96], sizes = [16, 32], strides = [1, 1]} : vector<16x384xbf16> to vector<16x32xbf16>
    %57 = vector.extract_strided_slice %1 {offsets = [0, 224], sizes = [16, 32], strides = [1, 1]} : vector<16x384xbf16> to vector<16x32xbf16>
    %58 = vector.extract_strided_slice %1 {offsets = [0, 352], sizes = [16, 32], strides = [1, 1]} : vector<16x384xbf16> to vector<16x32xbf16>
    %cst_16 = arith.constant dense<0.000000e+00> : vector<16x16xf32>
    %59 = tpu.matmul %56, %57, %cst_16 {dimension_numbers = #tpu.dot_dimension_numbers<[1], [1], [0], [0], [0, 0, 1, 0], [], []>} : vector<16x32xbf16>, vector<16x32xbf16>, vector<16x16xf32> -> vector<16x16xf32>
    %cst_17 = arith.constant 0.176776692 : f32
    %60 = vector.broadcast %cst_17 : f32 to vector<16x16xf32>
    %61 = arith.mulf %59, %60 : vector<16x16xf32>
    %cst_18 = arith.constant dense<0xFF800000> : vector<16xf32>
    %62 = vector.multi_reduction <maximumf>, %61, %cst_18 [1] : vector<16x16xf32> to vector<16xf32>
    %63 = vector.shape_cast %62 : vector<16xf32> to vector<16x1xf32>
    %64 = vector.broadcast %63 : vector<16x1xf32> to vector<16x16xf32>
    %65 = arith.subf %61, %64 : vector<16x16xf32>
    %66 = math.exp %65 : vector<16x16xf32>
    %cst_19 = arith.constant dense<0.000000e+00> : vector<16xf32>
    %67 = vector.multi_reduction <add>, %66, %cst_19 [1] : vector<16x16xf32> to vector<16xf32>
    %68 = vector.shape_cast %67 : vector<16xf32> to vector<16x1xf32>
    %69 = tpu.reciprocal %68 {approx = true} : vector<16x1xf32> -> vector<16x1xf32>
    %70 = vector.broadcast %69 : vector<16x1xf32> to vector<16x16xf32>
    %71 = arith.mulf %66, %70 : vector<16x16xf32>
    %72 = arith.truncf %71 : vector<16x16xf32> to vector<16x16xbf16>
    %cst_20 = arith.constant dense<0.000000e+00> : vector<16x32xf32>
    %73 = tpu.matmul %72, %58, %cst_20 {dimension_numbers = #tpu.dot_dimension_numbers<[1], [0], [0], [1], [0, 0, 1, 1], [], []>} : vector<16x16xbf16>, vector<16x32xbf16>, vector<16x32xf32> -> vector<16x32xf32>
    %74 = tpu.concatenate %19, %37, %55, %73 in 1 : vector<16x32xf32>, vector<16x32xf32>, vector<16x32xf32>, vector<16x32xf32> -> vector<16x128xf32>
    %75 = arith.truncf %74 : vector<16x128xf32> to vector<16x128xbf16>
    %c0_21 = arith.constant 0 : index
    %c0_22 = arith.constant 0 : index
    %c0_23 = arith.constant 0 : index
    %76 = vector.load %arg2[%c0_21, %c0_22, %c0_23] : memref<1x16x128xbf16, #tpu.memory_space<vmem>>, vector<1x16x128xbf16>
    %77 = vector.shape_cast %76 : vector<1x16x128xbf16> to vector<16x128xbf16>
    %78 = vector.shape_cast %75 : vector<16x128xbf16> to vector<1x16x128xbf16>
    tpu.vector_store %arg2[%c0_21, %c0_22, %c0_23], %78 {strides = array<i32>} : memref<1x16x128xbf16, #tpu.memory_space<vmem>>, vector<1x16x128xbf16>,
    return
  }
  func.func @transform_0(%arg0: i32) -> (i32, i32, i32) {
    %c0_i32 = arith.constant 0 : i32
    %c0_i32_0 = arith.constant 0 : i32
    %c0_i32_1 = arith.constant 0 : i32
    return %arg0, %c0_i32, %c0_i32_0 : i32, i32, i32
  }
  func.func @transform_1(%arg0: i32) -> (i32, i32, i32) {
    %c0_i32 = arith.constant 0 : i32
    %c0_i32_0 = arith.constant 0 : i32
    %c0_i32_1 = arith.constant 0 : i32
    return %arg0, %c0_i32, %c0_i32_0 : i32, i32, i32
  }
}

module attributes {stable_mosaic.version = 11 : i64} {
  func.func @_linear_resid_kernel(%arg0: i32, %arg1: memref<64x128xbf16, #tpu.memory_space<vmem>>, %arg2: memref<128x128xbf16, #tpu.memory_space<vmem>>, %arg3: memref<1x128xbf16, #tpu.memory_space<vmem>>, %arg4: memref<64x128xbf16, #tpu.memory_space<vmem>>, %arg5: memref<64x128xbf16, #tpu.memory_space<vmem>>) attributes {dimension_semantics = [#tpu.dimension_semantics<parallel>], iteration_bounds = array<i64: 1>, scalar_prefetch = 0 : i64, scratch_operands = 0 : i64, tpu.core_type = #tpu.core_type<tc>, window_params = [{transform_indices = @transform_0, window_bounds = array<i64: 64, 128>}, {pipeline_mode = #tpu.pipeline_mode<synchronous>, transform_indices = @transform_1, window_bounds = array<i64: 128, 128>}, {pipeline_mode = #tpu.pipeline_mode<synchronous>, transform_indices = @transform_2, window_bounds = array<i64: 1, 128>}, {transform_indices = @transform_3, window_bounds = array<i64: 64, 128>}, {transform_indices = @transform_4, window_bounds = array<i64: 64, 128>}]} {
    %c0 = arith.constant 0 : index
    %c0_0 = arith.constant 0 : index
    %0 = vector.load %arg1[%c0, %c0_0] : memref<64x128xbf16, #tpu.memory_space<vmem>>, vector<64x128xbf16>
    %c0_1 = arith.constant 0 : index
    %c0_2 = arith.constant 0 : index
    %1 = vector.load %arg2[%c0_1, %c0_2] : memref<128x128xbf16, #tpu.memory_space<vmem>>, vector<128x128xbf16>
    %cst = arith.constant dense<0.000000e+00> : vector<64x128xf32>
    %2 = tpu.matmul %0, %1, %cst {dimension_numbers = #tpu.dot_dimension_numbers<[1], [0], [0], [1], [0, 0, 1, 1], [], []>} : vector<64x128xbf16>, vector<128x128xbf16>, vector<64x128xf32> -> vector<64x128xf32>
    %c0_3 = arith.constant 0 : index
    %c0_4 = arith.constant 0 : index
    %3 = vector.load %arg3[%c0_3, %c0_4] : memref<1x128xbf16, #tpu.memory_space<vmem>>, vector<1x128xbf16>
    %4 = arith.extf %3 : vector<1x128xbf16> to vector<1x128xf32>
    %5 = vector.broadcast %4 : vector<1x128xf32> to vector<64x128xf32>
    %6 = arith.addf %2, %5 : vector<64x128xf32>
    %c0_5 = arith.constant 0 : index
    %c0_6 = arith.constant 0 : index
    %7 = vector.load %arg4[%c0_5, %c0_6] : memref<64x128xbf16, #tpu.memory_space<vmem>>, vector<64x128xbf16>
    %8 = arith.extf %7 : vector<64x128xbf16> to vector<64x128xf32>
    %9 = arith.addf %6, %8 : vector<64x128xf32>
    %10 = arith.truncf %9 : vector<64x128xf32> to vector<64x128xbf16>
    %c0_7 = arith.constant 0 : index
    %c0_8 = arith.constant 0 : index
    %11 = vector.load %arg5[%c0_7, %c0_8] : memref<64x128xbf16, #tpu.memory_space<vmem>>, vector<64x128xbf16>
    tpu.vector_store %arg5[%c0_7, %c0_8], %10 {strides = array<i32>} : memref<64x128xbf16, #tpu.memory_space<vmem>>, vector<64x128xbf16>,
    return
  }
  func.func @transform_0(%arg0: i32) -> (i32, i32) {
    %c0_i32 = arith.constant 0 : i32
    %c0_i32_0 = arith.constant 0 : i32
    return %arg0, %c0_i32 : i32, i32
  }
  func.func @transform_1(%arg0: i32) -> (i32, i32) {
    %c0_i32 = arith.constant 0 : i32
    %c0_i32_0 = arith.constant 0 : i32
    %c0_i32_1 = arith.constant 0 : i32
    return %c0_i32, %c0_i32_0 : i32, i32
  }
  func.func @transform_2(%arg0: i32) -> (i32, i32) {
    %c0_i32 = arith.constant 0 : i32
    %c0_i32_0 = arith.constant 0 : i32
    %c0_i32_1 = arith.constant 0 : i32
    return %c0_i32, %c0_i32_0 : i32, i32
  }
  func.func @transform_3(%arg0: i32) -> (i32, i32) {
    %c0_i32 = arith.constant 0 : i32
    %c0_i32_0 = arith.constant 0 : i32
    return %arg0, %c0_i32 : i32, i32
  }
  func.func @transform_4(%arg0: i32) -> (i32, i32) {
    %c0_i32 = arith.constant 0 : i32
    %c0_i32_0 = arith.constant 0 : i32
    return %arg0, %c0_i32 : i32, i32
  }
}

module attributes {stable_mosaic.version = 11 : i64} {
  func.func @_ln_mlp_kernel(%arg0: i32, %arg1: memref<64x128xbf16, #tpu.memory_space<vmem>>, %arg2: memref<1x128xbf16, #tpu.memory_space<vmem>>, %arg3: memref<1x128xbf16, #tpu.memory_space<vmem>>, %arg4: memref<128x512xbf16, #tpu.memory_space<vmem>>, %arg5: memref<1x512xbf16, #tpu.memory_space<vmem>>, %arg6: memref<512x128xbf16, #tpu.memory_space<vmem>>, %arg7: memref<1x128xbf16, #tpu.memory_space<vmem>>, %arg8: memref<64x128xbf16, #tpu.memory_space<vmem>>) attributes {dimension_semantics = [#tpu.dimension_semantics<parallel>], iteration_bounds = array<i64: 1>, scalar_prefetch = 0 : i64, scratch_operands = 0 : i64, tpu.core_type = #tpu.core_type<tc>, window_params = [{transform_indices = @transform_0, window_bounds = array<i64: 64, 128>}, {pipeline_mode = #tpu.pipeline_mode<synchronous>, transform_indices = @transform_1, window_bounds = array<i64: 1, 128>}, {pipeline_mode = #tpu.pipeline_mode<synchronous>, transform_indices = @transform_2, window_bounds = array<i64: 1, 128>}, {pipeline_mode = #tpu.pipeline_mode<synchronous>, transform_indices = @transform_3, window_bounds = array<i64: 128, 512>}, {pipeline_mode = #tpu.pipeline_mode<synchronous>, transform_indices = @transform_4, window_bounds = array<i64: 1, 512>}, {pipeline_mode = #tpu.pipeline_mode<synchronous>, transform_indices = @transform_5, window_bounds = array<i64: 512, 128>}, {pipeline_mode = #tpu.pipeline_mode<synchronous>, transform_indices = @transform_6, window_bounds = array<i64: 1, 128>}, {transform_indices = @transform_7, window_bounds = array<i64: 64, 128>}]} {
    %c0 = arith.constant 0 : index
    %c0_0 = arith.constant 0 : index
    %0 = vector.load %arg1[%c0, %c0_0] : memref<64x128xbf16, #tpu.memory_space<vmem>>, vector<64x128xbf16>
    %1 = arith.extf %0 : vector<64x128xbf16> to vector<64x128xf32>
    %c0_1 = arith.constant 0 : index
    %c0_2 = arith.constant 0 : index
    %2 = vector.load %arg2[%c0_1, %c0_2] : memref<1x128xbf16, #tpu.memory_space<vmem>>, vector<1x128xbf16>
    %3 = arith.extf %2 : vector<1x128xbf16> to vector<1x128xf32>
    %c0_3 = arith.constant 0 : index
    %c0_4 = arith.constant 0 : index
    %4 = vector.load %arg3[%c0_3, %c0_4] : memref<1x128xbf16, #tpu.memory_space<vmem>>, vector<1x128xbf16>
    %5 = arith.extf %4 : vector<1x128xbf16> to vector<1x128xf32>
    %cst = arith.constant dense<0.000000e+00> : vector<64xf32>
    %6 = vector.multi_reduction <add>, %1, %cst [1] : vector<64x128xf32> to vector<64xf32>
    %7 = vector.shape_cast %6 : vector<64xf32> to vector<64x1xf32>
    %cst_5 = arith.constant 1.280000e+02 : f32
    %8 = vector.broadcast %cst_5 : f32 to vector<64x1xf32>
    %9 = arith.divf %7, %8 : vector<64x1xf32>
    %10 = vector.broadcast %9 : vector<64x1xf32> to vector<64x128xf32>
    %11 = arith.subf %1, %10 : vector<64x128xf32>
    %12 = arith.mulf %11, %11 : vector<64x128xf32>
    %cst_6 = arith.constant dense<0.000000e+00> : vector<64xf32>
    %13 = vector.multi_reduction <add>, %12, %cst_6 [1] : vector<64x128xf32> to vector<64xf32>
    %14 = vector.shape_cast %13 : vector<64xf32> to vector<64x1xf32>
    %cst_7 = arith.constant 1.280000e+02 : f32
    %15 = vector.broadcast %cst_7 : f32 to vector<64x1xf32>
    %16 = arith.divf %14, %15 : vector<64x1xf32>
    %17 = vector.broadcast %9 : vector<64x1xf32> to vector<64x128xf32>
    %18 = arith.subf %1, %17 : vector<64x128xf32>
    %cst_8 = arith.constant 9.99999997E-7 : f32
    %19 = vector.broadcast %cst_8 : f32 to vector<64x1xf32>
    %20 = arith.addf %16, %19 : vector<64x1xf32>
    %21 = math.rsqrt %20 : vector<64x1xf32>
    %22 = vector.broadcast %21 : vector<64x1xf32> to vector<64x128xf32>
    %23 = arith.mulf %18, %22 : vector<64x128xf32>
    %24 = vector.broadcast %3 : vector<1x128xf32> to vector<64x128xf32>
    %25 = arith.mulf %23, %24 : vector<64x128xf32>
    %26 = vector.broadcast %5 : vector<1x128xf32> to vector<64x128xf32>
    %27 = arith.addf %25, %26 : vector<64x128xf32>
    %28 = arith.truncf %27 : vector<64x128xf32> to vector<64x128xbf16>
    %c0_9 = arith.constant 0 : index
    %c0_10 = arith.constant 0 : index
    %29 = vector.load %arg4[%c0_9, %c0_10] : memref<128x512xbf16, #tpu.memory_space<vmem>>, vector<128x512xbf16>
    %cst_11 = arith.constant dense<0.000000e+00> : vector<64x512xf32>
    %30 = tpu.matmul %28, %29, %cst_11 {dimension_numbers = #tpu.dot_dimension_numbers<[1], [0], [0], [1], [0, 0, 1, 1], [], []>} : vector<64x128xbf16>, vector<128x512xbf16>, vector<64x512xf32> -> vector<64x512xf32>
    %c0_12 = arith.constant 0 : index
    %c0_13 = arith.constant 0 : index
    %31 = vector.load %arg5[%c0_12, %c0_13] : memref<1x512xbf16, #tpu.memory_space<vmem>>, vector<1x512xbf16>
    %32 = arith.extf %31 : vector<1x512xbf16> to vector<1x512xf32>
    %33 = vector.broadcast %32 : vector<1x512xf32> to vector<64x512xf32>
    %34 = arith.addf %30, %33 : vector<64x512xf32>
    %35 = arith.mulf %34, %34 : vector<64x512xf32>
    %36 = arith.mulf %34, %35 : vector<64x512xf32>
    %cst_14 = arith.constant 4.471500e-02 : f32
    %37 = vector.broadcast %cst_14 : f32 to vector<64x512xf32>
    %38 = arith.mulf %37, %36 : vector<64x512xf32>
    %39 = arith.addf %34, %38 : vector<64x512xf32>
    %cst_15 = arith.constant 0.797884583 : f32
    %40 = vector.broadcast %cst_15 : f32 to vector<64x512xf32>
    %41 = arith.mulf %40, %39 : vector<64x512xf32>
    %42 = math.tanh %41 : vector<64x512xf32>
    %cst_16 = arith.constant 1.000000e+00 : f32
    %43 = vector.broadcast %cst_16 : f32 to vector<64x512xf32>
    %44 = arith.addf %43, %42 : vector<64x512xf32>
    %cst_17 = arith.constant 5.000000e-01 : f32
    %45 = vector.broadcast %cst_17 : f32 to vector<64x512xf32>
    %46 = arith.mulf %45, %44 : vector<64x512xf32>
    %47 = arith.mulf %34, %46 : vector<64x512xf32>
    %48 = arith.truncf %47 : vector<64x512xf32> to vector<64x512xbf16>
    %c0_18 = arith.constant 0 : index
    %c0_19 = arith.constant 0 : index
    %49 = vector.load %arg6[%c0_18, %c0_19] : memref<512x128xbf16, #tpu.memory_space<vmem>>, vector<512x128xbf16>
    %cst_20 = arith.constant dense<0.000000e+00> : vector<64x128xf32>
    %50 = tpu.matmul %48, %49, %cst_20 {dimension_numbers = #tpu.dot_dimension_numbers<[1], [0], [0], [1], [0, 0, 1, 1], [], []>} : vector<64x512xbf16>, vector<512x128xbf16>, vector<64x128xf32> -> vector<64x128xf32>
    %c0_21 = arith.constant 0 : index
    %c0_22 = arith.constant 0 : index
    %51 = vector.load %arg7[%c0_21, %c0_22] : memref<1x128xbf16, #tpu.memory_space<vmem>>, vector<1x128xbf16>
    %52 = arith.extf %51 : vector<1x128xbf16> to vector<1x128xf32>
    %53 = vector.broadcast %52 : vector<1x128xf32> to vector<64x128xf32>
    %54 = arith.addf %50, %53 : vector<64x128xf32>
    %55 = arith.addf %54, %1 : vector<64x128xf32>
    %56 = arith.truncf %55 : vector<64x128xf32> to vector<64x128xbf16>
    %c0_23 = arith.constant 0 : index
    %c0_24 = arith.constant 0 : index
    %57 = vector.load %arg8[%c0_23, %c0_24] : memref<64x128xbf16, #tpu.memory_space<vmem>>, vector<64x128xbf16>
    tpu.vector_store %arg8[%c0_23, %c0_24], %56 {strides = array<i32>} : memref<64x128xbf16, #tpu.memory_space<vmem>>, vector<64x128xbf16>,
    return
  }
  func.func @transform_0(%arg0: i32) -> (i32, i32) {
    %c0_i32 = arith.constant 0 : i32
    %c0_i32_0 = arith.constant 0 : i32
    return %arg0, %c0_i32 : i32, i32
  }
  func.func @transform_1(%arg0: i32) -> (i32, i32) {
    %c0_i32 = arith.constant 0 : i32
    %c0_i32_0 = arith.constant 0 : i32
    %c0_i32_1 = arith.constant 0 : i32
    return %c0_i32, %c0_i32_0 : i32, i32
  }
  func.func @transform_2(%arg0: i32) -> (i32, i32) {
    %c0_i32 = arith.constant 0 : i32
    %c0_i32_0 = arith.constant 0 : i32
    %c0_i32_1 = arith.constant 0 : i32
    return %c0_i32, %c0_i32_0 : i32, i32
  }
  func.func @transform_3(%arg0: i32) -> (i32, i32) {
    %c0_i32 = arith.constant 0 : i32
    %c0_i32_0 = arith.constant 0 : i32
    %c0_i32_1 = arith.constant 0 : i32
    return %c0_i32, %c0_i32_0 : i32, i32
  }
  func.func @transform_4(%arg0: i32) -> (i32, i32) {
    %c0_i32 = arith.constant 0 : i32
    %c0_i32_0 = arith.constant 0 : i32
    %c0_i32_1 = arith.constant 0 : i32
    return %c0_i32, %c0_i32_0 : i32, i32
  }
  func.func @transform_5(%arg0: i32) -> (i32, i32) {
    %c0_i32 = arith.constant 0 : i32
    %c0_i32_0 = arith.constant 0 : i32
    %c0_i32_1 = arith.constant 0 : i32
    return %c0_i32, %c0_i32_0 : i32, i32
  }
  func.func @transform_6(%arg0: i32) -> (i32, i32) {
    %c0_i32 = arith.constant 0 : i32
    %c0_i32_0 = arith.constant 0 : i32
    %c0_i32_1 = arith.constant 0 : i32
    return %c0_i32, %c0_i32_0 : i32, i32
  }
  func.func @transform_7(%arg0: i32) -> (i32, i32) {
    %c0_i32 = arith.constant 0 : i32
    %c0_i32_0 = arith.constant 0 : i32
    return %arg0, %c0_i32 : i32, i32
  }
}

module attributes {stable_mosaic.version = 11 : i64} {
  func.func @_ln_mlp_kernel(%arg0: i32, %arg1: memref<16x512xbf16, #tpu.memory_space<vmem>>, %arg2: memref<1x512xbf16, #tpu.memory_space<vmem>>, %arg3: memref<1x512xbf16, #tpu.memory_space<vmem>>, %arg4: memref<512x128xbf16, #tpu.memory_space<vmem>>, %arg5: memref<1x128xbf16, #tpu.memory_space<vmem>>, %arg6: memref<128x128xbf16, #tpu.memory_space<vmem>>, %arg7: memref<1x128xbf16, #tpu.memory_space<vmem>>, %arg8: memref<16x128xbf16, #tpu.memory_space<vmem>>) attributes {dimension_semantics = [#tpu.dimension_semantics<parallel>], iteration_bounds = array<i64: 1>, scalar_prefetch = 0 : i64, scratch_operands = 0 : i64, tpu.core_type = #tpu.core_type<tc>, window_params = [{transform_indices = @transform_0, window_bounds = array<i64: 16, 512>}, {pipeline_mode = #tpu.pipeline_mode<synchronous>, transform_indices = @transform_1, window_bounds = array<i64: 1, 512>}, {pipeline_mode = #tpu.pipeline_mode<synchronous>, transform_indices = @transform_2, window_bounds = array<i64: 1, 512>}, {pipeline_mode = #tpu.pipeline_mode<synchronous>, transform_indices = @transform_3, window_bounds = array<i64: 512, 128>}, {pipeline_mode = #tpu.pipeline_mode<synchronous>, transform_indices = @transform_4, window_bounds = array<i64: 1, 128>}, {pipeline_mode = #tpu.pipeline_mode<synchronous>, transform_indices = @transform_5, window_bounds = array<i64: 128, 128>}, {pipeline_mode = #tpu.pipeline_mode<synchronous>, transform_indices = @transform_6, window_bounds = array<i64: 1, 128>}, {transform_indices = @transform_7, window_bounds = array<i64: 16, 128>}]} {
    %c0 = arith.constant 0 : index
    %c0_0 = arith.constant 0 : index
    %0 = vector.load %arg1[%c0, %c0_0] : memref<16x512xbf16, #tpu.memory_space<vmem>>, vector<16x512xbf16>
    %1 = arith.extf %0 : vector<16x512xbf16> to vector<16x512xf32>
    %c0_1 = arith.constant 0 : index
    %c0_2 = arith.constant 0 : index
    %2 = vector.load %arg2[%c0_1, %c0_2] : memref<1x512xbf16, #tpu.memory_space<vmem>>, vector<1x512xbf16>
    %3 = arith.extf %2 : vector<1x512xbf16> to vector<1x512xf32>
    %c0_3 = arith.constant 0 : index
    %c0_4 = arith.constant 0 : index
    %4 = vector.load %arg3[%c0_3, %c0_4] : memref<1x512xbf16, #tpu.memory_space<vmem>>, vector<1x512xbf16>
    %5 = arith.extf %4 : vector<1x512xbf16> to vector<1x512xf32>
    %cst = arith.constant dense<0.000000e+00> : vector<16xf32>
    %6 = vector.multi_reduction <add>, %1, %cst [1] : vector<16x512xf32> to vector<16xf32>
    %7 = vector.shape_cast %6 : vector<16xf32> to vector<16x1xf32>
    %cst_5 = arith.constant 5.120000e+02 : f32
    %8 = vector.broadcast %cst_5 : f32 to vector<16x1xf32>
    %9 = arith.divf %7, %8 : vector<16x1xf32>
    %10 = vector.broadcast %9 : vector<16x1xf32> to vector<16x512xf32>
    %11 = arith.subf %1, %10 : vector<16x512xf32>
    %12 = arith.mulf %11, %11 : vector<16x512xf32>
    %cst_6 = arith.constant dense<0.000000e+00> : vector<16xf32>
    %13 = vector.multi_reduction <add>, %12, %cst_6 [1] : vector<16x512xf32> to vector<16xf32>
    %14 = vector.shape_cast %13 : vector<16xf32> to vector<16x1xf32>
    %cst_7 = arith.constant 5.120000e+02 : f32
    %15 = vector.broadcast %cst_7 : f32 to vector<16x1xf32>
    %16 = arith.divf %14, %15 : vector<16x1xf32>
    %17 = vector.broadcast %9 : vector<16x1xf32> to vector<16x512xf32>
    %18 = arith.subf %1, %17 : vector<16x512xf32>
    %cst_8 = arith.constant 9.99999997E-7 : f32
    %19 = vector.broadcast %cst_8 : f32 to vector<16x1xf32>
    %20 = arith.addf %16, %19 : vector<16x1xf32>
    %21 = math.rsqrt %20 : vector<16x1xf32>
    %22 = vector.broadcast %21 : vector<16x1xf32> to vector<16x512xf32>
    %23 = arith.mulf %18, %22 : vector<16x512xf32>
    %24 = vector.broadcast %3 : vector<1x512xf32> to vector<16x512xf32>
    %25 = arith.mulf %23, %24 : vector<16x512xf32>
    %26 = vector.broadcast %5 : vector<1x512xf32> to vector<16x512xf32>
    %27 = arith.addf %25, %26 : vector<16x512xf32>
    %28 = arith.truncf %27 : vector<16x512xf32> to vector<16x512xbf16>
    %c0_9 = arith.constant 0 : index
    %c0_10 = arith.constant 0 : index
    %29 = vector.load %arg4[%c0_9, %c0_10] : memref<512x128xbf16, #tpu.memory_space<vmem>>, vector<512x128xbf16>
    %cst_11 = arith.constant dense<0.000000e+00> : vector<16x128xf32>
    %30 = tpu.matmul %28, %29, %cst_11 {dimension_numbers = #tpu.dot_dimension_numbers<[1], [0], [0], [1], [0, 0, 1, 1], [], []>} : vector<16x512xbf16>, vector<512x128xbf16>, vector<16x128xf32> -> vector<16x128xf32>
    %c0_12 = arith.constant 0 : index
    %c0_13 = arith.constant 0 : index
    %31 = vector.load %arg5[%c0_12, %c0_13] : memref<1x128xbf16, #tpu.memory_space<vmem>>, vector<1x128xbf16>
    %32 = arith.extf %31 : vector<1x128xbf16> to vector<1x128xf32>
    %33 = vector.broadcast %32 : vector<1x128xf32> to vector<16x128xf32>
    %34 = arith.addf %30, %33 : vector<16x128xf32>
    %35 = arith.mulf %34, %34 : vector<16x128xf32>
    %36 = arith.mulf %34, %35 : vector<16x128xf32>
    %cst_14 = arith.constant 4.471500e-02 : f32
    %37 = vector.broadcast %cst_14 : f32 to vector<16x128xf32>
    %38 = arith.mulf %37, %36 : vector<16x128xf32>
    %39 = arith.addf %34, %38 : vector<16x128xf32>
    %cst_15 = arith.constant 0.797884583 : f32
    %40 = vector.broadcast %cst_15 : f32 to vector<16x128xf32>
    %41 = arith.mulf %40, %39 : vector<16x128xf32>
    %42 = math.tanh %41 : vector<16x128xf32>
    %cst_16 = arith.constant 1.000000e+00 : f32
    %43 = vector.broadcast %cst_16 : f32 to vector<16x128xf32>
    %44 = arith.addf %43, %42 : vector<16x128xf32>
    %cst_17 = arith.constant 5.000000e-01 : f32
    %45 = vector.broadcast %cst_17 : f32 to vector<16x128xf32>
    %46 = arith.mulf %45, %44 : vector<16x128xf32>
    %47 = arith.mulf %34, %46 : vector<16x128xf32>
    %48 = arith.truncf %47 : vector<16x128xf32> to vector<16x128xbf16>
    %c0_18 = arith.constant 0 : index
    %c0_19 = arith.constant 0 : index
    %49 = vector.load %arg6[%c0_18, %c0_19] : memref<128x128xbf16, #tpu.memory_space<vmem>>, vector<128x128xbf16>
    %cst_20 = arith.constant dense<0.000000e+00> : vector<16x128xf32>
    %50 = tpu.matmul %48, %49, %cst_20 {dimension_numbers = #tpu.dot_dimension_numbers<[1], [0], [0], [1], [0, 0, 1, 1], [], []>} : vector<16x128xbf16>, vector<128x128xbf16>, vector<16x128xf32> -> vector<16x128xf32>
    %c0_21 = arith.constant 0 : index
    %c0_22 = arith.constant 0 : index
    %51 = vector.load %arg7[%c0_21, %c0_22] : memref<1x128xbf16, #tpu.memory_space<vmem>>, vector<1x128xbf16>
    %52 = arith.extf %51 : vector<1x128xbf16> to vector<1x128xf32>
    %53 = vector.broadcast %52 : vector<1x128xf32> to vector<16x128xf32>
    %54 = arith.addf %50, %53 : vector<16x128xf32>
    %55 = arith.truncf %54 : vector<16x128xf32> to vector<16x128xbf16>
    %c0_23 = arith.constant 0 : index
    %c0_24 = arith.constant 0 : index
    %56 = vector.load %arg8[%c0_23, %c0_24] : memref<16x128xbf16, #tpu.memory_space<vmem>>, vector<16x128xbf16>
    tpu.vector_store %arg8[%c0_23, %c0_24], %55 {strides = array<i32>} : memref<16x128xbf16, #tpu.memory_space<vmem>>, vector<16x128xbf16>,
    return
  }
  func.func @transform_0(%arg0: i32) -> (i32, i32) {
    %c0_i32 = arith.constant 0 : i32
    %c0_i32_0 = arith.constant 0 : i32
    return %arg0, %c0_i32 : i32, i32
  }
  func.func @transform_1(%arg0: i32) -> (i32, i32) {
    %c0_i32 = arith.constant 0 : i32
    %c0_i32_0 = arith.constant 0 : i32
    %c0_i32_1 = arith.constant 0 : i32
    return %c0_i32, %c0_i32_0 : i32, i32
  }
  func.func @transform_2(%arg0: i32) -> (i32, i32) {
    %c0_i32 = arith.constant 0 : i32
    %c0_i32_0 = arith.constant 0 : i32
    %c0_i32_1 = arith.constant 0 : i32
    return %c0_i32, %c0_i32_0 : i32, i32
  }
  func.func @transform_3(%arg0: i32) -> (i32, i32) {
    %c0_i32 = arith.constant 0 : i32
    %c0_i32_0 = arith.constant 0 : i32
    %c0_i32_1 = arith.constant 0 : i32
    return %c0_i32, %c0_i32_0 : i32, i32
  }
  func.func @transform_4(%arg0: i32) -> (i32, i32) {
    %c0_i32 = arith.constant 0 : i32
    %c0_i32_0 = arith.constant 0 : i32
    %c0_i32_1 = arith.constant 0 : i32
    return %c0_i32, %c0_i32_0 : i32, i32
  }
  func.func @transform_5(%arg0: i32) -> (i32, i32) {
    %c0_i32 = arith.constant 0 : i32
    %c0_i32_0 = arith.constant 0 : i32
    %c0_i32_1 = arith.constant 0 : i32
    return %c0_i32, %c0_i32_0 : i32, i32
  }
  func.func @transform_6(%arg0: i32) -> (i32, i32) {
    %c0_i32 = arith.constant 0 : i32
    %c0_i32_0 = arith.constant 0 : i32
    %c0_i32_1 = arith.constant 0 : i32
    return %c0_i32, %c0_i32_0 : i32, i32
  }
  func.func @transform_7(%arg0: i32) -> (i32, i32) {
    %c0_i32 = arith.constant 0 : i32
    %c0_i32_0 = arith.constant 0 : i32
    return %arg0, %c0_i32 : i32, i32
  }
}

module attributes {stable_mosaic.version = 11 : i64} {
  func.func @_ln_linear_kernel(%arg0: i32, %arg1: memref<24x128xbf16, #tpu.memory_space<vmem>>, %arg2: memref<1x128xbf16, #tpu.memory_space<vmem>>, %arg3: memref<1x128xbf16, #tpu.memory_space<vmem>>, %arg4: memref<128x384xbf16, #tpu.memory_space<vmem>>, %arg5: memref<1x384xbf16, #tpu.memory_space<vmem>>, %arg6: memref<24x384xbf16, #tpu.memory_space<vmem>>) attributes {dimension_semantics = [#tpu.dimension_semantics<parallel>], iteration_bounds = array<i64: 1>, scalar_prefetch = 0 : i64, scratch_operands = 0 : i64, tpu.core_type = #tpu.core_type<tc>, window_params = [{transform_indices = @transform_0, window_bounds = array<i64: 24, 128>}, {pipeline_mode = #tpu.pipeline_mode<synchronous>, transform_indices = @transform_1, window_bounds = array<i64: 1, 128>}, {pipeline_mode = #tpu.pipeline_mode<synchronous>, transform_indices = @transform_2, window_bounds = array<i64: 1, 128>}, {pipeline_mode = #tpu.pipeline_mode<synchronous>, transform_indices = @transform_3, window_bounds = array<i64: 128, 384>}, {pipeline_mode = #tpu.pipeline_mode<synchronous>, transform_indices = @transform_4, window_bounds = array<i64: 1, 384>}, {transform_indices = @transform_5, window_bounds = array<i64: 24, 384>}]} {
    %c0 = arith.constant 0 : index
    %c0_0 = arith.constant 0 : index
    %0 = vector.load %arg1[%c0, %c0_0] : memref<24x128xbf16, #tpu.memory_space<vmem>>, vector<24x128xbf16>
    %1 = arith.extf %0 : vector<24x128xbf16> to vector<24x128xf32>
    %c0_1 = arith.constant 0 : index
    %c0_2 = arith.constant 0 : index
    %2 = vector.load %arg2[%c0_1, %c0_2] : memref<1x128xbf16, #tpu.memory_space<vmem>>, vector<1x128xbf16>
    %3 = arith.extf %2 : vector<1x128xbf16> to vector<1x128xf32>
    %c0_3 = arith.constant 0 : index
    %c0_4 = arith.constant 0 : index
    %4 = vector.load %arg3[%c0_3, %c0_4] : memref<1x128xbf16, #tpu.memory_space<vmem>>, vector<1x128xbf16>
    %5 = arith.extf %4 : vector<1x128xbf16> to vector<1x128xf32>
    %cst = arith.constant dense<0.000000e+00> : vector<24xf32>
    %6 = vector.multi_reduction <add>, %1, %cst [1] : vector<24x128xf32> to vector<24xf32>
    %7 = vector.shape_cast %6 : vector<24xf32> to vector<24x1xf32>
    %cst_5 = arith.constant 1.280000e+02 : f32
    %8 = vector.broadcast %cst_5 : f32 to vector<24x1xf32>
    %9 = arith.divf %7, %8 : vector<24x1xf32>
    %10 = vector.broadcast %9 : vector<24x1xf32> to vector<24x128xf32>
    %11 = arith.subf %1, %10 : vector<24x128xf32>
    %12 = arith.mulf %11, %11 : vector<24x128xf32>
    %cst_6 = arith.constant dense<0.000000e+00> : vector<24xf32>
    %13 = vector.multi_reduction <add>, %12, %cst_6 [1] : vector<24x128xf32> to vector<24xf32>
    %14 = vector.shape_cast %13 : vector<24xf32> to vector<24x1xf32>
    %cst_7 = arith.constant 1.280000e+02 : f32
    %15 = vector.broadcast %cst_7 : f32 to vector<24x1xf32>
    %16 = arith.divf %14, %15 : vector<24x1xf32>
    %17 = vector.broadcast %9 : vector<24x1xf32> to vector<24x128xf32>
    %18 = arith.subf %1, %17 : vector<24x128xf32>
    %cst_8 = arith.constant 9.99999997E-7 : f32
    %19 = vector.broadcast %cst_8 : f32 to vector<24x1xf32>
    %20 = arith.addf %16, %19 : vector<24x1xf32>
    %21 = math.rsqrt %20 : vector<24x1xf32>
    %22 = vector.broadcast %21 : vector<24x1xf32> to vector<24x128xf32>
    %23 = arith.mulf %18, %22 : vector<24x128xf32>
    %24 = vector.broadcast %3 : vector<1x128xf32> to vector<24x128xf32>
    %25 = arith.mulf %23, %24 : vector<24x128xf32>
    %26 = vector.broadcast %5 : vector<1x128xf32> to vector<24x128xf32>
    %27 = arith.addf %25, %26 : vector<24x128xf32>
    %28 = arith.truncf %27 : vector<24x128xf32> to vector<24x128xbf16>
    %c0_9 = arith.constant 0 : index
    %c0_10 = arith.constant 0 : index
    %29 = vector.load %arg4[%c0_9, %c0_10] : memref<128x384xbf16, #tpu.memory_space<vmem>>, vector<128x384xbf16>
    %cst_11 = arith.constant dense<0.000000e+00> : vector<24x384xf32>
    %30 = tpu.matmul %28, %29, %cst_11 {dimension_numbers = #tpu.dot_dimension_numbers<[1], [0], [0], [1], [0, 0, 1, 1], [], []>} : vector<24x128xbf16>, vector<128x384xbf16>, vector<24x384xf32> -> vector<24x384xf32>
    %c0_12 = arith.constant 0 : index
    %c0_13 = arith.constant 0 : index
    %31 = vector.load %arg5[%c0_12, %c0_13] : memref<1x384xbf16, #tpu.memory_space<vmem>>, vector<1x384xbf16>
    %32 = arith.extf %31 : vector<1x384xbf16> to vector<1x384xf32>
    %33 = vector.broadcast %32 : vector<1x384xf32> to vector<24x384xf32>
    %34 = arith.addf %30, %33 : vector<24x384xf32>
    %35 = arith.truncf %34 : vector<24x384xf32> to vector<24x384xbf16>
    %c0_14 = arith.constant 0 : index
    %c0_15 = arith.constant 0 : index
    %36 = vector.load %arg6[%c0_14, %c0_15] : memref<24x384xbf16, #tpu.memory_space<vmem>>, vector<24x384xbf16>
    tpu.vector_store %arg6[%c0_14, %c0_15], %35 {strides = array<i32>} : memref<24x384xbf16, #tpu.memory_space<vmem>>, vector<24x384xbf16>,
    return
  }
  func.func @transform_0(%arg0: i32) -> (i32, i32) {
    %c0_i32 = arith.constant 0 : i32
    %c0_i32_0 = arith.constant 0 : i32
    return %arg0, %c0_i32 : i32, i32
  }
  func.func @transform_1(%arg0: i32) -> (i32, i32) {
    %c0_i32 = arith.constant 0 : i32
    %c0_i32_0 = arith.constant 0 : i32
    %c0_i32_1 = arith.constant 0 : i32
    return %c0_i32, %c0_i32_0 : i32, i32
  }
  func.func @transform_2(%arg0: i32) -> (i32, i32) {
    %c0_i32 = arith.constant 0 : i32
    %c0_i32_0 = arith.constant 0 : i32
    %c0_i32_1 = arith.constant 0 : i32
    return %c0_i32, %c0_i32_0 : i32, i32
  }
  func.func @transform_3(%arg0: i32) -> (i32, i32) {
    %c0_i32 = arith.constant 0 : i32
    %c0_i32_0 = arith.constant 0 : i32
    %c0_i32_1 = arith.constant 0 : i32
    return %c0_i32, %c0_i32_0 : i32, i32
  }
  func.func @transform_4(%arg0: i32) -> (i32, i32) {
    %c0_i32 = arith.constant 0 : i32
    %c0_i32_0 = arith.constant 0 : i32
    %c0_i32_1 = arith.constant 0 : i32
    return %c0_i32, %c0_i32_0 : i32, i32
  }
  func.func @transform_5(%arg0: i32) -> (i32, i32) {
    %c0_i32 = arith.constant 0 : i32
    %c0_i32_0 = arith.constant 0 : i32
    return %arg0, %c0_i32 : i32, i32
  }
}

module attributes {stable_mosaic.version = 11 : i64} {
  func.func @_attention_kernel(%arg0: i32, %arg1: memref<1x24x384xbf16, #tpu.memory_space<vmem>>, %arg2: memref<1x24x128xbf16, #tpu.memory_space<vmem>>) attributes {dimension_semantics = [#tpu.dimension_semantics<parallel>], iteration_bounds = array<i64: 1>, scalar_prefetch = 0 : i64, scratch_operands = 0 : i64, tpu.core_type = #tpu.core_type<tc>, window_params = [{transform_indices = @transform_0, window_bounds = array<i64: 1, 24, 384>}, {transform_indices = @transform_1, window_bounds = array<i64: 1, 24, 128>}]} {
    %c0 = arith.constant 0 : index
    %c0_0 = arith.constant 0 : index
    %c0_1 = arith.constant 0 : index
    %0 = vector.load %arg1[%c0, %c0_0, %c0_1] : memref<1x24x384xbf16, #tpu.memory_space<vmem>>, vector<1x24x384xbf16>
    %1 = vector.shape_cast %0 : vector<1x24x384xbf16> to vector<24x384xbf16>
    %2 = vector.extract_strided_slice %1 {offsets = [0, 0], sizes = [24, 32], strides = [1, 1]} : vector<24x384xbf16> to vector<24x32xbf16>
    %3 = vector.extract_strided_slice %1 {offsets = [0, 128], sizes = [24, 32], strides = [1, 1]} : vector<24x384xbf16> to vector<24x32xbf16>
    %4 = vector.extract_strided_slice %1 {offsets = [0, 256], sizes = [24, 32], strides = [1, 1]} : vector<24x384xbf16> to vector<24x32xbf16>
    %cst = arith.constant dense<0.000000e+00> : vector<24x24xf32>
    %5 = tpu.matmul %2, %3, %cst {dimension_numbers = #tpu.dot_dimension_numbers<[1], [1], [0], [0], [0, 0, 1, 0], [], []>} : vector<24x32xbf16>, vector<24x32xbf16>, vector<24x24xf32> -> vector<24x24xf32>
    %cst_2 = arith.constant 0.176776692 : f32
    %6 = vector.broadcast %cst_2 : f32 to vector<24x24xf32>
    %7 = arith.mulf %5, %6 : vector<24x24xf32>
    %8 = tpu.iota {dimensions = array<i32: 0>} : vector<24x24xi32>
    %9 = tpu.iota {dimensions = array<i32: 1>} : vector<24x24xi32>
    %10 = arith.cmpi sge, %8, %9 : vector<24x24xi32>
    %cst_3 = arith.constant -1.000000e+30 : f32
    %11 = vector.broadcast %cst_3 : f32 to vector<24x24xf32>
    %12 = arith.select %10, %7, %11 : vector<24x24xi1>, vector<24x24xf32>
    %cst_4 = arith.constant dense<0xFF800000> : vector<24xf32>
    %13 = vector.multi_reduction <maximumf>, %12, %cst_4 [1] : vector<24x24xf32> to vector<24xf32>
    %14 = vector.shape_cast %13 : vector<24xf32> to vector<24x1xf32>
    %15 = vector.broadcast %14 : vector<24x1xf32> to vector<24x24xf32>
    %16 = arith.subf %12, %15 : vector<24x24xf32>
    %17 = math.exp %16 : vector<24x24xf32>
    %cst_5 = arith.constant dense<0.000000e+00> : vector<24xf32>
    %18 = vector.multi_reduction <add>, %17, %cst_5 [1] : vector<24x24xf32> to vector<24xf32>
    %19 = vector.shape_cast %18 : vector<24xf32> to vector<24x1xf32>
    %20 = tpu.reciprocal %19 {approx = true} : vector<24x1xf32> -> vector<24x1xf32>
    %21 = vector.broadcast %20 : vector<24x1xf32> to vector<24x24xf32>
    %22 = arith.mulf %17, %21 : vector<24x24xf32>
    %23 = arith.truncf %22 : vector<24x24xf32> to vector<24x24xbf16>
    %cst_6 = arith.constant dense<0.000000e+00> : vector<24x32xf32>
    %24 = tpu.matmul %23, %4, %cst_6 {dimension_numbers = #tpu.dot_dimension_numbers<[1], [0], [0], [1], [0, 0, 1, 1], [], []>} : vector<24x24xbf16>, vector<24x32xbf16>, vector<24x32xf32> -> vector<24x32xf32>
    %25 = vector.extract_strided_slice %1 {offsets = [0, 32], sizes = [24, 32], strides = [1, 1]} : vector<24x384xbf16> to vector<24x32xbf16>
    %26 = vector.extract_strided_slice %1 {offsets = [0, 160], sizes = [24, 32], strides = [1, 1]} : vector<24x384xbf16> to vector<24x32xbf16>
    %27 = vector.extract_strided_slice %1 {offsets = [0, 288], sizes = [24, 32], strides = [1, 1]} : vector<24x384xbf16> to vector<24x32xbf16>
    %cst_7 = arith.constant dense<0.000000e+00> : vector<24x24xf32>
    %28 = tpu.matmul %25, %26, %cst_7 {dimension_numbers = #tpu.dot_dimension_numbers<[1], [1], [0], [0], [0, 0, 1, 0], [], []>} : vector<24x32xbf16>, vector<24x32xbf16>, vector<24x24xf32> -> vector<24x24xf32>
    %cst_8 = arith.constant 0.176776692 : f32
    %29 = vector.broadcast %cst_8 : f32 to vector<24x24xf32>
    %30 = arith.mulf %28, %29 : vector<24x24xf32>
    %31 = tpu.iota {dimensions = array<i32: 0>} : vector<24x24xi32>
    %32 = tpu.iota {dimensions = array<i32: 1>} : vector<24x24xi32>
    %33 = arith.cmpi sge, %31, %32 : vector<24x24xi32>
    %cst_9 = arith.constant -1.000000e+30 : f32
    %34 = vector.broadcast %cst_9 : f32 to vector<24x24xf32>
    %35 = arith.select %33, %30, %34 : vector<24x24xi1>, vector<24x24xf32>
    %cst_10 = arith.constant dense<0xFF800000> : vector<24xf32>
    %36 = vector.multi_reduction <maximumf>, %35, %cst_10 [1] : vector<24x24xf32> to vector<24xf32>
    %37 = vector.shape_cast %36 : vector<24xf32> to vector<24x1xf32>
    %38 = vector.broadcast %37 : vector<24x1xf32> to vector<24x24xf32>
    %39 = arith.subf %35, %38 : vector<24x24xf32>
    %40 = math.exp %39 : vector<24x24xf32>
    %cst_11 = arith.constant dense<0.000000e+00> : vector<24xf32>
    %41 = vector.multi_reduction <add>, %40, %cst_11 [1] : vector<24x24xf32> to vector<24xf32>
    %42 = vector.shape_cast %41 : vector<24xf32> to vector<24x1xf32>
    %43 = tpu.reciprocal %42 {approx = true} : vector<24x1xf32> -> vector<24x1xf32>
    %44 = vector.broadcast %43 : vector<24x1xf32> to vector<24x24xf32>
    %45 = arith.mulf %40, %44 : vector<24x24xf32>
    %46 = arith.truncf %45 : vector<24x24xf32> to vector<24x24xbf16>
    %cst_12 = arith.constant dense<0.000000e+00> : vector<24x32xf32>
    %47 = tpu.matmul %46, %27, %cst_12 {dimension_numbers = #tpu.dot_dimension_numbers<[1], [0], [0], [1], [0, 0, 1, 1], [], []>} : vector<24x24xbf16>, vector<24x32xbf16>, vector<24x32xf32> -> vector<24x32xf32>
    %48 = vector.extract_strided_slice %1 {offsets = [0, 64], sizes = [24, 32], strides = [1, 1]} : vector<24x384xbf16> to vector<24x32xbf16>
    %49 = vector.extract_strided_slice %1 {offsets = [0, 192], sizes = [24, 32], strides = [1, 1]} : vector<24x384xbf16> to vector<24x32xbf16>
    %50 = vector.extract_strided_slice %1 {offsets = [0, 320], sizes = [24, 32], strides = [1, 1]} : vector<24x384xbf16> to vector<24x32xbf16>
    %cst_13 = arith.constant dense<0.000000e+00> : vector<24x24xf32>
    %51 = tpu.matmul %48, %49, %cst_13 {dimension_numbers = #tpu.dot_dimension_numbers<[1], [1], [0], [0], [0, 0, 1, 0], [], []>} : vector<24x32xbf16>, vector<24x32xbf16>, vector<24x24xf32> -> vector<24x24xf32>
    %cst_14 = arith.constant 0.176776692 : f32
    %52 = vector.broadcast %cst_14 : f32 to vector<24x24xf32>
    %53 = arith.mulf %51, %52 : vector<24x24xf32>
    %54 = tpu.iota {dimensions = array<i32: 0>} : vector<24x24xi32>
    %55 = tpu.iota {dimensions = array<i32: 1>} : vector<24x24xi32>
    %56 = arith.cmpi sge, %54, %55 : vector<24x24xi32>
    %cst_15 = arith.constant -1.000000e+30 : f32
    %57 = vector.broadcast %cst_15 : f32 to vector<24x24xf32>
    %58 = arith.select %56, %53, %57 : vector<24x24xi1>, vector<24x24xf32>
    %cst_16 = arith.constant dense<0xFF800000> : vector<24xf32>
    %59 = vector.multi_reduction <maximumf>, %58, %cst_16 [1] : vector<24x24xf32> to vector<24xf32>
    %60 = vector.shape_cast %59 : vector<24xf32> to vector<24x1xf32>
    %61 = vector.broadcast %60 : vector<24x1xf32> to vector<24x24xf32>
    %62 = arith.subf %58, %61 : vector<24x24xf32>
    %63 = math.exp %62 : vector<24x24xf32>
    %cst_17 = arith.constant dense<0.000000e+00> : vector<24xf32>
    %64 = vector.multi_reduction <add>, %63, %cst_17 [1] : vector<24x24xf32> to vector<24xf32>
    %65 = vector.shape_cast %64 : vector<24xf32> to vector<24x1xf32>
    %66 = tpu.reciprocal %65 {approx = true} : vector<24x1xf32> -> vector<24x1xf32>
    %67 = vector.broadcast %66 : vector<24x1xf32> to vector<24x24xf32>
    %68 = arith.mulf %63, %67 : vector<24x24xf32>
    %69 = arith.truncf %68 : vector<24x24xf32> to vector<24x24xbf16>
    %cst_18 = arith.constant dense<0.000000e+00> : vector<24x32xf32>
    %70 = tpu.matmul %69, %50, %cst_18 {dimension_numbers = #tpu.dot_dimension_numbers<[1], [0], [0], [1], [0, 0, 1, 1], [], []>} : vector<24x24xbf16>, vector<24x32xbf16>, vector<24x32xf32> -> vector<24x32xf32>
    %71 = vector.extract_strided_slice %1 {offsets = [0, 96], sizes = [24, 32], strides = [1, 1]} : vector<24x384xbf16> to vector<24x32xbf16>
    %72 = vector.extract_strided_slice %1 {offsets = [0, 224], sizes = [24, 32], strides = [1, 1]} : vector<24x384xbf16> to vector<24x32xbf16>
    %73 = vector.extract_strided_slice %1 {offsets = [0, 352], sizes = [24, 32], strides = [1, 1]} : vector<24x384xbf16> to vector<24x32xbf16>
    %cst_19 = arith.constant dense<0.000000e+00> : vector<24x24xf32>
    %74 = tpu.matmul %71, %72, %cst_19 {dimension_numbers = #tpu.dot_dimension_numbers<[1], [1], [0], [0], [0, 0, 1, 0], [], []>} : vector<24x32xbf16>, vector<24x32xbf16>, vector<24x24xf32> -> vector<24x24xf32>
    %cst_20 = arith.constant 0.176776692 : f32
    %75 = vector.broadcast %cst_20 : f32 to vector<24x24xf32>
    %76 = arith.mulf %74, %75 : vector<24x24xf32>
    %77 = tpu.iota {dimensions = array<i32: 0>} : vector<24x24xi32>
    %78 = tpu.iota {dimensions = array<i32: 1>} : vector<24x24xi32>
    %79 = arith.cmpi sge, %77, %78 : vector<24x24xi32>
    %cst_21 = arith.constant -1.000000e+30 : f32
    %80 = vector.broadcast %cst_21 : f32 to vector<24x24xf32>
    %81 = arith.select %79, %76, %80 : vector<24x24xi1>, vector<24x24xf32>
    %cst_22 = arith.constant dense<0xFF800000> : vector<24xf32>
    %82 = vector.multi_reduction <maximumf>, %81, %cst_22 [1] : vector<24x24xf32> to vector<24xf32>
    %83 = vector.shape_cast %82 : vector<24xf32> to vector<24x1xf32>
    %84 = vector.broadcast %83 : vector<24x1xf32> to vector<24x24xf32>
    %85 = arith.subf %81, %84 : vector<24x24xf32>
    %86 = math.exp %85 : vector<24x24xf32>
    %cst_23 = arith.constant dense<0.000000e+00> : vector<24xf32>
    %87 = vector.multi_reduction <add>, %86, %cst_23 [1] : vector<24x24xf32> to vector<24xf32>
    %88 = vector.shape_cast %87 : vector<24xf32> to vector<24x1xf32>
    %89 = tpu.reciprocal %88 {approx = true} : vector<24x1xf32> -> vector<24x1xf32>
    %90 = vector.broadcast %89 : vector<24x1xf32> to vector<24x24xf32>
    %91 = arith.mulf %86, %90 : vector<24x24xf32>
    %92 = arith.truncf %91 : vector<24x24xf32> to vector<24x24xbf16>
    %cst_24 = arith.constant dense<0.000000e+00> : vector<24x32xf32>
    %93 = tpu.matmul %92, %73, %cst_24 {dimension_numbers = #tpu.dot_dimension_numbers<[1], [0], [0], [1], [0, 0, 1, 1], [], []>} : vector<24x24xbf16>, vector<24x32xbf16>, vector<24x32xf32> -> vector<24x32xf32>
    %94 = tpu.concatenate %24, %47, %70, %93 in 1 : vector<24x32xf32>, vector<24x32xf32>, vector<24x32xf32>, vector<24x32xf32> -> vector<24x128xf32>
    %95 = arith.truncf %94 : vector<24x128xf32> to vector<24x128xbf16>
    %c0_25 = arith.constant 0 : index
    %c0_26 = arith.constant 0 : index
    %c0_27 = arith.constant 0 : index
    %96 = vector.load %arg2[%c0_25, %c0_26, %c0_27] : memref<1x24x128xbf16, #tpu.memory_space<vmem>>, vector<1x24x128xbf16>
    %97 = vector.shape_cast %96 : vector<1x24x128xbf16> to vector<24x128xbf16>
    %98 = vector.shape_cast %95 : vector<24x128xbf16> to vector<1x24x128xbf16>
    tpu.vector_store %arg2[%c0_25, %c0_26, %c0_27], %98 {strides = array<i32>} : memref<1x24x128xbf16, #tpu.memory_space<vmem>>, vector<1x24x128xbf16>,
    return
  }
  func.func @transform_0(%arg0: i32) -> (i32, i32, i32) {
    %c0_i32 = arith.constant 0 : i32
    %c0_i32_0 = arith.constant 0 : i32
    %c0_i32_1 = arith.constant 0 : i32
    return %arg0, %c0_i32, %c0_i32_0 : i32, i32, i32
  }
  func.func @transform_1(%arg0: i32) -> (i32, i32, i32) {
    %c0_i32 = arith.constant 0 : i32
    %c0_i32_0 = arith.constant 0 : i32
    %c0_i32_1 = arith.constant 0 : i32
    return %arg0, %c0_i32, %c0_i32_0 : i32, i32, i32
  }
}

module attributes {stable_mosaic.version = 11 : i64} {
  func.func @_linear_resid_kernel(%arg0: i32, %arg1: memref<24x128xbf16, #tpu.memory_space<vmem>>, %arg2: memref<128x128xbf16, #tpu.memory_space<vmem>>, %arg3: memref<1x128xbf16, #tpu.memory_space<vmem>>, %arg4: memref<24x128xbf16, #tpu.memory_space<vmem>>, %arg5: memref<24x128xbf16, #tpu.memory_space<vmem>>) attributes {dimension_semantics = [#tpu.dimension_semantics<parallel>], iteration_bounds = array<i64: 1>, scalar_prefetch = 0 : i64, scratch_operands = 0 : i64, tpu.core_type = #tpu.core_type<tc>, window_params = [{transform_indices = @transform_0, window_bounds = array<i64: 24, 128>}, {pipeline_mode = #tpu.pipeline_mode<synchronous>, transform_indices = @transform_1, window_bounds = array<i64: 128, 128>}, {pipeline_mode = #tpu.pipeline_mode<synchronous>, transform_indices = @transform_2, window_bounds = array<i64: 1, 128>}, {transform_indices = @transform_3, window_bounds = array<i64: 24, 128>}, {transform_indices = @transform_4, window_bounds = array<i64: 24, 128>}]} {
    %c0 = arith.constant 0 : index
    %c0_0 = arith.constant 0 : index
    %0 = vector.load %arg1[%c0, %c0_0] : memref<24x128xbf16, #tpu.memory_space<vmem>>, vector<24x128xbf16>
    %c0_1 = arith.constant 0 : index
    %c0_2 = arith.constant 0 : index
    %1 = vector.load %arg2[%c0_1, %c0_2] : memref<128x128xbf16, #tpu.memory_space<vmem>>, vector<128x128xbf16>
    %cst = arith.constant dense<0.000000e+00> : vector<24x128xf32>
    %2 = tpu.matmul %0, %1, %cst {dimension_numbers = #tpu.dot_dimension_numbers<[1], [0], [0], [1], [0, 0, 1, 1], [], []>} : vector<24x128xbf16>, vector<128x128xbf16>, vector<24x128xf32> -> vector<24x128xf32>
    %c0_3 = arith.constant 0 : index
    %c0_4 = arith.constant 0 : index
    %3 = vector.load %arg3[%c0_3, %c0_4] : memref<1x128xbf16, #tpu.memory_space<vmem>>, vector<1x128xbf16>
    %4 = arith.extf %3 : vector<1x128xbf16> to vector<1x128xf32>
    %5 = vector.broadcast %4 : vector<1x128xf32> to vector<24x128xf32>
    %6 = arith.addf %2, %5 : vector<24x128xf32>
    %c0_5 = arith.constant 0 : index
    %c0_6 = arith.constant 0 : index
    %7 = vector.load %arg4[%c0_5, %c0_6] : memref<24x128xbf16, #tpu.memory_space<vmem>>, vector<24x128xbf16>
    %8 = arith.extf %7 : vector<24x128xbf16> to vector<24x128xf32>
    %9 = arith.addf %6, %8 : vector<24x128xf32>
    %10 = arith.truncf %9 : vector<24x128xf32> to vector<24x128xbf16>
    %c0_7 = arith.constant 0 : index
    %c0_8 = arith.constant 0 : index
    %11 = vector.load %arg5[%c0_7, %c0_8] : memref<24x128xbf16, #tpu.memory_space<vmem>>, vector<24x128xbf16>
    tpu.vector_store %arg5[%c0_7, %c0_8], %10 {strides = array<i32>} : memref<24x128xbf16, #tpu.memory_space<vmem>>, vector<24x128xbf16>,
    return
  }
  func.func @transform_0(%arg0: i32) -> (i32, i32) {
    %c0_i32 = arith.constant 0 : i32
    %c0_i32_0 = arith.constant 0 : i32
    return %arg0, %c0_i32 : i32, i32
  }
  func.func @transform_1(%arg0: i32) -> (i32, i32) {
    %c0_i32 = arith.constant 0 : i32
    %c0_i32_0 = arith.constant 0 : i32
    %c0_i32_1 = arith.constant 0 : i32
    return %c0_i32, %c0_i32_0 : i32, i32
  }
  func.func @transform_2(%arg0: i32) -> (i32, i32) {
    %c0_i32 = arith.constant 0 : i32
    %c0_i32_0 = arith.constant 0 : i32
    %c0_i32_1 = arith.constant 0 : i32
    return %c0_i32, %c0_i32_0 : i32, i32
  }
  func.func @transform_3(%arg0: i32) -> (i32, i32) {
    %c0_i32 = arith.constant 0 : i32
    %c0_i32_0 = arith.constant 0 : i32
    return %arg0, %c0_i32 : i32, i32
  }
  func.func @transform_4(%arg0: i32) -> (i32, i32) {
    %c0_i32 = arith.constant 0 : i32
    %c0_i32_0 = arith.constant 0 : i32
    return %arg0, %c0_i32 : i32, i32
  }
}

module attributes {stable_mosaic.version = 11 : i64} {
  func.func @_ln_linear_kernel(%arg0: i32, %arg1: memref<1x128xbf16, #tpu.memory_space<vmem>>, %arg2: memref<1x128xbf16, #tpu.memory_space<vmem>>, %arg3: memref<1x128xbf16, #tpu.memory_space<vmem>>, %arg4: memref<128x256xbf16, #tpu.memory_space<vmem>>, %arg5: memref<1x256xbf16, #tpu.memory_space<vmem>>, %arg6: memref<1x256xbf16, #tpu.memory_space<vmem>>) attributes {dimension_semantics = [#tpu.dimension_semantics<parallel>], iteration_bounds = array<i64: 1>, scalar_prefetch = 0 : i64, scratch_operands = 0 : i64, tpu.core_type = #tpu.core_type<tc>, window_params = [{transform_indices = @transform_0, window_bounds = array<i64: 1, 128>}, {pipeline_mode = #tpu.pipeline_mode<synchronous>, transform_indices = @transform_1, window_bounds = array<i64: 1, 128>}, {pipeline_mode = #tpu.pipeline_mode<synchronous>, transform_indices = @transform_2, window_bounds = array<i64: 1, 128>}, {pipeline_mode = #tpu.pipeline_mode<synchronous>, transform_indices = @transform_3, window_bounds = array<i64: 128, 256>}, {pipeline_mode = #tpu.pipeline_mode<synchronous>, transform_indices = @transform_4, window_bounds = array<i64: 1, 256>}, {transform_indices = @transform_5, window_bounds = array<i64: 1, 256>}]} {
    %c0 = arith.constant 0 : index
    %c0_0 = arith.constant 0 : index
    %0 = vector.load %arg1[%c0, %c0_0] : memref<1x128xbf16, #tpu.memory_space<vmem>>, vector<1x128xbf16>
    %1 = arith.extf %0 : vector<1x128xbf16> to vector<1x128xf32>
    %c0_1 = arith.constant 0 : index
    %c0_2 = arith.constant 0 : index
    %2 = vector.load %arg2[%c0_1, %c0_2] : memref<1x128xbf16, #tpu.memory_space<vmem>>, vector<1x128xbf16>
    %3 = arith.extf %2 : vector<1x128xbf16> to vector<1x128xf32>
    %c0_3 = arith.constant 0 : index
    %c0_4 = arith.constant 0 : index
    %4 = vector.load %arg3[%c0_3, %c0_4] : memref<1x128xbf16, #tpu.memory_space<vmem>>, vector<1x128xbf16>
    %5 = arith.extf %4 : vector<1x128xbf16> to vector<1x128xf32>
    %cst = arith.constant dense<0.000000e+00> : vector<1xf32>
    %6 = vector.multi_reduction <add>, %1, %cst [1] : vector<1x128xf32> to vector<1xf32>
    %7 = vector.shape_cast %6 : vector<1xf32> to vector<1x1xf32>
    %cst_5 = arith.constant 1.280000e+02 : f32
    %8 = vector.broadcast %cst_5 : f32 to vector<1x1xf32>
    %9 = arith.divf %7, %8 : vector<1x1xf32>
    %10 = vector.broadcast %9 : vector<1x1xf32> to vector<1x128xf32>
    %11 = arith.subf %1, %10 : vector<1x128xf32>
    %12 = arith.mulf %11, %11 : vector<1x128xf32>
    %cst_6 = arith.constant dense<0.000000e+00> : vector<1xf32>
    %13 = vector.multi_reduction <add>, %12, %cst_6 [1] : vector<1x128xf32> to vector<1xf32>
    %14 = vector.shape_cast %13 : vector<1xf32> to vector<1x1xf32>
    %cst_7 = arith.constant 1.280000e+02 : f32
    %15 = vector.broadcast %cst_7 : f32 to vector<1x1xf32>
    %16 = arith.divf %14, %15 : vector<1x1xf32>
    %17 = vector.broadcast %9 : vector<1x1xf32> to vector<1x128xf32>
    %18 = arith.subf %1, %17 : vector<1x128xf32>
    %cst_8 = arith.constant 9.99999997E-7 : f32
    %19 = vector.broadcast %cst_8 : f32 to vector<1x1xf32>
    %20 = arith.addf %16, %19 : vector<1x1xf32>
    %21 = math.rsqrt %20 : vector<1x1xf32>
    %22 = vector.broadcast %21 : vector<1x1xf32> to vector<1x128xf32>
    %23 = arith.mulf %18, %22 : vector<1x128xf32>
    %24 = arith.mulf %23, %3 : vector<1x128xf32>
    %25 = arith.addf %24, %5 : vector<1x128xf32>
    %26 = arith.truncf %25 : vector<1x128xf32> to vector<1x128xbf16>
    %c0_9 = arith.constant 0 : index
    %c0_10 = arith.constant 0 : index
    %27 = vector.load %arg4[%c0_9, %c0_10] : memref<128x256xbf16, #tpu.memory_space<vmem>>, vector<128x256xbf16>
    %cst_11 = arith.constant dense<0.000000e+00> : vector<1x256xf32>
    %28 = tpu.matmul %26, %27, %cst_11 {dimension_numbers = #tpu.dot_dimension_numbers<[1], [0], [0], [1], [0, 0, 1, 1], [], []>} : vector<1x128xbf16>, vector<128x256xbf16>, vector<1x256xf32> -> vector<1x256xf32>
    %c0_12 = arith.constant 0 : index
    %c0_13 = arith.constant 0 : index
    %29 = vector.load %arg5[%c0_12, %c0_13] : memref<1x256xbf16, #tpu.memory_space<vmem>>, vector<1x256xbf16>
    %30 = arith.extf %29 : vector<1x256xbf16> to vector<1x256xf32>
    %31 = arith.addf %28, %30 : vector<1x256xf32>
    %32 = arith.truncf %31 : vector<1x256xf32> to vector<1x256xbf16>
    %c0_14 = arith.constant 0 : index
    %c0_15 = arith.constant 0 : index
    %33 = vector.load %arg6[%c0_14, %c0_15] : memref<1x256xbf16, #tpu.memory_space<vmem>>, vector<1x256xbf16>
    tpu.vector_store %arg6[%c0_14, %c0_15], %32 {strides = array<i32>} : memref<1x256xbf16, #tpu.memory_space<vmem>>, vector<1x256xbf16>,
    return
  }
  func.func @transform_0(%arg0: i32) -> (i32, i32) {
    %c0_i32 = arith.constant 0 : i32
    %c0_i32_0 = arith.constant 0 : i32
    return %arg0, %c0_i32 : i32, i32
  }
  func.func @transform_1(%arg0: i32) -> (i32, i32) {
    %c0_i32 = arith.constant 0 : i32
    %c0_i32_0 = arith.constant 0 : i32
    %c0_i32_1 = arith.constant 0 : i32
    return %c0_i32, %c0_i32_0 : i32, i32
  }
  func.func @transform_2(%arg0: i32) -> (i32, i32) {
    %c0_i32 = arith.constant 0 : i32
    %c0_i32_0 = arith.constant 0 : i32
    %c0_i32_1 = arith.constant 0 : i32
    return %c0_i32, %c0_i32_0 : i32, i32
  }
  func.func @transform_3(%arg0: i32) -> (i32, i32) {
    %c0_i32 = arith.constant 0 : i32
    %c0_i32_0 = arith.constant 0 : i32
    %c0_i32_1 = arith.constant 0 : i32
    return %c0_i32, %c0_i32_0 : i32, i32
  }
  func.func @transform_4(%arg0: i32) -> (i32, i32) {
    %c0_i32 = arith.constant 0 : i32
    %c0_i32_0 = arith.constant 0 : i32
    %c0_i32_1 = arith.constant 0 : i32
    return %c0_i32, %c0_i32_0 : i32, i32
  }
  func.func @transform_5(%arg0: i32) -> (i32, i32) {
    %c0_i32 = arith.constant 0 : i32
    %c0_i32_0 = arith.constant 0 : i32
    return %arg0, %c0_i32 : i32, i32
  }
}

module attributes {stable_mosaic.version = 11 : i64} {
  func.func @_ln_mlp_kernel(%arg0: i32, %arg1: memref<24x128xbf16, #tpu.memory_space<vmem>>, %arg2: memref<1x128xbf16, #tpu.memory_space<vmem>>, %arg3: memref<1x128xbf16, #tpu.memory_space<vmem>>, %arg4: memref<128x512xbf16, #tpu.memory_space<vmem>>, %arg5: memref<1x512xbf16, #tpu.memory_space<vmem>>, %arg6: memref<512x128xbf16, #tpu.memory_space<vmem>>, %arg7: memref<1x128xbf16, #tpu.memory_space<vmem>>, %arg8: memref<24x128xbf16, #tpu.memory_space<vmem>>) attributes {dimension_semantics = [#tpu.dimension_semantics<parallel>], iteration_bounds = array<i64: 1>, scalar_prefetch = 0 : i64, scratch_operands = 0 : i64, tpu.core_type = #tpu.core_type<tc>, window_params = [{transform_indices = @transform_0, window_bounds = array<i64: 24, 128>}, {pipeline_mode = #tpu.pipeline_mode<synchronous>, transform_indices = @transform_1, window_bounds = array<i64: 1, 128>}, {pipeline_mode = #tpu.pipeline_mode<synchronous>, transform_indices = @transform_2, window_bounds = array<i64: 1, 128>}, {pipeline_mode = #tpu.pipeline_mode<synchronous>, transform_indices = @transform_3, window_bounds = array<i64: 128, 512>}, {pipeline_mode = #tpu.pipeline_mode<synchronous>, transform_indices = @transform_4, window_bounds = array<i64: 1, 512>}, {pipeline_mode = #tpu.pipeline_mode<synchronous>, transform_indices = @transform_5, window_bounds = array<i64: 512, 128>}, {pipeline_mode = #tpu.pipeline_mode<synchronous>, transform_indices = @transform_6, window_bounds = array<i64: 1, 128>}, {transform_indices = @transform_7, window_bounds = array<i64: 24, 128>}]} {
    %c0 = arith.constant 0 : index
    %c0_0 = arith.constant 0 : index
    %0 = vector.load %arg1[%c0, %c0_0] : memref<24x128xbf16, #tpu.memory_space<vmem>>, vector<24x128xbf16>
    %1 = arith.extf %0 : vector<24x128xbf16> to vector<24x128xf32>
    %c0_1 = arith.constant 0 : index
    %c0_2 = arith.constant 0 : index
    %2 = vector.load %arg2[%c0_1, %c0_2] : memref<1x128xbf16, #tpu.memory_space<vmem>>, vector<1x128xbf16>
    %3 = arith.extf %2 : vector<1x128xbf16> to vector<1x128xf32>
    %c0_3 = arith.constant 0 : index
    %c0_4 = arith.constant 0 : index
    %4 = vector.load %arg3[%c0_3, %c0_4] : memref<1x128xbf16, #tpu.memory_space<vmem>>, vector<1x128xbf16>
    %5 = arith.extf %4 : vector<1x128xbf16> to vector<1x128xf32>
    %cst = arith.constant dense<0.000000e+00> : vector<24xf32>
    %6 = vector.multi_reduction <add>, %1, %cst [1] : vector<24x128xf32> to vector<24xf32>
    %7 = vector.shape_cast %6 : vector<24xf32> to vector<24x1xf32>
    %cst_5 = arith.constant 1.280000e+02 : f32
    %8 = vector.broadcast %cst_5 : f32 to vector<24x1xf32>
    %9 = arith.divf %7, %8 : vector<24x1xf32>
    %10 = vector.broadcast %9 : vector<24x1xf32> to vector<24x128xf32>
    %11 = arith.subf %1, %10 : vector<24x128xf32>
    %12 = arith.mulf %11, %11 : vector<24x128xf32>
    %cst_6 = arith.constant dense<0.000000e+00> : vector<24xf32>
    %13 = vector.multi_reduction <add>, %12, %cst_6 [1] : vector<24x128xf32> to vector<24xf32>
    %14 = vector.shape_cast %13 : vector<24xf32> to vector<24x1xf32>
    %cst_7 = arith.constant 1.280000e+02 : f32
    %15 = vector.broadcast %cst_7 : f32 to vector<24x1xf32>
    %16 = arith.divf %14, %15 : vector<24x1xf32>
    %17 = vector.broadcast %9 : vector<24x1xf32> to vector<24x128xf32>
    %18 = arith.subf %1, %17 : vector<24x128xf32>
    %cst_8 = arith.constant 9.99999997E-7 : f32
    %19 = vector.broadcast %cst_8 : f32 to vector<24x1xf32>
    %20 = arith.addf %16, %19 : vector<24x1xf32>
    %21 = math.rsqrt %20 : vector<24x1xf32>
    %22 = vector.broadcast %21 : vector<24x1xf32> to vector<24x128xf32>
    %23 = arith.mulf %18, %22 : vector<24x128xf32>
    %24 = vector.broadcast %3 : vector<1x128xf32> to vector<24x128xf32>
    %25 = arith.mulf %23, %24 : vector<24x128xf32>
    %26 = vector.broadcast %5 : vector<1x128xf32> to vector<24x128xf32>
    %27 = arith.addf %25, %26 : vector<24x128xf32>
    %28 = arith.truncf %27 : vector<24x128xf32> to vector<24x128xbf16>
    %c0_9 = arith.constant 0 : index
    %c0_10 = arith.constant 0 : index
    %29 = vector.load %arg4[%c0_9, %c0_10] : memref<128x512xbf16, #tpu.memory_space<vmem>>, vector<128x512xbf16>
    %cst_11 = arith.constant dense<0.000000e+00> : vector<24x512xf32>
    %30 = tpu.matmul %28, %29, %cst_11 {dimension_numbers = #tpu.dot_dimension_numbers<[1], [0], [0], [1], [0, 0, 1, 1], [], []>} : vector<24x128xbf16>, vector<128x512xbf16>, vector<24x512xf32> -> vector<24x512xf32>
    %c0_12 = arith.constant 0 : index
    %c0_13 = arith.constant 0 : index
    %31 = vector.load %arg5[%c0_12, %c0_13] : memref<1x512xbf16, #tpu.memory_space<vmem>>, vector<1x512xbf16>
    %32 = arith.extf %31 : vector<1x512xbf16> to vector<1x512xf32>
    %33 = vector.broadcast %32 : vector<1x512xf32> to vector<24x512xf32>
    %34 = arith.addf %30, %33 : vector<24x512xf32>
    %35 = arith.mulf %34, %34 : vector<24x512xf32>
    %36 = arith.mulf %34, %35 : vector<24x512xf32>
    %cst_14 = arith.constant 4.471500e-02 : f32
    %37 = vector.broadcast %cst_14 : f32 to vector<24x512xf32>
    %38 = arith.mulf %37, %36 : vector<24x512xf32>
    %39 = arith.addf %34, %38 : vector<24x512xf32>
    %cst_15 = arith.constant 0.797884583 : f32
    %40 = vector.broadcast %cst_15 : f32 to vector<24x512xf32>
    %41 = arith.mulf %40, %39 : vector<24x512xf32>
    %42 = math.tanh %41 : vector<24x512xf32>
    %cst_16 = arith.constant 1.000000e+00 : f32
    %43 = vector.broadcast %cst_16 : f32 to vector<24x512xf32>
    %44 = arith.addf %43, %42 : vector<24x512xf32>
    %cst_17 = arith.constant 5.000000e-01 : f32
    %45 = vector.broadcast %cst_17 : f32 to vector<24x512xf32>
    %46 = arith.mulf %45, %44 : vector<24x512xf32>
    %47 = arith.mulf %34, %46 : vector<24x512xf32>
    %48 = arith.truncf %47 : vector<24x512xf32> to vector<24x512xbf16>
    %c0_18 = arith.constant 0 : index
    %c0_19 = arith.constant 0 : index
    %49 = vector.load %arg6[%c0_18, %c0_19] : memref<512x128xbf16, #tpu.memory_space<vmem>>, vector<512x128xbf16>
    %cst_20 = arith.constant dense<0.000000e+00> : vector<24x128xf32>
    %50 = tpu.matmul %48, %49, %cst_20 {dimension_numbers = #tpu.dot_dimension_numbers<[1], [0], [0], [1], [0, 0, 1, 1], [], []>} : vector<24x512xbf16>, vector<512x128xbf16>, vector<24x128xf32> -> vector<24x128xf32>
    %c0_21 = arith.constant 0 : index
    %c0_22 = arith.constant 0 : index
    %51 = vector.load %arg7[%c0_21, %c0_22] : memref<1x128xbf16, #tpu.memory_space<vmem>>, vector<1x128xbf16>
    %52 = arith.extf %51 : vector<1x128xbf16> to vector<1x128xf32>
    %53 = vector.broadcast %52 : vector<1x128xf32> to vector<24x128xf32>
    %54 = arith.addf %50, %53 : vector<24x128xf32>
    %55 = arith.addf %54, %1 : vector<24x128xf32>
    %56 = arith.truncf %55 : vector<24x128xf32> to vector<24x128xbf16>
    %c0_23 = arith.constant 0 : index
    %c0_24 = arith.constant 0 : index
    %57 = vector.load %arg8[%c0_23, %c0_24] : memref<24x128xbf16, #tpu.memory_space<vmem>>, vector<24x128xbf16>
    tpu.vector_store %arg8[%c0_23, %c0_24], %56 {strides = array<i32>} : memref<24x128xbf16, #tpu.memory_space<vmem>>, vector<24x128xbf16>,
    return
  }
  func.func @transform_0(%arg0: i32) -> (i32, i32) {
    %c0_i32 = arith.constant 0 : i32
    %c0_i32_0 = arith.constant 0 : i32
    return %arg0, %c0_i32 : i32, i32
  }
  func.func @transform_1(%arg0: i32) -> (i32, i32) {
    %c0_i32 = arith.constant 0 : i32
    %c0_i32_0 = arith.constant 0 : i32
    %c0_i32_1 = arith.constant 0 : i32
    return %c0_i32, %c0_i32_0 : i32, i32
  }
  func.func @transform_2(%arg0: i32) -> (i32, i32) {
    %c0_i32 = arith.constant 0 : i32
    %c0_i32_0 = arith.constant 0 : i32
    %c0_i32_1 = arith.constant 0 : i32
    return %c0_i32, %c0_i32_0 : i32, i32
  }
  func.func @transform_3(%arg0: i32) -> (i32, i32) {
    %c0_i32 = arith.constant 0 : i32
    %c0_i32_0 = arith.constant 0 : i32
    %c0_i32_1 = arith.constant 0 : i32
    return %c0_i32, %c0_i32_0 : i32, i32
  }
  func.func @transform_4(%arg0: i32) -> (i32, i32) {
    %c0_i32 = arith.constant 0 : i32
    %c0_i32_0 = arith.constant 0 : i32
    %c0_i32_1 = arith.constant 0 : i32
    return %c0_i32, %c0_i32_0 : i32, i32
  }
  func.func @transform_5(%arg0: i32) -> (i32, i32) {
    %c0_i32 = arith.constant 0 : i32
    %c0_i32_0 = arith.constant 0 : i32
    %c0_i32_1 = arith.constant 0 : i32
    return %c0_i32, %c0_i32_0 : i32, i32
  }
  func.func @transform_6(%arg0: i32) -> (i32, i32) {
    %c0_i32 = arith.constant 0 : i32
    %c0_i32_0 = arith.constant 0 : i32
    %c0_i32_1 = arith.constant 0 : i32
    return %c0_i32, %c0_i32_0 : i32, i32
  }
  func.func @transform_7(%arg0: i32) -> (i32, i32) {
    %c0_i32 = arith.constant 0 : i32
    %c0_i32_0 = arith.constant 0 : i32
    return %arg0, %c0_i32 : i32, i32
  }
}

</mosaic_0001>

<bundles_post_ra>
// kernel: internvl_forward.15
= control target key start
LH: loop header
LB: loop body
LE: loop exit
PB: predicated region body
PF: predicated region fallthrough
CT: control target
= control target key end

     0   :  { %s536_s15 = smov 0   ;;  %s599_s0 = inlined_call_operand.vmem [shape: bf16[64,192], index: 0, kind: input, shape index: {}]   ;;  %s600_s1 = inlined_call_operand.vmem [shape: bf16[192,128], index: 1, kind: input, shape index: {}]   ;;  %s601_s2 = inlined_call_operand.vmem [shape: f32[1,128], index: 2, kind: input, shape index: {}]   ;;  %s602_s3 = inlined_call_operand.vmem [shape: bf16[16,128], index: 3, kind: input, shape index: {}]   ;;  %s603_s4 = inlined_call_operand.vmem [shape: bf16[64,128], index: 4, kind: output, shape index: {}]  }
   0x1 LB: > { %s436_s16 = sadd.s32 4294967295, %s508_s15   ;;  %p440_p0 = scmp.ge.s32.totalorder %s508_s15, 1  ;;  %s508_s15 = sphi %s536_s15, %s14_s15  }
   0x2   : > { %p164_p1 = scmp.lt.s32.totalorder %s508_s15, 5 }
   0x4   : > { %p165_p2 = pnand %p440_p0, %p164_p1 }
   0x5   : > { %v487_v0 = vld [vmem:[%s600_s1] sm:$0xff] (!%p165_p2)   ;;  %v510_v1 = vmov (!%p165_p2), 0   ;;  %s441_s19 = sshll.u32 (!%p165_p2), %s436_s16, 1  ;;  %v488_v2 = vld [vmem:[%s600_s1 + $0x8] sm:$0xff] (!%p165_p2)   ;;  %v489_v3 = vld [vmem:[%s600_s1 + $0x10] sm:$0xff] (!%p165_p2)   ;;  %vm319_vm0 = vcmask (!%p165_p2), 523264  }
   0x6   : > { %168 = sbr.rel (%p165_p2) target bundleno = 275 (0x113), region = 36  ;;  %323 = vmatprep.subr.bf16.mxu0 (!%p165_p2), %v510_v1  ;;  %p192_p3 = scmp.lt.s32.totalorder (!%p165_p2), %s441_s19, 7  ;;  %v490_v4 = vld [vmem:[%s600_s1 + $0x18] sm:$0xff] (!%p165_p2)   ;;  %v491_v6 = vld [vmem:[%s600_s1 + $0x20] sm:$0xff] (!%p165_p2)   ;;  %v492_v7 = vld [vmem:[%s600_s1 + $0x28] sm:$0xff] (!%p165_p2)  }
   0x7   : > { %324 = vmatpush1.bf16.msra.mxu0 (!%p165_p2), %v487_v0  ;;  %v493_v8 = vld [vmem:[%s600_s1 + $0x30] sm:$0xff] (!%p165_p2)   ;;  %v494_v9 = vld [vmem:[%s600_s1 + $0x38] sm:$0xff] (!%p165_p2)   ;;  %v495_v10 = vld [vmem:[%s600_s1 + $0x40] sm:$0xff] (!%p165_p2)  }
   0x8   : > { %325 = vmatprep.subr.bf16.mxu0 (!%p165_p2), %v510_v1  ;;  %v496_v11 = vld [vmem:[%s600_s1 + $0x48] sm:$0xff] (!%p165_p2)   ;;  %v497_v12 = vld [vmem:[%s600_s1 + $0x50] sm:$0xff] (!%p165_p2)   ;;  %v498_v13 = vld [vmem:[%s600_s1 + $0x58] sm:$0xff] (!%p165_p2)  }
   0x9   : > { %v446_v15 = vld [vmem:[%s601_s2] ss:$0 sm:$0xff] (!%p165_p2) }
   0xa   : > { %v470_v16 = vld [vmem:[%s602_s3] sm:$0xff] (!%p165_p2)  }
   0xb   : > { %326 = vmatpush1.bf16.msra.mxu0 (!%p165_p2), %v488_v2  ;;  %v471_v19 = vunpack.c.l.bf16 (!%p165_p2), %v470_v16  ;;  %v472_v21 = vunpack.c.h.bf16 (!%p165_p2), %v470_v16 }
   0xc   : > { %327 = vmatprep.subr.bf16.mxu0 (!%p165_p2), %v510_v1 }
   0xd   : > { %s605_s19 = smov (!%p192_p3, %s441_s19), 7 }
   0xe   : > { %s466_s24 = sshll.u32 %s605_s19, 3  ;;  %s445_s26 = sshll.u32 %s605_s19, 2 }
   0xf   : > { %328 = vmatpush1.bf16.msra.mxu0 %v489_v3  ;;  %s196_s29 = scalar_lea.vmem %s599_s0, %s466_s24 }
  0x10   : > { %329 = vmatprep.subr.bf16.mxu0 %v510_v1  ;;  %v501_v5 = vld [vmem:[%s196_s29 + $0x4] ss:$8 sps:$4 sm:$0xff]   ;;  %v499_v14 = vld [vmem:[%s196_s29] ss:$8 sps:$4 sm:$0xff]   ;;  %s202_s29 = scalar_lea.vmem %s603_s4, %s445_s26 }
  0x11   : > { %461 = vmatprep.mubr.msk.bf16.mxu0 %vm319_vm0, %v501_v5 }
  0x13   : > { %330 = vmatpush1.bf16.msra.mxu0 %v490_v4 }
  0x14   : > { %331 = vmatprep.subr.bf16.mxu0 %v510_v1 }
  0x17   : > { %332 = vmatpush1.bf16.msra.mxu0 %v491_v6 }
  0x18   : > { %333 = vmatprep.subr.bf16.mxu0 %v510_v1 }
  0x1b   : > { %334 = vmatpush1.bf16.msra.mxu0 %v492_v7 }
  0x1c   : > { %335 = vmatprep.subr.bf16.mxu0 %v510_v1 }
  0x1f   : > { %336 = vmatpush1.bf16.msra.mxu0 %v493_v8 }
  0x20   : > { %337 = vmatprep.subr.bf16.mxu0 %v510_v1 }
  0x23   : > { %338 = vmatpush1.bf16.msra.mxu0 %v494_v9 }
  0x24   : > { %339 = vmatprep.subr.bf16.mxu0 %v510_v1 }
  0x27   : > { %340 = vmatpush1.bf16.msra.mxu0 %v495_v10 }
  0x28   : > { %341 = vmatprep.subr.bf16.mxu0 %v510_v1 }
  0x2b   : > { %342 = vmatpush1.bf16.msra.mxu0 %v496_v11 }
  0x2c   : > { %343 = vmatprep.subr.bf16.mxu0 %v510_v1 }
  0x2f   : > { %344 = vmatpush1.bf16.msra.mxu0 %v497_v12 }
  0x30   : > { %345 = vmatprep.subr.bf16.mxu0 %v510_v1 }
  0x33   : > { %346 = vmatpush1.bf16.msra.mxu0 %v498_v13 }
  0x36   : > { %356 = vmatmul.mubr.bf16.vlgmr.msra.gmra.mrb[0].mxu0 %v499_v14 }
 0x109   : > { %v357_v17 = vpop.f32.mrb[0].mxu0 }
 0x10a   : > { %v358_v18 = vadd.f32 %v446_v15, %v357_v17  ;;  %v359_v20 = vpop.f32.mrb[1].mxu0 }
 0x10b   : > { %v360_v22 = vpop.f32.mrb[2].mxu0 }
 0x10c   : > { %v361_v23 = vadd.f32 %v446_v15, %v360_v22  ;;  %v362_v24 = vpop.f32.mrb[3].mxu0  ;;  %v368_v25 = vadd.f32 %v471_v19, %v358_v18 }
 0x10e   : > { %v369_v26 = vadd.f32 %v472_v21, %v361_v23 }
 0x110   : > { %v476_v27 = vpack.c.bf16 %v369_v26, %v368_v25 }
 0x112   : > { %477 = vst [vmem:[%s202_s29] sm:$0xff] %v476_v27  }
 0x113 PF: > { %s14_s15 = sadd.s32 1, %s508_s15  }
 0x114   : > { %p11_p4 = scmp.ge.s32.totalorder %s14_s15, 6  }
 0x116   :  { %13 = sbr.rel (!%p11_p4) target bundleno = 1 (0x1), region = 66 }

// kernel: internvl_forward.16
= control target key start
LH: loop header
LB: loop body
LE: loop exit
PB: predicated region body
PF: predicated region fallthrough
CT: control target
= control target key end

     0   :  { %s995_s0 = inlined_call_operand.vmem [shape: bf16[64,128], index: 0, kind: input, shape index: {}]   ;;  %s996_s3 = inlined_call_operand.vmem [shape: bf16[128,384], index: 3, kind: input, shape index: {}]   ;;  %s997_s1 = inlined_call_operand.vmem [shape: bf16[1,128], index: 1, kind: input, shape index: {}]   ;;  %s998_s2 = inlined_call_operand.vmem [shape: bf16[1,128], index: 2, kind: input, shape index: {}]   ;;  %s999_s4 = inlined_call_operand.vmem [shape: bf16[1,384], index: 4, kind: input, shape index: {}]   ;;  %s1000_s5 = inlined_call_operand.vmem [shape: bf16[64,384], index: 5, kind: output, shape index: {}]  }
   0x1   :  { %v643_v0 = vld [vmem:[%s995_s0] sm:$0xff]   ;;  %v658_v1 = vld [vmem:[%s995_s0 + $0x8] sm:$0xff]   ;;  %v659_v6 = vld [vmem:[%s995_s0 + $0x10] sm:$0xff]  }
   0x2   :  { %v644_v2 = vunpack.c.l.bf16 %v643_v0  ;;  %v648_v3 = vunpack.c.l.bf16 %v658_v1  ;;  %v645_v4 = vunpack.c.h.bf16 %v643_v0  ;;  %v649_v5 = vunpack.c.h.bf16 %v658_v1  ;;  %v660_v9 = vld [vmem:[%s995_s0 + $0x18] sm:$0xff]   ;;  %v698_v12 = vld [vmem:[%s996_s3 + $0x4] ss:$12 sps:$4 sm:$0xff]   ;;  %v700_v13 = vld [vmem:[%s996_s3] ss:$12 sps:$4 sm:$0xff]  }
   0x3   :  { %v652_v7 = vunpack.c.l.bf16 %v659_v6  ;;  %v653_v8 = vunpack.c.h.bf16 %v659_v6  ;;  %v656_v10 = vunpack.c.l.bf16 %v660_v9  ;;  %v657_v11 = vunpack.c.h.bf16 %v660_v9  ;;  %348 = vmatprep.subr.bf16.mxu0 %v698_v12  ;;  %v701_v14 = vld [vmem:[%s996_s3 + $0x1c] ss:$12 sps:$4 sm:$0xff]   ;;  %v704_v48 = vld [vmem:[%s996_s3 + $0x18] ss:$12 sps:$4 sm:$0xff]   ;;  %v705_v49 = vld [vmem:[%s996_s3 + $0x34] ss:$12 sps:$4 sm:$0xff]  }
   0x4   :  { %41 = vadd.xlane.f32.xlu0 %v644_v2  ;;  %45 = vadd.xlane.f32.xlu1 %v648_v3  ;;  %v703_v15 = vld [vmem:[%s996_s3 + $0x8] ss:$12 sps:$4 sm:$0xff]   ;;  %v707_v50 = vld [vmem:[%s996_s3 + $0x20] ss:$12 sps:$4 sm:$0xff]   ;;  %v708_v51 = vld [vmem:[%s996_s3 + $0x30] ss:$12 sps:$4 sm:$0xff]  }
   0x5   :  { %349 = vmatpush1.bf16.msra.mxu0 %v700_v13  ;;  %673 = vmatprep.subr.bf16.mxu1 %v703_v15  ;;  %v709_v52 = vld [vmem:[%s996_s3 + $0x4c] ss:$12 sps:$4 sm:$0xff]   ;;  %v712_v54 = vld [vmem:[%s996_s3 + $0x48] ss:$12 sps:$4 sm:$0xff]   ;;  %v713_v55 = vld [vmem:[%s996_s3 + $0x64] ss:$12 sps:$4 sm:$0xff]  }
   0x6   :  { %350 = vmatprep.subr.bf16.mxu0 %v701_v14  ;;  %674 = vmatpush3.bf16.msra.mxu1 %v703_v15  ;;  %v711_v53 = vld [vmem:[%s996_s3 + $0x38] ss:$12 sps:$4 sm:$0xff]   ;;  %v715_v56 = vld [vmem:[%s996_s3 + $0x50] ss:$12 sps:$4 sm:$0xff]   ;;  %v716_v57 = vld [vmem:[%s996_s3 + $0x60] ss:$12 sps:$4 sm:$0xff]  }
   0x7   :  { %675 = vmatprep.subr.bf16.mxu1 %v707_v50  ;;  %v717_v58 = vld [vmem:[%s996_s3 + $0x7c] ss:$12 sps:$4 sm:$0xff]   ;;  %v720_v60 = vld [vmem:[%s996_s3 + $0x78] ss:$12 sps:$4 sm:$0xff]   ;;  %v721_v61 = vld [vmem:[%s996_s3 + $0x94] ss:$12 sps:$4 sm:$0xff]  }
   0x8   :  { %43 = vadd.xlane.f32.xlu0 %v645_v4  ;;  %47 = vadd.xlane.f32.xlu1 %v649_v5  ;;  %v719_v59 = vld [vmem:[%s996_s3 + $0x68] ss:$12 sps:$4 sm:$0xff]   ;;  %v723_v62 = vld [vmem:[%s996_s3 + $0x80] ss:$12 sps:$4 sm:$0xff]   ;;  %v724_v63 = vld [vmem:[%s996_s3 + $0x90] ss:$12 sps:$4 sm:$0xff]  }
   0x9   :  { %351 = vmatpush1.bf16.msra.mxu0 %v704_v48  ;;  %v725_v0 = vld [vmem:[%s996_s3 + $0xac] ss:$12 sps:$4 sm:$0xff]  }
   0xa   :  { %352 = vmatprep.subr.bf16.mxu0 %v705_v49  ;;  %676 = vmatpush3.bf16.msra.mxu1 %v707_v50  ;;  %v727_v1 = vld [vmem:[%s996_s3 + $0x98] ss:$12 sps:$4 sm:$0xff]  }
   0xb   :  { %677 = vmatprep.subr.bf16.mxu1 %v711_v53 }
   0xc   :  { %49 = vadd.xlane.f32.xlu0 %v652_v7  ;;  %51 = vadd.xlane.f32.xlu1 %v653_v8 }
   0xd   :  { %353 = vmatpush1.bf16.msra.mxu0 %v708_v51 }
   0xe   :  { %354 = vmatprep.subr.bf16.mxu0 %v709_v52  ;;  %678 = vmatpush3.bf16.msra.mxu1 %v711_v53 }
   0xf   :  { %679 = vmatprep.subr.bf16.mxu1 %v715_v56 }
  0x10   :  { %53 = vadd.xlane.f32.xlu0 %v656_v10  ;;  %55 = vadd.xlane.f32.xlu1 %v657_v11 }
  0x11   :  { %355 = vmatpush1.bf16.msra.mxu0 %v712_v54 }
  0x12   :  { %356 = vmatprep.subr.bf16.mxu0 %v713_v55  ;;  %680 = vmatpush3.bf16.msra.mxu1 %v715_v56 }
  0x13   :  { %681 = vmatprep.subr.bf16.mxu1 %v719_v59 }
  0x15   :  { %357 = vmatpush1.bf16.msra.mxu0 %v716_v57 }
  0x16   :  { %358 = vmatprep.subr.bf16.mxu0 %v717_v58  ;;  %682 = vmatpush3.bf16.msra.mxu1 %v719_v59 }
  0x17   :  { %683 = vmatprep.subr.bf16.mxu1 %v723_v62 }
  0x19   :  { %359 = vmatpush1.bf16.msra.mxu0 %v720_v60 }
  0x1a   :  { %360 = vmatprep.subr.bf16.mxu0 %v721_v61  ;;  %684 = vmatpush3.bf16.msra.mxu1 %v723_v62 }
  0x1b   :  { %685 = vmatprep.subr.bf16.mxu1 %v727_v1 }
  0x1d   :  { %361 = vmatpush1.bf16.msra.mxu0 %v724_v63 }
  0x1e   :  { %362 = vmatprep.subr.bf16.mxu0 %v725_v0  ;;  %686 = vmatpush3.bf16.msra.mxu1 %v727_v1 }
  0x91   :  { %v42_v16 = vpop.xlane.xlu0 %41  ;;  %v46_v17 = vpop.xlane.xlu1 %45 }
  0x92   :  { %v58_v18 = vmul.f32 0.0078125, %v42_v16  ;;  %v60_v19 = vmul.f32 0.0078125, %v46_v17 }
  0x94   :  { %v801_v20 = vsub.f32 %v644_v2, %v58_v18  ;;  %v803_v21 = vsub.f32 %v648_v3, %v60_v19  ;;  %v728_v2 = vld [vmem:[%s996_s3 + $0xa8] ss:$12 sps:$4 sm:$0xff]   ;;  %v746_v3 = vmov 0  }
  0x95   :  { %v44_v22 = vpop.xlane.xlu0 %43  ;;  %v48_v23 = vpop.xlane.xlu1 %47  ;;  %380 = vmatprep.mubr.bf16.mxu0 %v746_v3  ;;  %363 = vmatpush1.bf16.msra.mxu0 %v728_v2 }
  0x96   :  { %v59_v24 = vmul.f32 0.0078125, %v44_v22  ;;  %v74_v25 = vmul.f32 %v801_v20, %v801_v20  ;;  %v61_v26 = vmul.f32 0.0078125, %v48_v23  ;;  %v76_v29 = vmul.f32 %v803_v21, %v803_v21  ;;  %v37_v22 = vld [vmem:[%s997_s1] sm:$0x1] }
  0x98   :  { %v807_v27 = vsub.f32 %v645_v4, %v59_v24  ;;  %82 = vadd.xlane.f32.xlu0 %v74_v25  ;;  %v809_v28 = vsub.f32 %v649_v5, %v61_v26  ;;  %v729_v4 = vld [vmem:[%s996_s3 + $0xb0] ss:$12 sps:$4 sm:$0xff]  }
  0x99   :  { %v50_v30 = vpop.xlane.xlu0 %49  ;;  %v52_v31 = vpop.xlane.xlu1 %51  ;;  %687 = vmatprep.subr.bf16.mxu1 %v729_v4 }
  0x9a   :  { %v62_v32 = vmul.f32 0.0078125, %v50_v30  ;;  %v75_v33 = vmul.f32 %v807_v27, %v807_v27  ;;  %v63_v34 = vmul.f32 0.0078125, %v52_v31  ;;  %v77_v37 = vmul.f32 %v809_v28, %v809_v28  ;;  %688 = vmatpush3.bf16.msra.mxu1 %v729_v4 }
  0x9c   :  { %v815_v35 = vsub.f32 %v652_v7, %v62_v32  ;;  %86 = vadd.xlane.f32.xlu0 %v76_v29  ;;  %84 = vadd.xlane.f32.xlu1 %v75_v33  ;;  %v817_v36 = vsub.f32 %v653_v8, %v63_v34  ;;  %v38_v29 = vunpack.c.l.bf16 %v37_v22  ;;  %v39_v33 = vld [vmem:[%s998_s2] sm:$0x1] }
  0x9d   :  { %v54_v38 = vpop.xlane.xlu0 %53  ;;  %v56_v39 = vpop.xlane.xlu1 %55 }
  0x9e   :  { %v64_v40 = vmul.f32 0.0078125, %v54_v38  ;;  %v78_v41 = vmul.f32 %v815_v35, %v815_v35  ;;  %v65_v42 = vmul.f32 0.0078125, %v56_v39  ;;  %v79_v45 = vmul.f32 %v817_v36, %v817_v36 }
  0xa0   :  { %v823_v43 = vsub.f32 %v656_v10, %v64_v40  ;;  %88 = vadd.xlane.f32.xlu1 %v77_v37  ;;  %90 = vadd.xlane.f32.xlu0 %v78_v41  ;;  %v825_v44 = vsub.f32 %v657_v11, %v65_v42  ;;  %v130_v10 = vlaneseq  ;;  %v40_v40 = vunpack.c.l.bf16 %v39_v33 }
  0xa2   :  { %v80_v46 = vmul.f32 %v823_v43, %v823_v43  ;;  %v81_v47 = vmul.f32 %v825_v44, %v825_v44  ;;  %v894_v17 = vshrl.u32 %v130_v10, 7 }
  0xa4   :  { %92 = vadd.xlane.f32.xlu1 %v79_v45  ;;  %94 = vadd.xlane.f32.xlu0 %v80_v46  ;;  %v900_v30 = vsub.s32 0, %v894_v17 }
  0xa6   :  { %v133_v42 = vrot.slane %v38_v29, %v900_v30  ;;  %v145_v51 = vrot.slane %v40_v40, %v900_v30 }
  0xa8   :  { %96 = vadd.xlane.f32.xlu1 %v81_v47 }
 0x125   :  { %v83_v5 = vpop.xlane.xlu0 %82 }
 0x126   :  { %v98_v6 = vmul.f32 0.0078125, %v83_v5 }
 0x128   :  { %v106_v7 = vadd.f32 1e-06, %v98_v6 }
 0x129   :  { %v85_v8 = vpop.xlane.xlu1 %84  ;;  %v87_v9 = vpop.xlane.xlu0 %86 }
 0x12a   :  { %730 = vrsqrt.f32 %v106_v7  ;;  %v99_v11 = vmul.f32 0.0078125, %v85_v8  ;;  %v100_v12 = vmul.f32 0.0078125, %v87_v9 }
 0x12c   :  { %v107_v13 = vadd.f32 1e-06, %v99_v11  ;;  %v108_v14 = vadd.f32 1e-06, %v100_v12 }
 0x12d   :  { %v89_v15 = vpop.xlane.xlu1 %88  ;;  %v91_v16 = vpop.xlane.xlu0 %90 }
 0x12e   :  { %732 = vrsqrt.f32 %v107_v13  ;;  %v101_v18 = vmul.f32 0.0078125, %v89_v15  ;;  %v102_v19 = vmul.f32 0.0078125, %v91_v16  ;;  %v199_v13 = vsub.s32 2, %v894_v17 }
 0x12f   :  { %734 = vrsqrt.f32 %v108_v14  ;;  %v203_v15 = vsub.s32 4, %v894_v17 }
 0x130   :  { %v109_v23 = vadd.f32 1e-06, %v101_v18  ;;  %v110_v24 = vadd.f32 1e-06, %v102_v19 }
 0x131   :  { %v93_v25 = vpop.xlane.xlu1 %92  ;;  %v95_v26 = vpop.xlane.xlu0 %94 }
 0x132   :  { %736 = vrsqrt.f32 %v109_v23  ;;  %v103_v31 = vmul.f32 0.0078125, %v93_v25  ;;  %v104_v32 = vmul.f32 0.0078125, %v95_v26 }
 0x133   :  { %738 = vrsqrt.f32 %v110_v24 }
 0x134   :  { %v731_v34 = vpop.eup %730  ;;  %v111_v37 = vadd.f32 1e-06, %v103_v31  ;;  %v112_v38 = vadd.f32 1e-06, %v104_v32 }
 0x135   :  { %v97_v39 = vpop.xlane.xlu1 %96  ;;  %v122_v41 = vmul.f32 %v731_v34, %v801_v20 }
 0x136   :  { %740 = vrsqrt.f32 %v111_v37  ;;  %v105_v45 = vmul.f32 0.0078125, %v97_v39 }
 0x137   :  { %742 = vrsqrt.f32 %v112_v38  ;;  %v134_v50 = vmul.f32 %v133_v42, %v122_v41 }
 0x138   :  { %v733_v46 = vpop.eup %732  ;;  %v113_v47 = vadd.f32 1e-06, %v105_v45 }
 0x139   :  { %v735_v48 = vpop.eup %734  ;;  %v123_v49 = vmul.f32 %v733_v46, %v807_v27  ;;  %v146_v56 = vadd.f32 %v145_v51, %v134_v50 }
 0x13a   :  { %744 = vrsqrt.f32 %v113_v47  ;;  %v124_v52 = vmul.f32 %v735_v48, %v803_v21 }
 0x13b   :  { %v135_v53 = vmul.f32 %v133_v42, %v123_v49 }
 0x13c   :  { %v737_v54 = vpop.eup %736  ;;  %v136_v55 = vmul.f32 %v133_v42, %v124_v52 }
 0x13d   :  { %v739_v20 = vpop.eup %738  ;;  %v147_v57 = vadd.f32 %v145_v51, %v135_v53  ;;  %v125_v58 = vmul.f32 %v737_v54, %v809_v28 }
 0x13e   :  { %v126_v59 = vmul.f32 %v739_v20, %v815_v35  ;;  %v148_v27 = vadd.f32 %v145_v51, %v136_v55 }
 0x13f   :  { %v154_v60 = vpack.c.bf16 %v147_v57, %v146_v56  ;;  %v137_v61 = vmul.f32 %v133_v42, %v125_v58 }
 0x140   :  { %v741_v62 = vpop.eup %740  ;;  %v138_v1 = vmul.f32 %v133_v42, %v126_v59 }
 0x141   :  { %v743_v63 = vpop.eup %742  ;;  %381 = vmatmul.mubr.bf16.vlgmr.msra.gmra.mrb[0].mxu0 %v154_v60  ;;  %689 = vmatprep.mubr.bf16.mxu1 %v154_v60  ;;  %v149_v0 = vadd.f32 %v145_v51, %v137_v61  ;;  %v127_v21 = vmul.f32 %v741_v62, %v817_v36 }
 0x142   :  { %390 = vmatprep.mubr.bf16.mxu0 %v746_v3  ;;  %v128_v2 = vmul.f32 %v743_v63, %v823_v43  ;;  %v150_v35 = vadd.f32 %v145_v51, %v138_v1  ;;  %v190_v43 = vld [vmem:[%s999_s4] sm:$0x7] }
 0x143   :  { %v155_v4 = vpack.c.bf16 %v149_v0, %v148_v27  ;;  %v139_v5 = vmul.f32 %v133_v42, %v127_v21 }
 0x144   :  { %v745_v28 = vpop.eup %744  ;;  %v140_v8 = vmul.f32 %v133_v42, %v128_v2 }
 0x145   :  { %690 = vmatmul.mubr.bf16.vlgmr.msra.gmra.mrb[0].mxu1 %v155_v4  ;;  %v151_v6 = vadd.f32 %v145_v51, %v139_v5  ;;  %v129_v7 = vmul.f32 %v745_v28, %v825_v44  ;;  %v191_v44 = vunpack.c.l.bf16 %v190_v43 }
 0x146   :  { %v152_v11 = vadd.f32 %v145_v51, %v140_v8 }
 0x147   :  { %v156_v9 = vpack.c.bf16 %v151_v6, %v150_v35  ;;  %v141_v10 = vmul.f32 %v133_v42, %v129_v7  ;;  %v196_v14 = vrot.slane %v191_v44, %v900_v30  ;;  %v200_v16 = vrot.slane %v191_v44, %v199_v13 }
 0x148   :  { %v204_v19 = vrot.slane %v191_v44, %v203_v15 }
 0x149   :  { %391 = vmatmul.mubr.bf16.gmra.mrb[4].mxu0 %v155_v4  ;;  %693 = vmatprep.mubr.bf16.mxu1 %v156_v9  ;;  %v153_v36 = vadd.f32 %v145_v51, %v141_v10  ;;  %v925_v18 = vrot.slane %v196_v14, %v900_v30  ;;  %v928_v22 = vrot.slane %v200_v16, %v900_v30 }
 0x14a   :  { %400 = vmatprep.mubr.bf16.mxu0 %v746_v3  ;;  %v219_v25 = vrot.slane %v204_v19, %v900_v30 }
 0x14b   :  { %v157_v12 = vpack.c.bf16 %v153_v36, %v152_v11 }
 0x14d   :  { %694 = vmatmul.mubr.bf16.gmra.mrb[4].mxu1 %v157_v12 }
 0x151   :  { %401 = vmatmul.mubr.bf16.gmra.mrb[8].mxu0 %v156_v9 }
 0x152   :  { %410 = vmatprep.mubr.bf16.mxu0 %v746_v3 }
 0x159   :  { %411 = vmatmul.mubr.bf16.gmra.mrb[12].mxu0 %v157_v12 }
 0x214   :  { %v382_v3 = vpop.f32.mrb[0].mxu0 }
 0x215   :  { %v383_v23 = vadd.f32 %v382_v3, %v925_v18  ;;  %v384_v24 = vpop.f32.mrb[1].mxu0 }
 0x216   :  { %v385_v26 = vadd.f32 %v384_v24, %v928_v22  ;;  %v386_v29 = vpop.f32.mrb[2].mxu0 }
 0x217   :  { %v387_v31 = vadd.f32 %v386_v29, %v925_v18  ;;  %v388_v17 = vpop.f32.mrb[3].mxu0 }
 0x218   :  { %v626_v32 = vpack.c.bf16 %v385_v26, %v383_v23  ;;  %v389_v33 = vadd.f32 %v388_v17, %v928_v22  ;;  %v691_v34 = vpop.f32.mrb[0].mxu1 }
 0x219   :  { %v464_v37 = vadd.f32 %v691_v34, %v219_v25  ;;  %v455_v38 = vpop.f32.mrb[1].mxu1 }
 0x21a   :  { %566 = vst [vmem:[%s1000_s5] sm:$0xff] %v626_v32  ;;  %v628_v39 = vpack.c.bf16 %v389_v33, %v387_v31  ;;  %v456_v40 = vadd.f32 %v455_v38, %v219_v25  ;;  %v692_v41 = vpop.f32.mrb[2].mxu1 }
 0x21b   :  { %v631_v30 = vpack.c.bf16 %v464_v37, %v464_v37  ;;  %v467_v42 = vadd.f32 %v692_v41, %v219_v25  ;;  %v458_v45 = vpop.f32.mrb[3].mxu1 }
 0x21c   :  { %568 = vst [vmem:[%s1000_s5 + $0xc] sm:$0xff] %v628_v39  ;;  %v627_v46 = vpack.c.bf16 %v456_v40, %v456_v40  ;;  %v459_v47 = vadd.f32 %v458_v45, %v219_v25  ;;  %v392_v48 = vpop.f32.mrb[4].mxu0 }
 0x21d   :  { %571 = vst [vmem:[%s1000_s5 + $0x20] sm:$0xf] %v631_v30  ;;  %v633_v49 = vpack.c.bf16 %v467_v42, %v467_v42  ;;  %v393_v50 = vadd.f32 %v392_v48, %v925_v18  ;;  %v394_v51 = vpop.f32.mrb[5].mxu0 }
 0x21e   :  { %567 = vst [vmem:[%s1000_s5 + $0x8] sm:$0xf] %v627_v46  ;;  %v629_v52 = vpack.c.bf16 %v459_v47, %v459_v47  ;;  %v395_v53 = vadd.f32 %v394_v51, %v928_v22  ;;  %v396_v54 = vpop.f32.mrb[6].mxu0 }
 0x21f   :  { %573 = vst [vmem:[%s1000_s5 + $0x2c] sm:$0xf] %v633_v49  ;;  %v397_v55 = vadd.f32 %v396_v54, %v925_v18  ;;  %v398_v20 = vpop.f32.mrb[7].mxu0 }
 0x220   :  { %569 = vst [vmem:[%s1000_s5 + $0x14] sm:$0xf] %v629_v52  ;;  %v630_v56 = vpack.c.bf16 %v395_v53, %v393_v50  ;;  %v399_v57 = vadd.f32 %v398_v20, %v928_v22  ;;  %v695_v58 = vpop.f32.mrb[4].mxu1 }
 0x221   :  { %v480_v59 = vadd.f32 %v695_v58, %v219_v25  ;;  %v471_v60 = vpop.f32.mrb[5].mxu1 }
 0x222   :  { %570 = vst [vmem:[%s1000_s5 + $0x18] sm:$0xff] %v630_v56  ;;  %v632_v61 = vpack.c.bf16 %v399_v57, %v397_v55  ;;  %v472_v62 = vadd.f32 %v471_v60, %v219_v25  ;;  %v696_v27 = vpop.f32.mrb[6].mxu1 }
 0x223   :  { %v639_v63 = vpack.c.bf16 %v480_v59, %v480_v59  ;;  %v483_v0 = vadd.f32 %v696_v27, %v219_v25  ;;  %v474_v21 = vpop.f32.mrb[7].mxu1 }
 0x224   :  { %572 = vst [vmem:[%s1000_s5 + $0x24] sm:$0xff] %v632_v61  ;;  %v635_v1 = vpack.c.bf16 %v472_v62, %v472_v62  ;;  %v475_v2 = vadd.f32 %v474_v21, %v219_v25  ;;  %v402_v4 = vpop.f32.mrb[8].mxu0 }
 0x225   :  { %579 = vst [vmem:[%s1000_s5 + $0x50] sm:$0xf] %v639_v63  ;;  %v641_v5 = vpack.c.bf16 %v483_v0, %v483_v0  ;;  %v403_v28 = vadd.f32 %v402_v4, %v925_v18  ;;  %v404_v35 = vpop.f32.mrb[9].mxu0 }
 0x226   :  { %575 = vst [vmem:[%s1000_s5 + $0x38] sm:$0xf] %v635_v1  ;;  %v637_v6 = vpack.c.bf16 %v475_v2, %v475_v2  ;;  %v405_v7 = vadd.f32 %v404_v35, %v928_v22  ;;  %v406_v8 = vpop.f32.mrb[10].mxu0 }
 0x227   :  { %581 = vst [vmem:[%s1000_s5 + $0x5c] sm:$0xf] %v641_v5  ;;  %v407_v9 = vadd.f32 %v406_v8, %v925_v18  ;;  %v408_v10 = vpop.f32.mrb[11].mxu0 }
 0x228   :  { %577 = vst [vmem:[%s1000_s5 + $0x44] sm:$0xf] %v637_v6  ;;  %v634_v11 = vpack.c.bf16 %v405_v7, %v403_v28  ;;  %v409_v36 = vadd.f32 %v408_v10, %v928_v22 }
 0x22a   :  { %574 = vst [vmem:[%s1000_s5 + $0x30] sm:$0xff] %v634_v11  ;;  %v636_v12 = vpack.c.bf16 %v409_v36, %v407_v9 }
 0x22c   :  { %576 = vst [vmem:[%s1000_s5 + $0x3c] sm:$0xff] %v636_v12  ;;  %v412_v43 = vpop.f32.mrb[12].mxu0 }
 0x22d   :  { %v413_v44 = vadd.f32 %v412_v43, %v925_v18  ;;  %v414_v13 = vpop.f32.mrb[13].mxu0 }
 0x22e   :  { %v415_v14 = vadd.f32 %v414_v13, %v928_v22  ;;  %v416_v15 = vpop.f32.mrb[14].mxu0 }
 0x22f   :  { %v417_v16 = vadd.f32 %v416_v15, %v925_v18  ;;  %v418_v19 = vpop.f32.mrb[15].mxu0 }
 0x230   :  { %v638_v3 = vpack.c.bf16 %v415_v14, %v413_v44  ;;  %v419_v23 = vadd.f32 %v418_v19, %v928_v22 }
 0x232   :  { %578 = vst [vmem:[%s1000_s5 + $0x48] sm:$0xff] %v638_v3  ;;  %v640_v24 = vpack.c.bf16 %v419_v23, %v417_v16 }
 0x234   :  { %580 = vst [vmem:[%s1000_s5 + $0x54] sm:$0xff] %v640_v24 }

// kernel: internvl_forward.18
= control target key start
LH: loop header
LB: loop body
LE: loop exit
PB: predicated region body
PF: predicated region fallthrough
CT: control target
= control target key end

     0   :  { %v44_v12 = vlaneseq  ;;  %s475_s1 = inlined_call_operand.vmem [shape: bf16[128,128], index: 1, kind: input, shape index: {}]   ;;  %s476_s0 = inlined_call_operand.vmem [shape: bf16[64,128], index: 0, kind: input, shape index: {}]   ;;  %s477_s2 = inlined_call_operand.vmem [shape: bf16[1,128], index: 2, kind: input, shape index: {}]   ;;  %s478_s3 = inlined_call_operand.vmem [shape: bf16[64,128], index: 3, kind: input, shape index: {}]   ;;  %s479_s4 = inlined_call_operand.vmem [shape: bf16[64,128], index: 4, kind: output, shape index: {}]  }
   0x1   :  { %v375_v0 = vld [vmem:[%s475_s1] sm:$0xff]   ;;  %v376_v1 = vld [vmem:[%s475_s1 + $0x8] sm:$0xff]   ;;  %v377_v2 = vld [vmem:[%s475_s1 + $0x10] sm:$0xff]  }
   0x2   :  { %335 = vmatprep.subr.bf16.mxu0 %v375_v0  ;;  %359 = vmatprep.subr.bf16.mxu1 %v375_v0  ;;  %v378_v3 = vld [vmem:[%s475_s1 + $0x18] sm:$0xff]   ;;  %v383_v4 = vld [vmem:[%s476_s0] sm:$0xff]   ;;  %v384_v5 = vld [vmem:[%s476_s0 + $0x10] sm:$0xff]   ;;  %v45_v13 = vshrl.u32 %v44_v12, 7 }
   0x3   :  { %336 = vmatpush3.bf16.msra.mxu0 %v375_v0  ;;  %367 = vmatpush3.bf16.msra.mxu1 %v375_v0  ;;  %v379_v6 = vld [vmem:[%s475_s1 + $0x20] sm:$0xff]   ;;  %v380_v7 = vld [vmem:[%s475_s1 + $0x28] sm:$0xff]   ;;  %v381_v8 = vld [vmem:[%s475_s1 + $0x30] sm:$0xff]  }
   0x4   :  { %337 = vmatprep.subr.bf16.mxu0 %v376_v1  ;;  %360 = vmatprep.subr.bf16.mxu1 %v376_v1  ;;  %v382_v9 = vld [vmem:[%s475_s1 + $0x38] sm:$0xff]   ;;  %v385_v10 = vld [vmem:[%s476_s0 + $0x8] sm:$0xff]   ;;  %v42_v14 = vld [vmem:[%s477_s2] sm:$0x1]  ;;  %v46_v16 = vsub.s32 0, %v45_v13 }
   0x5   :  { %351 = vmatprep.mubr.bf16.mxu0 %v383_v4  ;;  %355 = vmatprep.mubr.bf16.mxu1 %v384_v5  ;;  %v386_v11 = vld [vmem:[%s476_s0 + $0x18] sm:$0xff]   ;;  %v43_v15 = vunpack.c.l.bf16 %v42_v14  ;;  %v317_v17 = vld [vmem:[%s478_s3 + $0x8] sm:$0xff]   ;;  %v282_v20 = vld [vmem:[%s478_s3] sm:$0xff]  }
   0x6   :  { %v319_v19 = vld [vmem:[%s478_s3 + $0x18] sm:$0xff]   ;;  %v318_v21 = vld [vmem:[%s478_s3 + $0x10] sm:$0xff]   ;;  %v287_v23 = vunpack.c.l.bf16 %v317_v17  ;;  %v283_v26 = vunpack.c.l.bf16 %v282_v20  ;;  %v288_v32 = vunpack.c.h.bf16 %v317_v17  ;;  %v284_v38 = vunpack.c.h.bf16 %v282_v20 }
   0x7   :  { %338 = vmatpush3.bf16.msra.mxu0 %v376_v1  ;;  %368 = vmatpush3.bf16.msra.mxu1 %v376_v1  ;;  %v47_v18 = vrot.slane %v43_v15, %v46_v16  ;;  %v295_v25 = vunpack.c.l.bf16 %v319_v19  ;;  %v291_v27 = vunpack.c.l.bf16 %v318_v21  ;;  %v296_v33 = vunpack.c.h.bf16 %v319_v19 }
   0x8   :  { %339 = vmatprep.subr.bf16.mxu0 %v377_v2  ;;  %361 = vmatprep.subr.bf16.mxu1 %v377_v2  ;;  %v292_v39 = vunpack.c.h.bf16 %v318_v21 }
   0xb   :  { %340 = vmatpush3.bf16.msra.mxu0 %v377_v2  ;;  %369 = vmatpush3.bf16.msra.mxu1 %v377_v2 }
   0xc   :  { %341 = vmatprep.subr.bf16.mxu0 %v378_v3  ;;  %362 = vmatprep.subr.bf16.mxu1 %v378_v3 }
   0xf   :  { %342 = vmatpush3.bf16.msra.mxu0 %v378_v3  ;;  %370 = vmatpush3.bf16.msra.mxu1 %v378_v3 }
  0x10   :  { %343 = vmatprep.subr.bf16.mxu0 %v379_v6  ;;  %363 = vmatprep.subr.bf16.mxu1 %v379_v6 }
  0x13   :  { %344 = vmatpush3.bf16.msra.mxu0 %v379_v6  ;;  %371 = vmatpush3.bf16.msra.mxu1 %v379_v6 }
  0x14   :  { %345 = vmatprep.subr.bf16.mxu0 %v380_v7  ;;  %364 = vmatprep.subr.bf16.mxu1 %v380_v7 }
  0x17   :  { %346 = vmatpush3.bf16.msra.mxu0 %v380_v7  ;;  %372 = vmatpush3.bf16.msra.mxu1 %v380_v7 }
  0x18   :  { %347 = vmatprep.subr.bf16.mxu0 %v381_v8  ;;  %365 = vmatprep.subr.bf16.mxu1 %v381_v8 }
  0x1b   :  { %348 = vmatpush3.bf16.msra.mxu0 %v381_v8  ;;  %373 = vmatpush3.bf16.msra.mxu1 %v381_v8 }
  0x1c   :  { %349 = vmatprep.subr.bf16.mxu0 %v382_v9  ;;  %366 = vmatprep.subr.bf16.mxu1 %v382_v9 }
  0x1f   :  { %350 = vmatpush3.bf16.msra.mxu0 %v382_v9  ;;  %374 = vmatpush3.bf16.msra.mxu1 %v382_v9 }
  0x22   :  { %352 = vmatmul.mubr.bf16.vlgmr.msra.gmra.mrb[0].mxu0 %v385_v10  ;;  %356 = vmatmul.mubr.bf16.vlgmr.msra.gmra.mrb[0].mxu1 %v386_v11 }
  0xf5   :  { %v353_v22 = vpop.f32.mrb[0].mxu0  ;;  %v357_v24 = vpop.f32.mrb[0].mxu1 }
  0xf6   :  { %v163_v28 = vadd.f32 %v353_v22, %v47_v18  ;;  %v179_v29 = vadd.f32 %v357_v24, %v47_v18  ;;  %v154_v30 = vpop.f32.mrb[1].mxu0  ;;  %v170_v31 = vpop.f32.mrb[1].mxu1 }
  0xf7   :  { %v155_v34 = vadd.f32 %v154_v30, %v47_v18  ;;  %v171_v35 = vadd.f32 %v170_v31, %v47_v18  ;;  %v354_v36 = vpop.f32.mrb[2].mxu0  ;;  %v358_v37 = vpop.f32.mrb[2].mxu1 }
  0xf8   :  { %v166_v40 = vadd.f32 %v354_v36, %v47_v18  ;;  %v182_v41 = vadd.f32 %v358_v37, %v47_v18  ;;  %v157_v42 = vpop.f32.mrb[3].mxu0  ;;  %v173_v43 = vpop.f32.mrb[3].mxu1  ;;  %v203_v46 = vadd.f32 %v287_v23, %v163_v28  ;;  %v207_v47 = vadd.f32 %v295_v25, %v179_v29 }
  0xf9   :  { %v158_v44 = vadd.f32 %v157_v42, %v47_v18  ;;  %v174_v45 = vadd.f32 %v173_v43, %v47_v18  ;;  %v201_v50 = vadd.f32 %v283_v26, %v155_v34  ;;  %v205_v51 = vadd.f32 %v291_v27, %v171_v35 }
  0xfa   :  { %v204_v48 = vadd.f32 %v288_v32, %v166_v40  ;;  %v208_v49 = vadd.f32 %v296_v33, %v182_v41 }
  0xfb   :  { %v202_v52 = vadd.f32 %v284_v38, %v158_v44  ;;  %v206_v53 = vadd.f32 %v292_v39, %v174_v45 }
  0xfc   :  { %v305_v54 = vpack.c.bf16 %v204_v48, %v203_v46  ;;  %v315_v55 = vpack.c.bf16 %v208_v49, %v207_v47 }
  0xfd   :  { %v300_v56 = vpack.c.bf16 %v202_v52, %v201_v50  ;;  %v310_v57 = vpack.c.bf16 %v206_v53, %v205_v51 }
  0xfe   :  { %320 = vst [vmem:[%s479_s4 + $0x8] sm:$0xff] %v305_v54   ;;  %322 = vst [vmem:[%s479_s4 + $0x18] sm:$0xff] %v315_v55  }
  0xff   :  { %301 = vst [vmem:[%s479_s4] sm:$0xff] %v300_v56   ;;  %321 = vst [vmem:[%s479_s4 + $0x10] sm:$0xff] %v310_v57  }

// kernel: internvl_forward.17
= control target key start
LH: loop header
LB: loop body
LE: loop exit
PB: predicated region body
PF: predicated region fallthrough
CT: control target
= control target key end

     0   :  { %s903_s6 = smov 0   ;;  %s1007_s0 = inlined_call_operand.vmem [shape: bf16[4,16,384], index: 0, kind: input, shape index: {}]   ;;  %s1008_s1 = inlined_call_operand.vmem [shape: bf16[4,16,128], index: 1, kind: output, shape index: {}]  }
   0x1 LB: > { %s720_s7 = sadd.s32 4294967295, %s886_s6   ;;  %p724_p0 = scmp.ge.s32.totalorder %s886_s6, 1  ;;  %s886_s6 = sphi %s903_s6, %s11_s6  }
   0x2   : > { %p87_p1 = scmp.lt.s32.totalorder %s886_s6, 5 }
   0x4   : > { %p88_p2 = pnand %p724_p0, %p87_p1 }
   0x5   : > { %p107_p3 = scmp.lt.s32.totalorder (!%p88_p2), %s720_s7, 3  ;;  %v888_v0 = vmov (!%p88_p2), 0.0   ;;  %vm889_vm0 = vmmov (!%p88_p2), 0   ;;  %vm130_vm1 = vcmask (!%p88_p2), 261120   ;;  %vm180_vm2 = vcmask (!%p88_p2), 130048   ;;  %s890_s12 = smov (!%p88_p2), 96  }
   0x6   : > { %91 = sbr.rel (%p88_p2) target bundleno = 1500 (0x5dc), region = 24  ;;  %767 = vmatprep.subr.bf16.mxu0 (!%p88_p2), %v888_v0  ;;  %769 = vmatprep.mubr.msk.bf16.mxu0 (!%p88_p2), %vm889_vm0, %v888_v0  ;;  %s891_s13 = smov (!%p88_p2), 32   ;;  %vm649_vm3 = vcmask (!%p88_p2), 523264   ;;  %vm652_vm4 = vcmask (!%p88_p2), 785408  }
   0x7   : > { %773 = vmatprep.subr.bf16.mxu1 (!%p88_p2), %v888_v0  ;;  %775 = vmatprep.mubr.msk.bf16.mxu1 (!%p88_p2), %vm889_vm0, %v888_v0  ;;  %s892_s14 = smov (!%p88_p2), 64  }
   0xd   : > { %s1010_s7 = smov (!%p107_p3, %s720_s7), 3 }
   0xe   : > { %s815_s8 = smul.u32 24, %s1010_s7  ;;  %s743_s15 = sshll.u32 %s1010_s7, 3 }
   0xf   : > { %s116_s18 = scalar_lea.vmem %s1008_s1, %s743_s15 }
  0x10   : > { %s923_s11 = scalar_lea.vmem %s1007_s0, %s815_s8 }
  0x11   : > { %v844_v1 = vld [vmem:[%s923_s11 + $0x4] ss:$12 sps:$4 sm:$0xff]   ;;  %v846_v3 = vld [vmem:[%s923_s11] ss:$12 sps:$4 sm:$0xff]   ;;  %v939_v22 = vld [vmem:[%s923_s11 + $0x8] ss:$12 sps:$4 sm:$0xff]  }
  0x12   : > { %v135_v2 = vsel %vm130_vm1, %v844_v1, 0  ;;  %774 = vmatpush3.bf16.msra.mxu1 %v939_v22 }
  0x13   : > { %768 = vmatpush3.bf16.xpose.msra.mxu0 %v135_v2  ;;  %779 = vmatprep.subr.bf16.mxu1 %v888_v0 }
  0x14   : > { %785 = vmatprep.subr.bf16.mxu0 %v888_v0 }
  0x1a   : > { %770 = vmatmul.mubr.msk.bf16.vlgmr.msra.gmra.mrb[0].mxu0 %vm130_vm1, %v846_v3 }
  0x1b   : > { %787 = vmatprep.mubr.msk.bf16.mxu0 %vm889_vm0, %v888_v0 }
  0xed   : > { %v171_v4 = vpop.f32.mrb[0].mxu0 }
  0xee   : > { %v178_v5 = vmul.f32 0.17677669, %v171_v4  ;;  %v771_v6 = vpop.f32.mrb[1].mxu0 }
  0xef   : > { %v174_v7 = vpop.f32.mrb[2].mxu0 }
  0xf0   : > { %v179_v8 = vmul.f32 0.17677669, %v174_v7  ;;  %v772_v9 = vpop.f32.mrb[3].mxu0  ;;  %v181_v10 = vsel %vm180_vm2, %v178_v5, -inf }
  0xf1   : > { %182 = vmax.xlane.f32.xlu0 %v181_v10 }
  0xf2   : > { %v184_v11 = vsel %vm180_vm2, %v179_v8, -inf }
  0xf5   : > { %185 = vmax.xlane.f32.xlu0 %v184_v11 }
 0x10b   : > { %256 = vrot.lane.b32.xlu0 %v844_v1, %s890_s12 }
 0x10f   : > { %502 = vrot.lane.b32.xlu0 %v844_v1, %s891_s13 }
 0x17e   : > { %v183_v12 = vpop.xlane.xlu0 %182 }
 0x17f   : > { %v187_v13 = vsub.f32 %v178_v5, %v183_v12 }
 0x181   : > { %v189_v14 = vmul.f32 1.442695, %v187_v13 }
 0x182   : > { %v186_v15 = vpop.xlane.xlu0 %185 }
 0x183   : > { %848 = vpow2.f32 %v189_v14  ;;  %v188_v16 = vsub.f32 %v179_v8, %v186_v15 }
 0x185   : > { %v191_v17 = vmul.f32 1.442695, %v188_v16 }
 0x186   : > { %v257_v27 = vpop.permute.xlu0 %256 }
 0x187   : > { %850 = vpow2.f32 %v191_v17  ;;  %v262_v31 = vsel %vm130_vm1, %v257_v27, 0 }
 0x18a   : > { %v503_v35 = vpop.permute.xlu0 %502 }
 0x18b   : > { %v508_v37 = vsel %vm130_vm1, %v503_v35, 0 }
 0x18d   : > { %v849_v18 = vpop.eup %848 }
 0x18e   : > { %v193_v19 = vsel %vm180_vm2, %v849_v18, 0.0 }
 0x18f   : > { %194 = vadd.xlane.f32.xlu1 %v193_v19 }
 0x191   : > { %v851_v20 = vpop.eup %850 }
 0x192   : > { %v196_v21 = vsel %vm180_vm2, %v851_v20, 0.0 }
 0x193   : > { %197 = vadd.xlane.f32.xlu1 %v196_v21 }
 0x1a4   : > { %254 = vrot.lane.b32.xlu1 %v846_v3, %s890_s12 }
 0x1a8   : > { %379 = vrot.lane.b32.xlu1 %v844_v1, %s892_s14 }
 0x1ac   : > { %377 = vrot.lane.b32.xlu1 %v846_v3, %s892_s14 }
 0x1b0   : > { %500 = vrot.lane.b32.xlu1 %v846_v3, %s891_s13 }
 0x21c   : > { %v195_v23 = vpop.xlane.xlu1 %194 }
 0x21d   : > { %852 = vrcp.f32 %v195_v23 }
 0x220   : > { %v198_v24 = vpop.xlane.xlu1 %197 }
 0x221   : > { %854 = vrcp.f32 %v198_v24 }
 0x224   : > { %v255_v30 = vpop.permute.xlu1 %254 }
 0x227   : > { %v853_v25 = vpop.eup %852 }
 0x228   : > { %v201_v28 = vmul.f32 %v853_v25, %v849_v18  ;;  %v380_v33 = vpop.permute.xlu1 %379 }
 0x229   : > { %v385_v34 = vsel %vm130_vm1, %v380_v33, 0 }
 0x22b   : > { %v855_v26 = vpop.eup %854 }
 0x22c   : > { %v202_v29 = vmul.f32 %v855_v26, %v851_v20  ;;  %v378_v36 = vpop.permute.xlu1 %377 }
 0x22e   : > { %v203_v32 = vpack.c.bf16 %v202_v29, %v201_v28 }
 0x230   : > { %776 = vmatmul.mubr.msk.bf16.vlgmr.msra.gmra.mrb[0].mxu1 %vm180_vm2, %v203_v32  ;;  %v501_v38 = vpop.permute.xlu1 %500 }
 0x231   : > { %780 = vmatpush3.bf16.xpose.msra.mxu1 %v262_v31  ;;  %781 = vmatprep.mubr.msk.bf16.mxu1 %vm889_vm0, %v888_v0 }
 0x232   : > { %791 = vmatprep.subr.bf16.mxu1 %v888_v0 }
 0x238   : > { %782 = vmatmul.mubr.msk.bf16.vlgmr.msra.gmra.mrb[4].mxu1 %vm130_vm1, %v255_v30 }
 0x239   : > { %792 = vmatpush3.bf16.xpose.msra.mxu1 %v385_v34  ;;  %793 = vmatprep.mubr.msk.bf16.mxu1 %vm889_vm0, %v888_v0 }
 0x23a   : > { %803 = vmatprep.subr.bf16.mxu1 %v888_v0 }
 0x240   : > { %794 = vmatmul.mubr.msk.bf16.vlgmr.msra.gmra.mrb[8].mxu1 %vm130_vm1, %v378_v36 }
 0x241   : > { %804 = vmatpush3.bf16.xpose.msra.mxu1 %v508_v37  ;;  %805 = vmatprep.mubr.msk.bf16.mxu1 %vm889_vm0, %v888_v0 }
 0x248   : > { %806 = vmatmul.mubr.msk.bf16.vlgmr.msra.gmra.mrb[12].mxu1 %vm130_vm1, %v501_v38 }
 0x303   : > { %v962_v39 = vpop.f32.mrb[0].mxu1 }
 0x304   : > { %v777_v40 = vpop.f32.mrb[1].mxu1 }
 0x305   : > { %v964_v41 = vpop.f32.mrb[2].mxu1 }
 0x306   : > { %v778_v42 = vpop.f32.mrb[3].mxu1 }
 0x30b   : > { %v298_v43 = vpop.f32.mrb[4].mxu1 }
 0x30c   : > { %v305_v44 = vmul.f32 0.17677669, %v298_v43  ;;  %v783_v45 = vpop.f32.mrb[5].mxu1 }
 0x30d   : > { %v301_v46 = vpop.f32.mrb[6].mxu1 }
 0x30e   : > { %v306_v47 = vmul.f32 0.17677669, %v301_v46  ;;  %v784_v48 = vpop.f32.mrb[7].mxu1  ;;  %v307_v49 = vsel %vm180_vm2, %v305_v44, -inf }
 0x30f   : > { %308 = vmax.xlane.f32.xlu0 %v307_v49 }
 0x310   : > { %v310_v50 = vsel %vm180_vm2, %v306_v47, -inf }
 0x311   : > { %311 = vmax.xlane.f32.xlu1 %v310_v50 }
 0x313   : > { %v421_v51 = vpop.f32.mrb[8].mxu1 }
 0x314   : > { %v428_v52 = vmul.f32 0.17677669, %v421_v51  ;;  %v795_v53 = vpop.f32.mrb[9].mxu1 }
 0x315   : > { %v424_v54 = vpop.f32.mrb[10].mxu1 }
 0x316   : > { %v429_v55 = vmul.f32 0.17677669, %v424_v54  ;;  %v796_v56 = vpop.f32.mrb[11].mxu1  ;;  %v430_v57 = vsel %vm180_vm2, %v428_v52, -inf }
 0x317   : > { %431 = vmax.xlane.f32.xlu0 %v430_v57 }
 0x318   : > { %v433_v58 = vsel %vm180_vm2, %v429_v55, -inf }
 0x31b   : > { %434 = vmax.xlane.f32.xlu0 %v433_v58  ;;  %v544_v59 = vpop.f32.mrb[12].mxu1 }
 0x31c   : > { %v551_v60 = vmul.f32 0.17677669, %v544_v59  ;;  %v807_v61 = vpop.f32.mrb[13].mxu1 }
 0x31d   : > { %v547_v62 = vpop.f32.mrb[14].mxu1 }
 0x31e   : > { %v552_v63 = vmul.f32 0.17677669, %v547_v62  ;;  %v553_v1 = vsel %vm180_vm2, %v551_v60, -inf  ;;  %v808_v2 = vpop.f32.mrb[15].mxu1 }
 0x31f   : > { %554 = vmax.xlane.f32.xlu0 %v553_v1 }
 0x320   : > { %v556_v3 = vsel %vm180_vm2, %v552_v63, -inf }
 0x321   : > { %557 = vmax.xlane.f32.xlu1 %v556_v3 }
 0x39c   : > { %v309_v4 = vpop.xlane.xlu0 %308 }
 0x39d   : > { %v313_v5 = vsub.f32 %v305_v44, %v309_v4 }
 0x39e   : > { %v312_v6 = vpop.xlane.xlu1 %311 }
 0x39f   : > { %v315_v7 = vmul.f32 1.442695, %v313_v5  ;;  %v314_v8 = vsub.f32 %v306_v47, %v312_v6 }
 0x3a1   : > { %856 = vpow2.f32 %v315_v7  ;;  %v317_v9 = vmul.f32 1.442695, %v314_v8 }
 0x3a3   : > { %858 = vpow2.f32 %v317_v9 }
 0x3a4   : > { %v432_v10 = vpop.xlane.xlu0 %431 }
 0x3a5   : > { %v436_v11 = vsub.f32 %v428_v52, %v432_v10 }
 0x3a7   : > { %v438_v12 = vmul.f32 1.442695, %v436_v11 }
 0x3a8   : > { %v435_v13 = vpop.xlane.xlu0 %434 }
 0x3a9   : > { %860 = vpow2.f32 %v438_v12  ;;  %v437_v14 = vsub.f32 %v429_v55, %v435_v13 }
 0x3ab   : > { %v857_v15 = vpop.eup %856  ;;  %v440_v16 = vmul.f32 1.442695, %v437_v14 }
 0x3ac   : > { %v555_v17 = vpop.xlane.xlu0 %554  ;;  %v319_v18 = vsel %vm180_vm2, %v857_v15, 0.0 }
 0x3ad   : > { %v859_v19 = vpop.eup %858  ;;  %862 = vpow2.f32 %v440_v16  ;;  %v559_v20 = vsub.f32 %v551_v60, %v555_v17  ;;  %320 = vadd.xlane.f32.xlu0 %v319_v18 }
 0x3ae   : > { %v322_v21 = vsel %vm180_vm2, %v859_v19, 0.0  ;;  %v558_v30 = vpop.xlane.xlu1 %557 }
 0x3af   : > { %v561_v23 = vmul.f32 1.442695, %v559_v20  ;;  %323 = vadd.xlane.f32.xlu1 %v322_v21  ;;  %v560_v31 = vsub.f32 %v552_v63, %v558_v30 }
 0x3b1   : > { %864 = vpow2.f32 %v561_v23  ;;  %v563_v32 = vmul.f32 1.442695, %v560_v31 }
 0x3b3   : > { %v861_v24 = vpop.eup %860  ;;  %866 = vpow2.f32 %v563_v32 }
 0x3b4   : > { %v442_v25 = vsel %vm180_vm2, %v861_v24, 0.0 }
 0x3b5   : > { %443 = vadd.xlane.f32.xlu0 %v442_v25 }
 0x3b7   : > { %v863_v26 = vpop.eup %862 }
 0x3b8   : > { %v445_v27 = vsel %vm180_vm2, %v863_v26, 0.0 }
 0x3b9   : > { %446 = vadd.xlane.f32.xlu1 %v445_v27 }
 0x3bb   : > { %v865_v28 = vpop.eup %864 }
 0x3bc   : > { %v565_v29 = vsel %vm180_vm2, %v865_v28, 0.0 }
 0x3bd   : > { %566 = vadd.xlane.f32.xlu0 %v565_v29  ;;  %v867_v33 = vpop.eup %866 }
 0x3be   : > { %v568_v34 = vsel %vm180_vm2, %v867_v33, 0.0 }
 0x3ca   : > { %453 = vrot.lane.b32.xlu1 %v939_v22, %s892_s14 }
 0x3d3   : > { %330 = vrot.lane.b32.xlu0 %v939_v22, %s890_s12 }
 0x3ee   : > { %569 = vadd.xlane.f32.xlu1 %v568_v34 }
 0x3ff   : > { %576 = vrot.lane.b32.xlu1 %v939_v22, %s891_s13 }
 0x43a   : > { %v321_v36 = vpop.xlane.xlu0 %320 }
 0x43c   : > { %v324_v35 = vpop.xlane.xlu1 %323 }
 0x43d   : > { %868 = vrcp.f32 %v324_v35 }
 0x43e   : > { %870 = vrcp.f32 %v321_v36 }
 0x442   : > { %v444_v37 = vpop.xlane.xlu0 %443 }
 0x446   : > { %v447_v38 = vpop.xlane.xlu1 %446 }
 0x447   : > { %872 = vrcp.f32 %v447_v38  ;;  %v869_v40 = vpop.eup %868 }
 0x448   : > { %874 = vrcp.f32 %v444_v37  ;;  %v871_v43 = vpop.eup %870  ;;  %v328_v44 = vmul.f32 %v869_v40, %v859_v19 }
 0x449   : > { %v327_v45 = vmul.f32 %v871_v43, %v857_v15 }
 0x44a   : > { %v567_v42 = vpop.xlane.xlu0 %566  ;;  %v454_v22 = vpop.permute.xlu1 %453 }
 0x44b   : > { %v329_v47 = vpack.c.bf16 %v328_v44, %v327_v45  ;;  %876 = vrcp.f32 %v567_v42 }
 0x44e   : > { %v331_v46 = vpop.permute.xlu0 %330 }
 0x44f   : > { %786 = vmatpush3.bf16.msra.mxu0 %v331_v46 }
 0x450   : > { %797 = vmatprep.subr.bf16.mxu0 %v888_v0 }
 0x451   : > { %v873_v48 = vpop.eup %872 }
 0x452   : > { %788 = vmatmul.mubr.msk.bf16.vlgmr.msra.gmra.mrb[4].mxu0 %vm180_vm2, %v329_v47  ;;  %v875_v49 = vpop.eup %874  ;;  %v451_v50 = vmul.f32 %v873_v48, %v863_v26 }
 0x453   : > { %798 = vmatpush3.bf16.msra.mxu0 %v454_v22  ;;  %799 = vmatprep.mubr.msk.bf16.mxu0 %vm889_vm0, %v888_v0  ;;  %v450_v51 = vmul.f32 %v875_v49, %v861_v24 }
 0x454   : > { %809 = vmatprep.subr.bf16.mxu0 %v888_v0 }
 0x455   : > { %v452_v52 = vpack.c.bf16 %v451_v50, %v450_v51  ;;  %v877_v55 = vpop.eup %876 }
 0x456   : > { %v573_v57 = vmul.f32 %v877_v55, %v865_v28 }
 0x45a   : > { %800 = vmatmul.mubr.msk.bf16.vlgmr.msra.gmra.mrb[8].mxu0 %vm180_vm2, %v452_v52 }
 0x45b   : > { %811 = vmatprep.mubr.msk.bf16.mxu0 %vm889_vm0, %v888_v0 }
 0x47b   : > { %v570_v53 = vpop.xlane.xlu1 %569 }
 0x47c   : > { %878 = vrcp.f32 %v570_v53 }
 0x47f   : > { %v577_v54 = vpop.permute.xlu1 %576 }
 0x480   : > { %810 = vmatpush3.bf16.msra.mxu0 %v577_v54 }
 0x486   : > { %v879_v56 = vpop.eup %878 }
 0x487   : > { %v574_v58 = vmul.f32 %v879_v56, %v867_v33 }
 0x489   : > { %v575_v59 = vpack.c.bf16 %v574_v58, %v573_v57 }
 0x48b   : > { %812 = vmatmul.mubr.msk.bf16.vlgmr.msra.gmra.mrb[12].mxu0 %vm180_vm2, %v575_v59 }
 0x525   : > { %v370_v60 = vpop.f32.mrb[4].mxu0 }
 0x526   : > { %v789_v61 = vpop.f32.mrb[5].mxu0 }
 0x527   : > { %v373_v62 = vpop.f32.mrb[6].mxu0 }
 0x528   : > { %v829_v63 = vpack.i.bf16 %v373_v62, %v370_v60  ;;  %v790_v1 = vpop.f32.mrb[7].mxu0 }
 0x52a   : > { %830 = vrot.lane.b32.xlu1 %v829_v63, %s891_s13 }
 0x52d   : > { %v493_v0 = vpop.f32.mrb[8].mxu0 }
 0x52e   : > { %v801_v2 = vpop.f32.mrb[9].mxu0 }
 0x52f   : > { %v496_v3 = vpop.f32.mrb[10].mxu0 }
 0x530   : > { %v834_v4 = vpack.i.bf16 %v496_v3, %v493_v0  ;;  %v802_v5 = vpop.f32.mrb[11].mxu0 }
 0x532   : > { %835 = vrot.lane.b32.xlu0 %v834_v4, %s892_s14 }
 0x55e   : > { %v616_v6 = vpop.f32.mrb[12].mxu0 }
 0x55f   : > { %v813_v7 = vpop.f32.mrb[13].mxu0 }
 0x560   : > { %v619_v8 = vpop.f32.mrb[14].mxu0 }
 0x561   : > { %v839_v9 = vpack.i.bf16 %v619_v8, %v616_v6  ;;  %v814_v10 = vpop.f32.mrb[15].mxu0 }
 0x563   : > { %840 = vrot.lane.b32.xlu1 %v839_v9, %s890_s12 }
 0x59c   : > { %v831_v11 = vpop.permute.xlu1 %830 }
 0x59d   : > { %v833_v13 = vunpack.i.h.bf16 %v831_v11  ;;  %v832_v14 = vunpack.i.l.bf16 %v831_v11 }
 0x59f   : > { %v648_v18 = vsel %vm130_vm1, %v964_v41, %v833_v13  ;;  %v647_v19 = vsel %vm130_vm1, %v962_v39, %v832_v14 }
 0x5a4   : > { %v836_v12 = vpop.permute.xlu0 %835 }
 0x5a5   : > { %v838_v15 = vunpack.i.h.bf16 %v836_v12  ;;  %v837_v16 = vunpack.i.l.bf16 %v836_v12 }
 0x5a7   : > { %v651_v23 = vsel %vm649_vm3, %v648_v18, %v838_v15  ;;  %v650_v24 = vsel %vm649_vm3, %v647_v19, %v837_v16 }
 0x5d5   : > { %v841_v17 = vpop.permute.xlu1 %840 }
 0x5d6   : > { %v843_v20 = vunpack.i.h.bf16 %v841_v17  ;;  %v842_v21 = vunpack.i.l.bf16 %v841_v17 }
 0x5d8   : > { %v654_v25 = vsel %vm652_vm4, %v651_v23, %v843_v20  ;;  %v653_v26 = vsel %vm652_vm4, %v650_v24, %v842_v21 }
 0x5d9   : > { %v749_v27 = vpack.c.bf16 %v654_v25, %v653_v26 }
 0x5db   : > { %750 = vst [vmem:[%s116_s18] sm:$0xff] %v749_v27  }
 0x5dc PF: > { %s11_s6 = sadd.s32 1, %s886_s6  }
 0x5dd   : > { %p8_p4 = scmp.ge.s32.totalorder %s11_s6, 6  }
 0x5df   :  { %10 = sbr.rel (!%p8_p4) target bundleno = 1 (0x1), region = 54 }

// kernel: internvl_forward.19
= control target key start
LH: loop header
LB: loop body
LE: loop exit
PB: predicated region body
PF: predicated region fallthrough
CT: control target
= control target key end

     0   :  { %s2425_s0 = inlined_call_operand.vmem [shape: bf16[64,128], index: 0, kind: input, shape index: {}]   ;;  %s2426_s3 = inlined_call_operand.vmem [shape: bf16[128,512], index: 3, kind: input, shape index: {}]   ;;  %s2427_s1 = inlined_call_operand.vmem [shape: bf16[1,128], index: 1, kind: input, shape index: {}]   ;;  %s2428_s2 = inlined_call_operand.vmem [shape: bf16[1,128], index: 2, kind: input, shape index: {}]   ;;  %s2429_s5 = inlined_call_operand.vmem [shape: bf16[512,128], index: 5, kind: input, shape index: {}]   ;;  %s2430_s4 = inlined_call_operand.vmem [shape: bf16[1,512], index: 4, kind: input, shape index: {}]   ;;  %s2431_s6 = inlined_call_operand.vmem [shape: bf16[1,128], index: 6, kind: input, shape index: {}]   ;;  %s2432_s7 = inlined_call_operand.vmem [shape: bf16[64,128], index: 7, kind: output, shape index: {}]  }
   0x1   :  { %v1370_v0 = vld [vmem:[%s2425_s0] sm:$0xff]   ;;  %v1405_v1 = vld [vmem:[%s2425_s0 + $0x8] sm:$0xff]   ;;  %v1406_v6 = vld [vmem:[%s2425_s0 + $0x10] sm:$0xff]  }
   0x2   :  { %v1699_v2 = vunpack.c.l.bf16 %v1370_v0  ;;  %v1701_v3 = vunpack.c.l.bf16 %v1405_v1  ;;  %v1705_v4 = vunpack.c.h.bf16 %v1370_v0  ;;  %v1707_v5 = vunpack.c.h.bf16 %v1405_v1  ;;  %v1407_v9 = vld [vmem:[%s2425_s0 + $0x18] sm:$0xff]   ;;  %v1492_v12 = vld [vmem:[%s2426_s3 + $0x4] ss:$16 sps:$4 sm:$0xff]   ;;  %v1496_v14 = vld [vmem:[%s2426_s3] ss:$16 sps:$4 sm:$0xff]  }
   0x3   :  { %v1714_v7 = vunpack.c.l.bf16 %v1406_v6  ;;  %v1716_v8 = vunpack.c.h.bf16 %v1406_v6  ;;  %v1723_v10 = vunpack.c.l.bf16 %v1407_v9  ;;  %v1725_v11 = vunpack.c.h.bf16 %v1407_v9  ;;  %v1494_v13 = vld [vmem:[%s2426_s3 + $0xc] ss:$16 sps:$4 sm:$0xff]   ;;  %395 = vmatprep.subr.bf16.mxu0 %v1492_v12  ;;  %v1497_v15 = vld [vmem:[%s2426_s3 + $0x8] ss:$16 sps:$4 sm:$0xff]   ;;  %v1498_v16 = vld [vmem:[%s2426_s3 + $0x24] ss:$16 sps:$4 sm:$0xff]  }
   0x4   :  { %2445 = vst [vmem:[#allocation2_spill] sm:$0xff] %v1699_v2  ;;  %2446 = vst [vmem:[#allocation3_spill] sm:$0xff] %v1701_v3  ;;  %47 = vadd.xlane.f32.xlu0 %v1699_v2  ;;  %51 = vadd.xlane.f32.xlu1 %v1701_v3  ;;  %v1500_v17 = vld [vmem:[%s2426_s3 + $0x2c] ss:$16 sps:$4 sm:$0xff]   ;;  %v1502_v50 = vld [vmem:[%s2426_s3 + $0x20] ss:$16 sps:$4 sm:$0xff]  }
   0x5   :  { %2447 = vst [vmem:[#allocation4_spill] sm:$0xff] %v1705_v4  ;;  %2448 = vst [vmem:[#allocation5_spill] sm:$0xff] %v1707_v5  ;;  %468 = vmatprep.subr.bf16.mxu1 %v1494_v13  ;;  %396 = vmatpush1.bf16.msra.mxu0 %v1496_v14  ;;  %v1503_v51 = vld [vmem:[%s2426_s3 + $0x28] ss:$16 sps:$4 sm:$0xff]   ;;  %v1504_v52 = vld [vmem:[%s2426_s3 + $0x44] ss:$16 sps:$4 sm:$0xff]  }
   0x6   :  { %2449 = vst [vmem:[#allocation6_spill] sm:$0xff] %v1714_v7  ;;  %2450 = vst [vmem:[#allocation7_spill] sm:$0xff] %v1716_v8  ;;  %469 = vmatpush1.bf16.msra.mxu1 %v1497_v15  ;;  %397 = vmatprep.subr.bf16.mxu0 %v1498_v16  ;;  %v1506_v53 = vld [vmem:[%s2426_s3 + $0x4c] ss:$16 sps:$4 sm:$0xff]   ;;  %v1508_v54 = vld [vmem:[%s2426_s3 + $0x40] ss:$16 sps:$4 sm:$0xff]  }
   0x7   :  { %2451 = vst [vmem:[#allocation8_spill] sm:$0xff] %v1723_v10  ;;  %2452 = vst [vmem:[#allocation9_spill] sm:$0xff] %v1725_v11  ;;  %470 = vmatprep.subr.bf16.mxu1 %v1500_v17  ;;  %v1509_v55 = vld [vmem:[%s2426_s3 + $0x48] ss:$16 sps:$4 sm:$0xff]   ;;  %v1510_v56 = vld [vmem:[%s2426_s3 + $0x64] ss:$16 sps:$4 sm:$0xff]  }
   0x8   :  { %49 = vadd.xlane.f32.xlu0 %v1705_v4  ;;  %53 = vadd.xlane.f32.xlu1 %v1707_v5  ;;  %v1512_v57 = vld [vmem:[%s2426_s3 + $0x6c] ss:$16 sps:$4 sm:$0xff]   ;;  %v1514_v58 = vld [vmem:[%s2426_s3 + $0x60] ss:$16 sps:$4 sm:$0xff]   ;;  %v1515_v59 = vld [vmem:[%s2426_s3 + $0x68] ss:$16 sps:$4 sm:$0xff]  }
   0x9   :  { %398 = vmatpush1.bf16.msra.mxu0 %v1502_v50  ;;  %v1516_v60 = vld [vmem:[%s2426_s3 + $0x84] ss:$16 sps:$4 sm:$0xff]   ;;  %v1518_v61 = vld [vmem:[%s2426_s3 + $0x8c] ss:$16 sps:$4 sm:$0xff]   ;;  %v1520_v62 = vld [vmem:[%s2426_s3 + $0x80] ss:$16 sps:$4 sm:$0xff]  }
   0xa   :  { %471 = vmatpush1.bf16.msra.mxu1 %v1503_v51  ;;  %399 = vmatprep.subr.bf16.mxu0 %v1504_v52  ;;  %v1521_v63 = vld [vmem:[%s2426_s3 + $0x88] ss:$16 sps:$4 sm:$0xff]   ;;  %v1522_v0 = vld [vmem:[%s2426_s3 + $0xa4] ss:$16 sps:$4 sm:$0xff]   ;;  %v1524_v1 = vld [vmem:[%s2426_s3 + $0xac] ss:$16 sps:$4 sm:$0xff]  }
   0xb   :  { %472 = vmatprep.subr.bf16.mxu1 %v1506_v53  ;;  %v1526_v6 = vld [vmem:[%s2426_s3 + $0xa0] ss:$16 sps:$4 sm:$0xff]   ;;  %v1527_v9 = vld [vmem:[%s2426_s3 + $0xa8] ss:$16 sps:$4 sm:$0xff]   ;;  %v1528_v12 = vld [vmem:[%s2426_s3 + $0xc4] ss:$16 sps:$4 sm:$0xff]  }
   0xc   :  { %55 = vadd.xlane.f32.xlu0 %v1714_v7  ;;  %57 = vadd.xlane.f32.xlu1 %v1716_v8  ;;  %v1530_v13 = vld [vmem:[%s2426_s3 + $0xcc] ss:$16 sps:$4 sm:$0xff]   ;;  %v1532_v14 = vld [vmem:[%s2426_s3 + $0xc0] ss:$16 sps:$4 sm:$0xff]   ;;  %v1533_v15 = vld [vmem:[%s2426_s3 + $0xc8] ss:$16 sps:$4 sm:$0xff]  }
   0xd   :  { %400 = vmatpush1.bf16.msra.mxu0 %v1508_v54  ;;  %v1534_v16 = vld [vmem:[%s2426_s3 + $0xe4] ss:$16 sps:$4 sm:$0xff]   ;;  %v1536_v17 = vld [vmem:[%s2426_s3 + $0xec] ss:$16 sps:$4 sm:$0xff]   ;;  %v45_v50 = vld [vmem:[%s2428_s2] sm:$0x1] }
   0xe   :  { %473 = vmatpush1.bf16.msra.mxu1 %v1509_v55  ;;  %401 = vmatprep.subr.bf16.mxu0 %v1510_v56  ;;  %v46_v56 = vunpack.c.l.bf16 %v45_v50  ;;  %v1546_v50 = vld [vmem:[%s2429_s5 + $0xc8] sm:$0xff]  }
   0xf   :  { %474 = vmatprep.subr.bf16.mxu1 %v1512_v57 }
  0x10   :  { %59 = vadd.xlane.f32.xlu0 %v1723_v10  ;;  %61 = vadd.xlane.f32.xlu1 %v1725_v11 }
  0x11   :  { %402 = vmatpush1.bf16.msra.mxu0 %v1514_v58 }
  0x12   :  { %475 = vmatpush1.bf16.msra.mxu1 %v1515_v59  ;;  %403 = vmatprep.subr.bf16.mxu0 %v1516_v60 }
  0x13   :  { %476 = vmatprep.subr.bf16.mxu1 %v1518_v61 }
  0x15   :  { %404 = vmatpush1.bf16.msra.mxu0 %v1520_v62 }
  0x16   :  { %477 = vmatpush1.bf16.msra.mxu1 %v1521_v63  ;;  %405 = vmatprep.subr.bf16.mxu0 %v1522_v0 }
  0x17   :  { %478 = vmatprep.subr.bf16.mxu1 %v1524_v1 }
  0x19   :  { %406 = vmatpush1.bf16.msra.mxu0 %v1526_v6 }
  0x1a   :  { %479 = vmatpush1.bf16.msra.mxu1 %v1527_v9  ;;  %407 = vmatprep.subr.bf16.mxu0 %v1528_v12 }
  0x1b   :  { %480 = vmatprep.subr.bf16.mxu1 %v1530_v13 }
  0x1d   :  { %408 = vmatpush1.bf16.msra.mxu0 %v1532_v14 }
  0x1e   :  { %481 = vmatpush1.bf16.msra.mxu1 %v1533_v15  ;;  %409 = vmatprep.subr.bf16.mxu0 %v1534_v16 }
  0x1f   :  { %482 = vmatprep.subr.bf16.mxu1 %v1536_v17 }
  0x91   :  { %v48_v18 = vpop.xlane.xlu0 %47  ;;  %v52_v19 = vpop.xlane.xlu1 %51 }
  0x92   :  { %v64_v20 = vmul.f32 0.0078125, %v48_v18  ;;  %v66_v21 = vmul.f32 0.0078125, %v52_v19  ;;  %v1538_v18 = vld [vmem:[%s2426_s3 + $0xe0] ss:$16 sps:$4 sm:$0xff]   ;;  %v1539_v19 = vld [vmem:[%s2426_s3 + $0xe8] ss:$16 sps:$4 sm:$0xff]  }
  0x93   :  { %410 = vmatpush1.bf16.msra.mxu0 %v1538_v18  ;;  %483 = vmatpush1.bf16.msra.mxu1 %v1539_v19 }
  0x94   :  { %v1748_v22 = vsub.f32 %v1699_v2, %v64_v20  ;;  %v1751_v23 = vsub.f32 %v1701_v3, %v66_v21  ;;  %v1652_v20 = vmov 0  }
  0x95   :  { %v50_v24 = vpop.xlane.xlu0 %49  ;;  %v54_v25 = vpop.xlane.xlu1 %53  ;;  %427 = vmatprep.mubr.bf16.mxu0 %v1652_v20  ;;  %500 = vmatprep.mubr.bf16.mxu1 %v1652_v20 }
  0x96   :  { %v65_v26 = vmul.f32 0.0078125, %v50_v24  ;;  %v80_v27 = vmul.f32 %v1748_v22, %v1748_v22  ;;  %v67_v28 = vmul.f32 0.0078125, %v54_v25  ;;  %v82_v31 = vmul.f32 %v1751_v23, %v1751_v23 }
  0x98   :  { %v1756_v29 = vsub.f32 %v1705_v4, %v65_v26  ;;  %88 = vadd.xlane.f32.xlu0 %v80_v27  ;;  %v1759_v30 = vsub.f32 %v1707_v5, %v67_v28  ;;  %v136_v28 = vlaneseq }
  0x99   :  { %v56_v32 = vpop.xlane.xlu0 %55  ;;  %v58_v33 = vpop.xlane.xlu1 %57 }
  0x9a   :  { %v68_v34 = vmul.f32 0.0078125, %v56_v32  ;;  %v81_v35 = vmul.f32 %v1756_v29, %v1756_v29  ;;  %v69_v36 = vmul.f32 0.0078125, %v58_v33  ;;  %v83_v39 = vmul.f32 %v1759_v30, %v1759_v30 }
  0x9c   :  { %v1766_v37 = vsub.f32 %v1714_v7, %v68_v34  ;;  %92 = vadd.xlane.f32.xlu0 %v82_v31  ;;  %90 = vadd.xlane.f32.xlu1 %v81_v35  ;;  %v1769_v38 = vsub.f32 %v1716_v8, %v69_v36 }
  0x9d   :  { %v60_v40 = vpop.xlane.xlu0 %59  ;;  %v62_v41 = vpop.xlane.xlu1 %61 }
  0x9e   :  { %v70_v42 = vmul.f32 0.0078125, %v60_v40  ;;  %v84_v43 = vmul.f32 %v1766_v37, %v1766_v37  ;;  %v71_v44 = vmul.f32 0.0078125, %v62_v41  ;;  %v85_v47 = vmul.f32 %v1769_v38, %v1769_v38  ;;  %v43_v41 = vld [vmem:[%s2427_s1] sm:$0x1] }
  0xa0   :  { %v1776_v45 = vsub.f32 %v1723_v10, %v70_v42  ;;  %94 = vadd.xlane.f32.xlu1 %v83_v39  ;;  %96 = vadd.xlane.f32.xlu0 %v84_v43  ;;  %v1779_v46 = vsub.f32 %v1725_v11, %v71_v44  ;;  %v1867_v39 = vshrl.u32 %v136_v28, 7 }
  0xa2   :  { %v86_v48 = vmul.f32 %v1776_v45, %v1776_v45  ;;  %v87_v49 = vmul.f32 %v1779_v46, %v1779_v46 }
  0xa4   :  { %98 = vadd.xlane.f32.xlu1 %v85_v47  ;;  %100 = vadd.xlane.f32.xlu0 %v86_v48  ;;  %v44_v47 = vunpack.c.l.bf16 %v43_v41  ;;  %v1873_v48 = vsub.s32 0, %v1867_v39 }
  0xa6   :  { %2453 = vst [vmem:[#allocation10_spill] sm:$0xff] %v1873_v48  ;;  %v139_v58 = vrot.slane %v44_v47, %v1873_v48  ;;  %v151_v0 = vrot.slane %v46_v56, %v1873_v48  ;;  %v1544_v47 = vld [vmem:[%s2429_s5 + $0x48] sm:$0xff]   ;;  %v1552_v56 = vld [vmem:[%s2429_s5 + $0x58] sm:$0xff]  }
  0xa8   :  { %102 = vadd.xlane.f32.xlu1 %v87_v49 }
 0x125   :  { %v89_v21 = vpop.xlane.xlu0 %88 }
 0x126   :  { %v104_v24 = vmul.f32 0.0078125, %v89_v21 }
 0x128   :  { %v112_v25 = vadd.f32 1e-06, %v104_v24 }
 0x129   :  { %v91_v26 = vpop.xlane.xlu1 %90  ;;  %v93_v27 = vpop.xlane.xlu0 %92 }
 0x12a   :  { %1572 = vrsqrt.f32 %v112_v25  ;;  %v105_v31 = vmul.f32 0.0078125, %v91_v26  ;;  %v106_v32 = vmul.f32 0.0078125, %v93_v27 }
 0x12c   :  { %v113_v33 = vadd.f32 1e-06, %v105_v31  ;;  %v114_v34 = vadd.f32 1e-06, %v106_v32 }
 0x12d   :  { %v95_v35 = vpop.xlane.xlu1 %94  ;;  %v97_v36 = vpop.xlane.xlu0 %96 }
 0x12e   :  { %1574 = vrsqrt.f32 %v113_v33  ;;  %v107_v40 = vmul.f32 0.0078125, %v95_v35  ;;  %v108_v43 = vmul.f32 0.0078125, %v97_v36 }
 0x12f   :  { %1576 = vrsqrt.f32 %v114_v34 }
 0x130   :  { %v115_v42 = vadd.f32 1e-06, %v107_v40  ;;  %v116_v52 = vadd.f32 1e-06, %v108_v43 }
 0x131   :  { %v99_v44 = vpop.xlane.xlu1 %98  ;;  %v101_v54 = vpop.xlane.xlu0 %100 }
 0x132   :  { %1578 = vrsqrt.f32 %v115_v42  ;;  %v109_v49 = vmul.f32 0.0078125, %v99_v44  ;;  %v110_v61 = vmul.f32 0.0078125, %v101_v54  ;;  %v1542_v44 = vld [vmem:[%s2429_s5 + $0xc0] sm:$0xff]   ;;  %v1549_v54 = vld [vmem:[%s2429_s5 + $0x10] sm:$0xff]  }
 0x133   :  { %1451 = vmatprep.subr.bf16.mxu1 %v1542_v44 }
 0x134   :  { %v1573_v51 = vpop.eup %1572  ;;  %v117_v53 = vadd.f32 1e-06, %v109_v49  ;;  %v118_v13 = vadd.f32 1e-06, %v110_v61  ;;  %v1545_v49 = vld [vmem:[%s2429_s5 + $0x8] sm:$0xff]   ;;  %v1558_v61 = vld [vmem:[%s2429_s5 + $0xe0] sm:$0xff]  }
 0x135   :  { %v103_v55 = vpop.xlane.xlu1 %102  ;;  %v128_v57 = vmul.f32 %v1573_v51, %v1748_v22  ;;  %v1547_v51 = vld [vmem:[%s2429_s5 + $0x88] sm:$0xff]  }
 0x136   :  { %1580 = vrsqrt.f32 %v117_v53  ;;  %v111_v59 = vmul.f32 0.0078125, %v103_v55  ;;  %v1550_v53 = vld [vmem:[%s2429_s5 + $0xd0] sm:$0xff]  }
 0x137   :  { %1582 = vrsqrt.f32 %v116_v52  ;;  %v140_v63 = vmul.f32 %v139_v58, %v128_v57  ;;  %v1548_v52 = vld [vmem:[%s2429_s5 + $0x50] sm:$0xff]   ;;  %v1554_v57 = vld [vmem:[%s2429_s5 + $0xd8] sm:$0xff]  }
 0x138   :  { %v1575_v60 = vpop.eup %1574  ;;  %v119_v6 = vadd.f32 1e-06, %v111_v59  ;;  %v1551_v55 = vld [vmem:[%s2429_s5 + $0x90] sm:$0xff]   ;;  %v1555_v59 = vld [vmem:[%s2429_s5 + $0x98] sm:$0xff]  }
 0x139   :  { %v129_v62 = vmul.f32 %v1575_v60, %v1756_v29  ;;  %v1577_v1 = vpop.eup %1576  ;;  %v152_v14 = vadd.f32 %v151_v0, %v140_v63  ;;  %v1556_v60 = vld [vmem:[%s2429_s5 + $0x60] sm:$0xff]  }
 0x13a   :  { %v130_v22 = vmul.f32 %v1577_v1, %v1751_v23  ;;  %1584 = vrsqrt.f32 %v119_v6  ;;  %v1559_v63 = vld [vmem:[%s2429_s5 + $0xa0] sm:$0xff]   ;;  %v1562_v1 = vld [vmem:[%s2429_s5 + $0xe8] sm:$0xff]  }
 0x13b   :  { %v141_v9 = vmul.f32 %v139_v58, %v129_v62  ;;  %1586 = vrsqrt.f32 %v118_v13  ;;  %v1557_v62 = vld [vmem:[%s2429_s5 + $0x20] sm:$0xff]   ;;  %v1561_v6 = vld [vmem:[%s2429_s5 + $0x28] sm:$0xff]   ;;  %v1566_v13 = vld [vmem:[%s2429_s5 + $0xf0] sm:$0xff]  }
 0x13c   :  { %v1579_v12 = vpop.eup %1578  ;;  %v142_v29 = vmul.f32 %v139_v58, %v130_v22  ;;  %v1568_v22 = vld [vmem:[%s2429_s5 + $0x78] sm:$0xff]  }
 0x13d   :  { %v153_v15 = vadd.f32 %v151_v0, %v141_v9  ;;  %v131_v16 = vmul.f32 %v1579_v12, %v1759_v30  ;;  %v1563_v9 = vld [vmem:[%s2429_s5 + $0xa8] sm:$0xff]   ;;  %v1564_v12 = vld [vmem:[%s2429_s5 + $0x70] sm:$0xff]  }
 0x13e   :  { %v154_v26 = vadd.f32 %v151_v0, %v142_v29 }
 0x13f   :  { %v160_v17 = vpack.c.bf16 %v153_v15, %v152_v14  ;;  %v143_v18 = vmul.f32 %v139_v58, %v131_v16  ;;  %v1565_v14 = vld [vmem:[%s2429_s5 + $0x30] sm:$0xff]   ;;  %v1570_v16 = vld [vmem:[%s2429_s5 + $0xf8] sm:$0xff]  }
 0x140   :  { %v1581_v19 = vpop.eup %1580  ;;  %v1567_v15 = vld [vmem:[%s2429_s5 + $0xb0] sm:$0xff]  }
 0x141   :  { %428 = vmatmul.mubr.bf16.vlgmr.msra.gmra.mrb[0].mxu0 %v160_v17  ;;  %501 = vmatmul.mubr.bf16.vlgmr.msra.gmra.mrb[0].mxu1 %v160_v17  ;;  %v1583_v21 = vpop.eup %1582  ;;  %v155_v24 = vadd.f32 %v151_v0, %v143_v18  ;;  %v133_v25 = vmul.f32 %v1581_v19, %v1769_v38  ;;  %v1569_v17 = vld [vmem:[%s2429_s5 + $0x38] sm:$0xff]   ;;  %v196_v19 = vld [vmem:[%s2430_s4] sm:$0xf] }
 0x142   :  { %437 = vmatprep.mubr.bf16.mxu0 %v1652_v20  ;;  %510 = vmatprep.mubr.bf16.mxu1 %v1652_v20  ;;  %v132_v23 = vmul.f32 %v1583_v21, %v1766_v37  ;;  %v1571_v18 = vld [vmem:[%s2429_s5 + $0xb8] sm:$0xff]   ;;  %v197_v29 = vunpack.c.l.bf16 %v196_v19  ;;  %v209_v21 = vsub.s32 4, %v1867_v39 }
 0x143   :  { %v161_v30 = vpack.c.bf16 %v155_v24, %v154_v26  ;;  %v145_v27 = vmul.f32 %v139_v58, %v133_v25  ;;  %v205_v24 = vsub.s32 2, %v1867_v39  ;;  %v213_v25 = vsub.s32 6, %v1867_v39 }
 0x144   :  { %v1585_v28 = vpop.eup %1584  ;;  %v144_v31 = vmul.f32 %v139_v58, %v132_v23  ;;  %v202_v26 = vrot.slane %v197_v29, %v1873_v48  ;;  %v210_v23 = vrot.slane %v197_v29, %v209_v21 }
 0x145   :  { %v1587_v32 = vpop.eup %1586  ;;  %v157_v33 = vadd.f32 %v151_v0, %v145_v27  ;;  %v135_v34 = vmul.f32 %v1585_v28, %v1779_v46  ;;  %v1540_v46 = vld [vmem:[%s2429_s5 + $0x40] sm:$0xff]   ;;  %v214_v27 = vrot.slane %v197_v29, %v213_v25 }
 0x146   :  { %v156_v35 = vadd.f32 %v151_v0, %v144_v31  ;;  %v134_v38 = vmul.f32 %v1587_v32, %v1776_v45  ;;  %v1541_v45 = vld [vmem:[%s2429_s5] sm:$0xff]   ;;  %1411 = vmatprep.subr.bf16.mxu0 %v1540_v46  ;;  %v1998_v28 = vrot.slane %v202_v26, %v1873_v48  ;;  %v2001_v31 = vrot.slane %v210_v23, %v1873_v48 }
 0x147   :  { %v147_v40 = vmul.f32 %v139_v58, %v135_v34  ;;  %1412 = vmatpush3.bf16.msra.mxu0 %v1541_v45 }
 0x148   :  { %v162_v36 = vpack.c.bf16 %v157_v33, %v156_v35  ;;  %v146_v37 = vmul.f32 %v139_v58, %v134_v38  ;;  %1413 = vmatprep.subr.bf16.mxu0 %v1544_v47  ;;  %v1553_v58 = vld [vmem:[%s2429_s5 + $0x18] sm:$0xff]   ;;  %v2007_v33 = vrot.slane %v214_v27, %v1873_v48 }
 0x149   :  { %438 = vmatmul.mubr.bf16.gmra.mrb[4].mxu0 %v161_v30  ;;  %511 = vmatmul.mubr.bf16.gmra.mrb[4].mxu1 %v161_v30  ;;  %v159_v41 = vadd.f32 %v151_v0, %v147_v40  ;;  %v206_v30 = vrot.slane %v197_v29, %v205_v24 }
 0x14a   :  { %447 = vmatprep.mubr.bf16.mxu0 %v1652_v20  ;;  %520 = vmatprep.mubr.bf16.mxu1 %v1652_v20  ;;  %v158_v42 = vadd.f32 %v151_v0, %v146_v37  ;;  %v1560_v0 = vld [vmem:[%s2429_s5 + $0x68] sm:$0xff]  }
 0x14b   :  { %1414 = vmatpush3.bf16.msra.mxu0 %v1545_v49  ;;  %v2004_v32 = vrot.slane %v206_v30, %v1873_v48 }
 0x14c   :  { %v163_v43 = vpack.c.bf16 %v159_v41, %v158_v42  ;;  %1415 = vmatprep.subr.bf16.mxu0 %v1548_v52 }
 0x14f   :  { %1416 = vmatpush3.bf16.msra.mxu0 %v1549_v54 }
 0x150   :  { %1417 = vmatprep.subr.bf16.mxu0 %v1552_v56 }
 0x151   :  { %448 = vmatmul.mubr.bf16.gmra.mrb[8].mxu0 %v162_v36  ;;  %521 = vmatmul.mubr.bf16.gmra.mrb[8].mxu1 %v162_v36 }
 0x152   :  { %457 = vmatprep.mubr.bf16.mxu0 %v1652_v20  ;;  %530 = vmatprep.mubr.bf16.mxu1 %v1652_v20  ;;  %v1543_v20 = vld [vmem:[%s2429_s5 + $0x80] sm:$0xff]  }
 0x153   :  { %1452 = vmatpush3.bf16.msra.mxu1 %v1543_v20  ;;  %1418 = vmatpush3.bf16.msra.mxu0 %v1553_v58 }
 0x154   :  { %1453 = vmatprep.subr.bf16.mxu1 %v1546_v50  ;;  %1419 = vmatprep.subr.bf16.mxu0 %v1556_v60 }
 0x157   :  { %1454 = vmatpush3.bf16.msra.mxu1 %v1547_v51  ;;  %1420 = vmatpush3.bf16.msra.mxu0 %v1557_v62 }
 0x158   :  { %1455 = vmatprep.subr.bf16.mxu1 %v1550_v53  ;;  %1421 = vmatprep.subr.bf16.mxu0 %v1560_v0 }
 0x159   :  { %458 = vmatmul.mubr.bf16.gmra.mrb[12].mxu0 %v163_v43  ;;  %531 = vmatmul.mubr.bf16.gmra.mrb[12].mxu1 %v163_v43 }
 0x15b   :  { %1456 = vmatpush3.bf16.msra.mxu1 %v1551_v55  ;;  %1422 = vmatpush3.bf16.msra.mxu0 %v1561_v6 }
 0x15c   :  { %1457 = vmatprep.subr.bf16.mxu1 %v1554_v57  ;;  %1423 = vmatprep.subr.bf16.mxu0 %v1564_v12 }
 0x15f   :  { %1458 = vmatpush3.bf16.msra.mxu1 %v1555_v59  ;;  %1424 = vmatpush3.bf16.msra.mxu0 %v1565_v14 }
 0x160   :  { %1459 = vmatprep.subr.bf16.mxu1 %v1558_v61  ;;  %1425 = vmatprep.subr.bf16.mxu0 %v1568_v22 }
 0x163   :  { %1460 = vmatpush3.bf16.msra.mxu1 %v1559_v63  ;;  %1426 = vmatpush3.bf16.msra.mxu0 %v1569_v17 }
 0x164   :  { %1461 = vmatprep.subr.bf16.mxu1 %v1562_v1 }
 0x167   :  { %1462 = vmatpush3.bf16.msra.mxu1 %v1563_v9 }
 0x168   :  { %1463 = vmatprep.subr.bf16.mxu1 %v1566_v13 }
 0x16b   :  { %1464 = vmatpush3.bf16.msra.mxu1 %v1567_v15 }
 0x16c   :  { %1465 = vmatprep.subr.bf16.mxu1 %v1570_v16 }
 0x16f   :  { %1466 = vmatpush3.bf16.msra.mxu1 %v1571_v18 }
 0x214   :  { %v429_v34 = vpop.f32.mrb[0].mxu0  ;;  %v502_v35 = vpop.f32.mrb[0].mxu1 }
 0x215   :  { %v2010_v39 = vadd.f32 %v429_v34, %v1998_v28  ;;  %v2013_v38 = vadd.f32 %v502_v35, %v2001_v31  ;;  %v431_v36 = vpop.f32.mrb[1].mxu0  ;;  %v504_v40 = vpop.f32.mrb[1].mxu1 }
 0x216   :  { %v2016_v37 = vadd.f32 %v431_v36, %v2004_v32  ;;  %v2019_v41 = vadd.f32 %v504_v40, %v2007_v33  ;;  %v433_v42 = vpop.f32.mrb[2].mxu0  ;;  %v506_v43 = vpop.f32.mrb[2].mxu1 }
 0x217   :  { %v541_v46 = vmul.f32 %v2010_v39, %v2010_v39  ;;  %v543_v45 = vmul.f32 %v2013_v38, %v2013_v38  ;;  %v2026_v44 = vadd.f32 %v433_v42, %v1998_v28  ;;  %v2029_v20 = vadd.f32 %v506_v43, %v2001_v31  ;;  %v435_v47 = vpop.f32.mrb[3].mxu0  ;;  %v508_v49 = vpop.f32.mrb[3].mxu1 }
 0x218   :  { %v542_v50 = vmul.f32 %v2016_v37, %v2016_v37  ;;  %v544_v51 = vmul.f32 %v2019_v41, %v2019_v41  ;;  %v2036_v52 = vadd.f32 %v435_v47, %v2004_v32  ;;  %v2039_v53 = vadd.f32 %v508_v49, %v2007_v33 }
 0x219   :  { %v573_v54 = vmul.f32 %v541_v46, %v2010_v39  ;;  %v575_v55 = vmul.f32 %v543_v45, %v2013_v38  ;;  %v545_v56 = vmul.f32 %v2026_v44, %v2026_v44  ;;  %v547_v57 = vmul.f32 %v2029_v20, %v2029_v20 }
 0x21a   :  { %v574_v58 = vmul.f32 %v542_v50, %v2016_v37  ;;  %v576_v59 = vmul.f32 %v544_v51, %v2019_v41  ;;  %v546_v60 = vmul.f32 %v2036_v52, %v2036_v52  ;;  %v548_v61 = vmul.f32 %v2039_v53, %v2039_v53 }
 0x21b   :  { %v605_v62 = vmul.f32 0.044715, %v573_v54  ;;  %v607_v63 = vmul.f32 0.044715, %v575_v55  ;;  %v577_v0 = vmul.f32 %v545_v56, %v2026_v44  ;;  %v579_v1 = vmul.f32 %v547_v57, %v2029_v20 }
 0x21c   :  { %v606_v6 = vmul.f32 0.044715, %v574_v58  ;;  %v608_v9 = vmul.f32 0.044715, %v576_v59  ;;  %v578_v12 = vmul.f32 %v546_v60, %v2036_v52  ;;  %v580_v13 = vmul.f32 %v548_v61, %v2039_v53  ;;  %v439_v14 = vpop.f32.mrb[4].mxu0  ;;  %v512_v15 = vpop.f32.mrb[4].mxu1 }
 0x21d   :  { %v637_v22 = vadd.f32 %v605_v62, %v2010_v39  ;;  %v639_v16 = vadd.f32 %v607_v63, %v2013_v38  ;;  %v609_v17 = vmul.f32 0.044715, %v577_v0  ;;  %v611_v18 = vmul.f32 0.044715, %v579_v1  ;;  %v441_v19 = vpop.f32.mrb[5].mxu0  ;;  %v514_v29 = vpop.f32.mrb[5].mxu1 }
 0x21e   :  { %v638_v21 = vadd.f32 %v606_v6, %v2016_v37  ;;  %v640_v24 = vadd.f32 %v608_v9, %v2019_v41  ;;  %v610_v25 = vmul.f32 0.044715, %v578_v12  ;;  %v612_v26 = vmul.f32 0.044715, %v580_v13  ;;  %v443_v23 = vpop.f32.mrb[6].mxu0  ;;  %v516_v30 = vpop.f32.mrb[6].mxu1 }
 0x21f   :  { %v669_v27 = vmul.f32 0.7978846, %v637_v22  ;;  %v671_v34 = vmul.f32 0.7978846, %v639_v16  ;;  %v641_v35 = vadd.f32 %v609_v17, %v2026_v44  ;;  %v643_v36 = vadd.f32 %v611_v18, %v2029_v20  ;;  %v445_v40 = vpop.f32.mrb[7].mxu0  ;;  %v518_v42 = vpop.f32.mrb[7].mxu1 }
 0x220   :  { %v670_v43 = vmul.f32 0.7978846, %v638_v21  ;;  %v672_v46 = vmul.f32 0.7978846, %v640_v24  ;;  %v642_v45 = vadd.f32 %v610_v25, %v2036_v52  ;;  %v644_v47 = vadd.f32 %v612_v26, %v2039_v53 }
 0x221   :  { %1588 = vtanh.f32 %v669_v27  ;;  %v673_v49 = vmul.f32 0.7978846, %v641_v35  ;;  %v675_v50 = vmul.f32 0.7978846, %v643_v36  ;;  %v2066_v51 = vadd.f32 %v439_v14, %v1998_v28 }
 0x222   :  { %1590 = vtanh.f32 %v671_v34  ;;  %v674_v54 = vmul.f32 0.7978846, %v642_v45  ;;  %v676_v55 = vmul.f32 0.7978846, %v644_v47  ;;  %v2069_v56 = vadd.f32 %v512_v15, %v2001_v31 }
 0x223   :  { %1592 = vtanh.f32 %v670_v43  ;;  %v549_v57 = vmul.f32 %v2066_v51, %v2066_v51  ;;  %v2074_v58 = vadd.f32 %v441_v19, %v2004_v32  ;;  %v2077_v59 = vadd.f32 %v514_v29, %v2007_v33 }
 0x224   :  { %1594 = vtanh.f32 %v672_v46  ;;  %v551_v60 = vmul.f32 %v2069_v56, %v2069_v56  ;;  %v2082_v61 = vadd.f32 %v443_v23, %v1998_v28  ;;  %v2085_v62 = vadd.f32 %v516_v30, %v2001_v31  ;;  %v2087_v63 = vpop.f32.mrb[8].mxu0  ;;  %v2089_v0 = vpop.f32.mrb[8].mxu1 }
 0x225   :  { %1596 = vtanh.f32 %v673_v49  ;;  %v581_v1 = vmul.f32 %v549_v57, %v2066_v51  ;;  %v550_v6 = vmul.f32 %v2074_v58, %v2074_v58  ;;  %v552_v9 = vmul.f32 %v2077_v59, %v2077_v59  ;;  %v2096_v12 = vpop.f32.mrb[9].mxu0  ;;  %v2098_v13 = vpop.f32.mrb[9].mxu1 }
 0x226   :  { %1598 = vtanh.f32 %v675_v50  ;;  %v583_v14 = vmul.f32 %v551_v60, %v2069_v56  ;;  %v553_v15 = vmul.f32 %v2082_v61, %v2082_v61  ;;  %v555_v22 = vmul.f32 %v2085_v62, %v2085_v62  ;;  %v2105_v16 = vpop.f32.mrb[10].mxu0  ;;  %v2107_v17 = vpop.f32.mrb[10].mxu1 }
 0x227   :  { %1600 = vtanh.f32 %v674_v54  ;;  %v613_v18 = vmul.f32 0.044715, %v581_v1  ;;  %v582_v19 = vmul.f32 %v550_v6, %v2074_v58  ;;  %v584_v29 = vmul.f32 %v552_v9, %v2077_v59  ;;  %v2111_v21 = vpop.f32.mrb[11].mxu0  ;;  %v2113_v24 = vpop.f32.mrb[11].mxu1 }
 0x228   :  { %1602 = vtanh.f32 %v676_v55  ;;  %v615_v25 = vmul.f32 0.044715, %v583_v14  ;;  %v585_v26 = vmul.f32 %v553_v15, %v2082_v61  ;;  %v587_v23 = vmul.f32 %v555_v22, %v2085_v62 }
 0x229   :  { %v645_v30 = vadd.f32 %v613_v18, %v2066_v51  ;;  %v614_v27 = vmul.f32 0.044715, %v582_v19  ;;  %v616_v34 = vmul.f32 0.044715, %v584_v29  ;;  %v2119_v35 = vadd.f32 %v445_v40, %v2004_v32 }
 0x22a   :  { %v647_v36 = vadd.f32 %v615_v25, %v2069_v56  ;;  %v617_v43 = vmul.f32 0.044715, %v585_v26  ;;  %v619_v46 = vmul.f32 0.044715, %v587_v23  ;;  %v2123_v45 = vadd.f32 %v518_v42, %v2007_v33 }
 0x22b   :  { %v1589_v47 = vpop.eup %1588  ;;  %v677_v49 = vmul.f32 0.7978846, %v645_v30  ;;  %v646_v50 = vadd.f32 %v614_v27, %v2074_v58  ;;  %v648_v54 = vadd.f32 %v616_v34, %v2077_v59  ;;  %v554_v55 = vmul.f32 %v2119_v35, %v2119_v35 }
 0x22c   :  { %v1591_v57 = vpop.eup %1590  ;;  %v733_v60 = vadd.f32 1.0, %v1589_v47  ;;  %v679_v40 = vmul.f32 0.7978846, %v647_v36  ;;  %v649_v1 = vadd.f32 %v617_v43, %v2082_v61  ;;  %v651_v6 = vadd.f32 %v619_v46, %v2085_v62  ;;  %v2131_v9 = vpop.f32.mrb[12].mxu0 }
 0x22d   :  { %v2133_v42 = vpop.f32.mrb[12].mxu1  ;;  %v2135_v14 = vpop.eup %1592  ;;  %v735_v15 = vadd.f32 1.0, %v1591_v57  ;;  %1604 = vtanh.f32 %v677_v49  ;;  %v678_v22 = vmul.f32 0.7978846, %v646_v50  ;;  %v680_v18 = vmul.f32 0.7978846, %v648_v54 }
 0x22e   :  { %v2137_v19 = vpop.f32.mrb[13].mxu0  ;;  %v2139_v29 = vpop.eup %1594  ;;  %v765_v25 = vmul.f32 0.5, %v733_v60  ;;  %1606 = vtanh.f32 %v679_v40  ;;  %v681_v26 = vmul.f32 0.7978846, %v649_v1  ;;  %v683_v23 = vmul.f32 0.7978846, %v651_v6 }
 0x22f   :  { %v2141_v30 = vpop.f32.mrb[13].mxu1  ;;  %v1597_v27 = vpop.eup %1596  ;;  %v767_v34 = vmul.f32 0.5, %v735_v15  ;;  %1608 = vtanh.f32 %v678_v22  ;;  %v586_v36 = vmul.f32 %v554_v55, %v2119_v35  ;;  %v556_v43 = vmul.f32 %v2123_v45, %v2123_v45 }
 0x230   :  { %v2146_v46 = vpop.f32.mrb[14].mxu0  ;;  %v2148_v47 = vpop.f32.mrb[14].mxu1  ;;  %v2151_v50 = vmul.f32 %v765_v25, %v2010_v39  ;;  %v737_v54 = vadd.f32 1.0, %v1597_v27  ;;  %1610 = vtanh.f32 %v680_v18  ;;  %v2155_v57 = vadd.f32 %v2087_v63, %v1998_v28 }
 0x231   :  { %v1599_v49 = vpop.eup %1598  ;;  %v2157_v60 = vpop.f32.mrb[15].mxu0  ;;  %v2164_v1 = vmul.f32 %v767_v34, %v2013_v38  ;;  %1612 = vtanh.f32 %v681_v26  ;;  %v618_v15 = vmul.f32 0.044715, %v586_v36  ;;  %v588_v18 = vmul.f32 %v556_v43, %v2123_v45 }
 0x232   :  { %v2159_v55 = vpop.f32.mrb[15].mxu1  ;;  %v2161_v40 = vpop.eup %1600  ;;  %v739_v6 = vadd.f32 1.0, %v1599_v49  ;;  %v769_v22 = vmul.f32 0.5, %v737_v54  ;;  %1614 = vtanh.f32 %v683_v23  ;;  %v557_v63 = vmul.f32 %v2155_v57, %v2155_v57 }
 0x233   :  { %v2166_v39 = vpop.eup %1602  ;;  %v650_v27 = vadd.f32 %v618_v15, %v2119_v35  ;;  %v2174_v11 = vadd.f32 %v2089_v0, %v2001_v31  ;;  %v2178_v38 = vadd.f32 %v2096_v12, %v2004_v32  ;;  %v620_v23 = vmul.f32 0.044715, %v588_v18 }
 0x234   :  { %v771_v25 = vmul.f32 0.5, %v739_v6  ;;  %v2181_v26 = vmul.f32 %v769_v22, %v2026_v44  ;;  %v589_v34 = vmul.f32 %v557_v63, %v2155_v57  ;;  %v2186_v36 = vadd.f32 %v2098_v13, %v2007_v33 }
 0x235   :  { %v682_v49 = vmul.f32 0.7978846, %v650_v27  ;;  %v559_v0 = vmul.f32 %v2174_v11, %v2174_v11  ;;  %v558_v12 = vmul.f32 %v2178_v38, %v2178_v38  ;;  %v652_v54 = vadd.f32 %v620_v23, %v2123_v45 }
 0x236   :  { %v2189_v43 = vmul.f32 %v771_v25, %v2029_v20  ;;  %v621_v6 = vmul.f32 0.044715, %v589_v34  ;;  %v560_v13 = vmul.f32 %v2186_v36, %v2186_v36  ;;  %v2212_v34 = vadd.f32 %v2105_v16, %v1998_v28 }
 0x237   :  { %v2200_v15 = vpop.eup %1604  ;;  %1616 = vtanh.f32 %v682_v49  ;;  %v591_v22 = vmul.f32 %v559_v0, %v2174_v11  ;;  %v590_v18 = vmul.f32 %v558_v12, %v2178_v38  ;;  %v684_v25 = vmul.f32 0.7978846, %v652_v54 }
 0x238   :  { %v2206_v63 = vpop.eup %1606  ;;  %v653_v27 = vadd.f32 %v621_v6, %v2155_v57  ;;  %v592_v23 = vmul.f32 %v560_v13, %v2186_v36  ;;  %v2218_v49 = vadd.f32 %v2107_v17, %v2001_v31  ;;  %v2222_v0 = vadd.f32 %v2111_v21, %v2004_v32 }
 0x239   :  { %v2214_v44 = vpop.eup %1608  ;;  %v623_v10 = vmul.f32 0.044715, %v591_v22  ;;  %v622_v20 = vmul.f32 0.044715, %v590_v18  ;;  %1618 = vtanh.f32 %v684_v25  ;;  %v561_v16 = vmul.f32 %v2212_v34, %v2212_v34 }
 0x23a   :  { %v2224_v12 = vpop.eup %1610  ;;  %v685_v54 = vmul.f32 0.7978846, %v653_v27  ;;  %v624_v6 = vmul.f32 0.044715, %v592_v23  ;;  %v563_v17 = vmul.f32 %v2218_v49, %v2218_v49  ;;  %v562_v21 = vmul.f32 %v2222_v0, %v2222_v0 }
 0x23b   :  { %v2228_v13 = vpop.eup %1612  ;;  %v655_v22 = vadd.f32 %v623_v10, %v2174_v11  ;;  %v654_v18 = vadd.f32 %v622_v20, %v2178_v38  ;;  %v593_v27 = vmul.f32 %v561_v16, %v2212_v34  ;;  %v2242_v23 = vadd.f32 %v2113_v24, %v2007_v33 }
 0x23c   :  { %v2236_v8 = vpop.eup %1614  ;;  %1620 = vtanh.f32 %v685_v54  ;;  %v656_v25 = vadd.f32 %v624_v6, %v2186_v36  ;;  %v595_v20 = vmul.f32 %v563_v17, %v2218_v49  ;;  %v594_v5 = vmul.f32 %v562_v21, %v2222_v0 }
 0x23d   :  { %v687_v10 = vmul.f32 0.7978846, %v655_v22  ;;  %v686_v7 = vmul.f32 0.7978846, %v654_v18  ;;  %v625_v4 = vmul.f32 0.044715, %v593_v27  ;;  %v564_v2 = vmul.f32 %v2242_v23, %v2242_v23 }
 0x23e   :  { %v688_v3 = vmul.f32 0.7978846, %v656_v25  ;;  %v2250_v54 = vadd.f32 %v2131_v9, %v1998_v28  ;;  %v627_v6 = vmul.f32 0.044715, %v595_v20  ;;  %v626_v16 = vmul.f32 0.044715, %v594_v5 }
 0x23f   :  { %1622 = vtanh.f32 %v687_v10  ;;  %v2254_v24 = vadd.f32 %v2133_v42, %v2001_v31  ;;  %v657_v22 = vadd.f32 %v625_v4, %v2212_v34  ;;  %v596_v18 = vmul.f32 %v564_v2, %v2242_v23 }
 0x240   :  { %2454 = vst [vmem:[#allocation11_spill] sm:$0xff] %v2250_v54  ;;  %1624 = vtanh.f32 %v686_v7  ;;  %v565_v17 = vmul.f32 %v2250_v54, %v2250_v54  ;;  %v659_v9 = vadd.f32 %v627_v6, %v2218_v49  ;;  %v658_v25 = vadd.f32 %v626_v16, %v2222_v0 }
 0x241   :  { %2455 = vst [vmem:[#allocation12_spill] sm:$0xff] %v2254_v24  ;;  %v2260_v21 = vpop.eup %1616  ;;  %1626 = vtanh.f32 %v688_v3  ;;  %v567_v5 = vmul.f32 %v2254_v24, %v2254_v24  ;;  %v689_v42 = vmul.f32 0.7978846, %v657_v22  ;;  %v628_v27 = vmul.f32 0.044715, %v596_v18 }
 0x242   :  { %v597_v7 = vmul.f32 %v565_v17, %v2250_v54  ;;  %v2269_v2 = vadd.f32 %v2137_v19, %v2004_v32  ;;  %v691_v4 = vmul.f32 0.7978846, %v659_v9  ;;  %v690_v10 = vmul.f32 0.7978846, %v658_v25 }
 0x243   :  { %v599_v20 = vmul.f32 %v567_v5, %v2254_v24  ;;  %v2274_v3 = vadd.f32 %v2141_v30, %v2007_v33  ;;  %v2276_v6 = vpop.eup %1618  ;;  %1628 = vtanh.f32 %v689_v42  ;;  %v660_v16 = vadd.f32 %v628_v27, %v2242_v23 }
 0x244   :  { %v629_v22 = vmul.f32 0.044715, %v597_v7  ;;  %v566_v18 = vmul.f32 %v2269_v2, %v2269_v2  ;;  %1630 = vtanh.f32 %v691_v4  ;;  %v2285_v9 = vadd.f32 %v2146_v46, %v1998_v28 }
 0x245   :  { %v631_v19 = vmul.f32 0.044715, %v599_v20  ;;  %v568_v17 = vmul.f32 %v2274_v3, %v2274_v3  ;;  %1632 = vtanh.f32 %v690_v10  ;;  %v692_v25 = vmul.f32 0.7978846, %v660_v16 }
 0x246   :  { %2456 = vst [vmem:[#allocation13_spill] sm:$0xff] %v2285_v9  ;;  %v2287_v30 = vpop.eup %1620  ;;  %v661_v5 = vadd.f32 %v629_v22, %v2250_v54  ;;  %v598_v42 = vmul.f32 %v566_v18, %v2269_v2  ;;  %v569_v4 = vmul.f32 %v2285_v9, %v2285_v9  ;;  %v2297_v20 = vadd.f32 %v2148_v47, %v2001_v31 }
 0x247   :  { %v663_v27 = vadd.f32 %v631_v19, %v2254_v24  ;;  %v600_v7 = vmul.f32 %v568_v17, %v2274_v3  ;;  %1634 = vtanh.f32 %v692_v25  ;;  %v2301_v10 = vadd.f32 %v2157_v60, %v2004_v32 }
 0x248   :  { %v693_v28 = vmul.f32 0.7978846, %v661_v5  ;;  %v630_v46 = vmul.f32 0.044715, %v598_v42  ;;  %v601_v19 = vmul.f32 %v569_v4, %v2285_v9  ;;  %v571_v17 = vmul.f32 %v2297_v20, %v2297_v20 }
 0x249   :  { %v2303_v16 = vpop.eup %1622  ;;  %v695_v22 = vmul.f32 0.7978846, %v663_v27  ;;  %v632_v18 = vmul.f32 0.044715, %v600_v7  ;;  %v570_v47 = vmul.f32 %v2301_v10, %v2301_v10  ;;  %v2315_v32 = vadd.f32 %v2159_v55, %v2007_v33 }
 0x24a   :  { %v2308_v48 = vpop.eup %1624  ;;  %1636 = vtanh.f32 %v693_v28  ;;  %v662_v31 = vadd.f32 %v630_v46, %v2269_v2  ;;  %v633_v5 = vmul.f32 0.044715, %v601_v19  ;;  %v603_v42 = vmul.f32 %v571_v17, %v2297_v20 }
 0x24b   :  { %v2317_v60 = vpop.eup %1626  ;;  %1638 = vtanh.f32 %v695_v22  ;;  %v664_v25 = vadd.f32 %v632_v18, %v2274_v3  ;;  %v602_v7 = vmul.f32 %v570_v47, %v2301_v10  ;;  %v572_v4 = vmul.f32 %v2315_v32, %v2315_v32 }
 0x24c   :  { %v694_v27 = vmul.f32 0.7978846, %v662_v31  ;;  %v734_v28 = vadd.f32 1.0, %v2135_v14  ;;  %v665_v33 = vadd.f32 %v633_v5, %v2285_v9  ;;  %v635_v55 = vmul.f32 0.044715, %v603_v42 }
 0x24d   :  { %v696_v46 = vmul.f32 0.7978846, %v664_v25  ;;  %v738_v24 = vadd.f32 1.0, %v2161_v40  ;;  %v2327_v22 = vpop.eup %1628  ;;  %v634_v18 = vmul.f32 0.044715, %v602_v7  ;;  %v604_v19 = vmul.f32 %v572_v4, %v2315_v32 }
 0x24e   :  { %1640 = vtanh.f32 %v694_v27  ;;  %v766_v17 = vmul.f32 0.5, %v734_v28  ;;  %v2330_v31 = vpop.eup %1630  ;;  %v697_v47 = vmul.f32 0.7978846, %v665_v33  ;;  %v667_v54 = vadd.f32 %v635_v55, %v2297_v20 }
 0x24f   :  { %1642 = vtanh.f32 %v696_v46  ;;  %v770_v14 = vmul.f32 0.5, %v738_v24  ;;  %v1633_v25 = vpop.eup %1632  ;;  %v666_v5 = vadd.f32 %v634_v18, %v2301_v10  ;;  %v636_v42 = vmul.f32 0.044715, %v604_v19 }
 0x250   :  { %v798_v40 = vmul.f32 %v766_v17, %v2016_v37  ;;  %v736_v9 = vadd.f32 1.0, %v2139_v29  ;;  %1644 = vtanh.f32 %v697_v47  ;;  %v699_v27 = vmul.f32 0.7978846, %v667_v54 }
 0x251   :  { %v802_v7 = vmul.f32 %v770_v14, %v2036_v52  ;;  %v740_v4 = vadd.f32 1.0, %v2166_v39  ;;  %v1635_v28 = vpop.eup %1634  ;;  %v698_v46 = vmul.f32 0.7978846, %v666_v5  ;;  %v668_v33 = vadd.f32 %v636_v42, %v2315_v32 }
 0x252   :  { %v768_v55 = vmul.f32 0.5, %v736_v9  ;;  %v742_v24 = vadd.f32 1.0, %v2214_v44  ;;  %1646 = vtanh.f32 %v699_v27  ;;  %v746_v37 = vadd.f32 1.0, %v2260_v21 }
 0x253   :  { %v830_v18 = vpack.c.bf16 %v802_v7, %v798_v40  ;;  %v772_v19 = vmul.f32 0.5, %v740_v4  ;;  %1648 = vtanh.f32 %v698_v46  ;;  %v700_v29 = vmul.f32 0.7978846, %v668_v33 }
 0x254   :  { %v2341_v17 = vpop.eup %1636  ;;  %v800_v52 = vmul.f32 %v768_v55, %v2019_v41  ;;  %v774_v54 = vmul.f32 0.5, %v742_v24  ;;  %v778_v9 = vmul.f32 0.5, %v746_v37  ;;  %v744_v44 = vadd.f32 1.0, %v2224_v12 }
 0x255   :  { %v2344_v39 = vpop.eup %1638  ;;  %1139 = vmatprep.mubr.bf16.mxu0 %v830_v18  ;;  %v804_v47 = vmul.f32 %v772_v19, %v2039_v53  ;;  %v748_v14 = vadd.f32 1.0, %v2276_v6  ;;  %1650 = vtanh.f32 %v700_v29  ;;  %v2457_v21 = vpack.c.bf16 %v2181_v26, %v2151_v50 }
 0x256   :  { %v806_v5 = vmul.f32 %v774_v54, %v2074_v58  ;;  %v741_v41 = vadd.f32 1.0, %v2200_v15  ;;  %v745_v42 = vadd.f32 1.0, %v2228_v13  ;;  %v810_v27 = vmul.f32 %v778_v9, %v2119_v35 }
 0x257   :  { %1140 = vmatmul.mubr.bf16.vlgmr.msra.gmra.mrb[16].mxu0 %v2457_v21  ;;  %v832_v40 = vpack.c.bf16 %v804_v47, %v800_v52  ;;  %v776_v53 = vmul.f32 0.5, %v744_v44  ;;  %v780_v7 = vmul.f32 0.5, %v748_v14  ;;  %v743_v6 = vadd.f32 1.0, %v2206_v63 }
 0x258   :  { %v1641_v4 = vpop.eup %1640  ;;  %v773_v12 = vmul.f32 0.5, %v741_v41  ;;  %v777_v46 = vmul.f32 0.5, %v745_v42  ;;  %v747_v33 = vadd.f32 1.0, %v2236_v8  ;;  %v834_v26 = vpack.c.bf16 %v810_v27, %v806_v5 }
 0x259   :  { %v1643_v50 = vpop.eup %1642  ;;  %1204 = vmatprep.mubr.bf16.mxu1 %v832_v40  ;;  %v808_v58 = vmul.f32 %v776_v53, %v2077_v59  ;;  %v812_v15 = vmul.f32 %v780_v7, %v2123_v45  ;;  %v750_v13 = vadd.f32 1.0, %v2308_v48  ;;  %v2458_v35 = vpack.c.bf16 %v2189_v43, %v2164_v1 }
 0x25a   :  { %v805_v55 = vmul.f32 %v773_v12, %v2066_v51  ;;  %v809_v24 = vmul.f32 %v777_v46, %v2082_v61  ;;  %v775_v63 = vmul.f32 0.5, %v743_v6  ;;  %v779_v18 = vmul.f32 0.5, %v747_v33  ;;  %v1645_v8 = vpop.eup %1644  ;;  %1147 = vmatprep.mubr.bf16.mxu0 %v834_v26 }
 0x25b   :  { %1205 = vmatmul.mubr.bf16.vlgmr.msra.gmra.mrb[16].mxu1 %v2458_v35  ;;  %v836_v19 = vpack.c.bf16 %v812_v15, %v808_v58  ;;  %v754_v37 = vadd.f32 1.0, %v1633_v25  ;;  %v782_v29 = vmul.f32 0.5, %v750_v13  ;;  %v752_v59 = vadd.f32 1.0, %v2317_v60 }
 0x25c   :  { %v833_v45 = vpack.c.bf16 %v809_v24, %v805_v55  ;;  %v807_v48 = vmul.f32 %v775_v63, %v2069_v56  ;;  %v811_v52 = vmul.f32 %v779_v18, %v2085_v62  ;;  %v756_v1 = vadd.f32 1.0, %v1635_v28  ;;  %v1647_v43 = vpop.eup %1646 }
 0x25d   :  { %1212 = vmatprep.mubr.bf16.mxu1 %v836_v19  ;;  %v786_v51 = vmul.f32 0.5, %v754_v37  ;;  %v814_v61 = vmul.f32 %v782_v29, %v2178_v38  ;;  %v784_v54 = vmul.f32 0.5, %v752_v59  ;;  %v749_v47 = vadd.f32 1.0, %v2287_v30  ;;  %v1649_v9 = vpop.eup %1648  ;;  %v2461_v29 = vld [vmem:[#allocation12_spill] sm:$0xff] }
 0x25e   :  { %v835_v25 = vpack.c.bf16 %v811_v52, %v807_v48  ;;  %v788_v44 = vmul.f32 0.5, %v756_v1  ;;  %v753_v60 = vadd.f32 1.0, %v2327_v22  ;;  %v751_v14 = vadd.f32 1.0, %v2303_v16  ;;  %v2462_v52 = vld [vmem:[#allocation10_spill] sm:$0xff] }
 0x25f   :  { %1148 = vmatmul.mubr.bf16.gmra.mrb[20].mxu0 %v833_v45  ;;  %v818_v56 = vmul.f32 %v786_v51, %v2222_v0  ;;  %v816_v62 = vmul.f32 %v784_v54, %v2186_v36  ;;  %v781_v28 = vmul.f32 0.5, %v749_v47  ;;  %v755_v21 = vadd.f32 1.0, %v2330_v31  ;;  %v1651_v5 = vpop.eup %1650 }
 0x260   :  { %v820_v38 = vmul.f32 %v788_v44, %v2242_v23  ;;  %v785_v41 = vmul.f32 0.5, %v753_v60  ;;  %v783_v30 = vmul.f32 0.5, %v751_v14  ;;  %v758_v42 = vadd.f32 1.0, %v1641_v4 }
 0x261   :  { %v838_v40 = vpack.c.bf16 %v818_v56, %v814_v61  ;;  %v813_v27 = vmul.f32 %v781_v28, %v2155_v57  ;;  %v787_v53 = vmul.f32 0.5, %v755_v21  ;;  %v762_v22 = vadd.f32 1.0, %v1649_v9 }
 0x262   :  { %v840_v16 = vpack.c.bf16 %v820_v38, %v816_v62  ;;  %v817_v0 = vmul.f32 %v785_v41, %v2212_v34  ;;  %v815_v36 = vmul.f32 %v783_v30, %v2174_v11  ;;  %v790_v7 = vmul.f32 0.5, %v758_v42 }
 0x263   :  { %1213 = vmatmul.mubr.bf16.gmra.mrb[20].mxu1 %v835_v25  ;;  %1155 = vmatprep.mubr.bf16.mxu0 %v838_v40  ;;  %v819_v31 = vmul.f32 %v787_v53, %v2218_v49  ;;  %v794_v12 = vmul.f32 0.5, %v762_v22  ;;  %v760_v23 = vadd.f32 1.0, %v1643_v50  ;;  %v764_v46 = vadd.f32 1.0, %v1651_v5  ;;  %v2463_v40 = vld [vmem:[#allocation2_spill] sm:$0xff]  ;;  %v2464_v53 = vld [vmem:[#allocation4_spill] sm:$0xff] }
 0x264   :  { %1220 = vmatprep.mubr.bf16.mxu1 %v840_v16  ;;  %v837_v4 = vpack.c.bf16 %v817_v0, %v813_v27  ;;  %v822_v6 = vmul.f32 %v790_v7, %v2269_v2  ;;  %v757_v57 = vadd.f32 1.0, %v2341_v17  ;;  %v761_v33 = vadd.f32 1.0, %v1645_v8  ;;  %v2459_v2 = vld [vmem:[#allocation11_spill] sm:$0xff]  ;;  %v2460_v17 = vld [vmem:[#allocation13_spill] sm:$0xff] }
 0x265   :  { %v839_v26 = vpack.c.bf16 %v819_v31, %v815_v36  ;;  %v826_v58 = vmul.f32 %v794_v12, %v2301_v10  ;;  %v792_v34 = vmul.f32 0.5, %v760_v23  ;;  %v796_v15 = vmul.f32 0.5, %v764_v46 }
 0x266   :  { %v789_v11 = vmul.f32 0.5, %v757_v57  ;;  %v793_v13 = vmul.f32 0.5, %v761_v33  ;;  %v759_v49 = vadd.f32 1.0, %v2344_v39  ;;  %v763_v35 = vadd.f32 1.0, %v1647_v43 }
 0x267   :  { %1156 = vmatmul.mubr.bf16.gmra.mrb[24].mxu0 %v837_v4  ;;  %v842_v50 = vpack.c.bf16 %v826_v58, %v822_v6  ;;  %v824_v55 = vmul.f32 %v792_v34, %v2274_v3  ;;  %v828_v24 = vmul.f32 %v796_v15, %v2315_v32  ;;  %v909_v3 = vld [vmem:[%s2431_s6] sm:$0x1] }
 0x268   :  { %v821_v63 = vmul.f32 %v789_v11, %v2459_v2  ;;  %v825_v18 = vmul.f32 %v793_v13, %v2460_v17  ;;  %v791_v8 = vmul.f32 0.5, %v759_v49  ;;  %v795_v19 = vmul.f32 0.5, %v763_v35  ;;  %v2465_v13 = vld [vmem:[#allocation3_spill] sm:$0xff]  ;;  %v2466_v35 = vld [vmem:[#allocation5_spill] sm:$0xff] }
 0x269   :  { %1163 = vmatprep.mubr.bf16.mxu0 %v842_v50  ;;  %v844_v10 = vpack.c.bf16 %v828_v24, %v824_v55  ;;  %v910_v32 = vunpack.c.l.bf16 %v909_v3 }
 0x26a   :  { %v841_v37 = vpack.c.bf16 %v825_v18, %v821_v63  ;;  %v823_v59 = vmul.f32 %v791_v8, %v2461_v29  ;;  %v827_v39 = vmul.f32 %v795_v19, %v2297_v20 }
 0x26b   :  { %1221 = vmatmul.mubr.bf16.gmra.mrb[24].mxu1 %v839_v26  ;;  %v2395_v1 = vrot.slane %v910_v32, %v2462_v52  ;;  %v2467_v52 = vld [vmem:[#allocation6_spill] sm:$0xff] }
 0x26c   :  { %1228 = vmatprep.mubr.bf16.mxu1 %v844_v10  ;;  %v843_v45 = vpack.c.bf16 %v827_v39, %v823_v59 }
 0x26f   :  { %1164 = vmatmul.mubr.bf16.gmra.mrb[28].mxu0 %v841_v37 }
 0x273   :  { %1229 = vmatmul.mubr.bf16.gmra.mrb[28].mxu1 %v843_v45 }
 0x32a   :  { %v1427_v48 = vpop.f32.mrb[16].mxu0 }
 0x32b   :  { %v1428_v43 = vpop.f32.mrb[17].mxu0 }
 0x32c   :  { %v1429_v51 = vadd.f32 %v1428_v43, %v1427_v48  ;;  %v1430_v61 = vpop.f32.mrb[18].mxu0 }
 0x32d   :  { %v1431_v54 = vpop.f32.mrb[19].mxu0 }
 0x32e   :  { %v1467_v47 = vpop.f32.mrb[16].mxu1  ;;  %v1142_v20 = vadd.f32 %v1429_v51, %v2395_v1  ;;  %v1432_v9 = vadd.f32 %v1431_v54, %v1430_v61  ;;  %v2468_v51 = vld [vmem:[#allocation7_spill] sm:$0xff] }
 0x32f   :  { %v1468_v25 = vpop.f32.mrb[17].mxu1 }
 0x330   :  { %v1469_v44 = vadd.f32 %v1468_v25, %v1467_v47  ;;  %v1470_v60 = vpop.f32.mrb[18].mxu1  ;;  %v1145_v14 = vadd.f32 %v1432_v9, %v2395_v1 }
 0x331   :  { %v1471_v56 = vpop.f32.mrb[19].mxu1 }
 0x332   :  { %v1207_v62 = vadd.f32 %v1469_v44, %v1142_v20  ;;  %v1472_v28 = vadd.f32 %v1471_v56, %v1470_v60  ;;  %v1433_v21 = vpop.f32.mrb[20].mxu0 }
 0x333   :  { %v1434_v5 = vpop.f32.mrb[21].mxu0 }
 0x334   :  { %v1210_v38 = vadd.f32 %v1472_v28, %v1145_v14  ;;  %v1435_v41 = vadd.f32 %v1434_v5, %v1433_v21  ;;  %v1436_v30 = vpop.f32.mrb[22].mxu0  ;;  %v1237_v27 = vadd.f32 %v2463_v40, %v1207_v62  ;;  %v2469_v5 = vld [vmem:[#allocation8_spill] sm:$0xff] }
 0x335   :  { %v1437_v42 = vpop.f32.mrb[23].mxu0 }
 0x336   :  { %v1238_v22 = vadd.f32 %v2464_v53, %v1210_v38  ;;  %v1473_v16 = vpop.f32.mrb[20].mxu1  ;;  %v1150_v0 = vadd.f32 %v1435_v41, %v2395_v1  ;;  %v1438_v36 = vadd.f32 %v1437_v42, %v1436_v30  ;;  %v2470_v41 = vld [vmem:[#allocation9_spill] sm:$0xff] }
 0x337   :  { %v1474_v7 = vpop.f32.mrb[21].mxu1 }
 0x338   :  { %v1388_v31 = vpack.c.bf16 %v1238_v22, %v1237_v27  ;;  %v1475_v12 = vadd.f32 %v1474_v7, %v1473_v16  ;;  %v1476_v23 = vpop.f32.mrb[22].mxu1  ;;  %v1153_v46 = vadd.f32 %v1438_v36, %v2395_v1 }
 0x339   :  { %v1477_v4 = vpop.f32.mrb[23].mxu1 }
 0x33a   :  { %1389 = vst [vmem:[%s2432_s7] sm:$0xff] %v1388_v31   ;;  %v1215_v6 = vadd.f32 %v1475_v12, %v1150_v0  ;;  %v1478_v57 = vadd.f32 %v1477_v4, %v1476_v23  ;;  %v1439_v33 = vpop.f32.mrb[24].mxu0 }
 0x33b   :  { %v1440_v26 = vpop.f32.mrb[25].mxu0 }
 0x33c   :  { %v1218_v58 = vadd.f32 %v1478_v57, %v1153_v46  ;;  %v1441_v34 = vadd.f32 %v1440_v26, %v1439_v33  ;;  %v1442_v15 = vpop.f32.mrb[26].mxu0  ;;  %v1239_v49 = vadd.f32 %v2465_v13, %v1215_v6 }
 0x33d   :  { %v1443_v11 = vpop.f32.mrb[27].mxu0 }
 0x33e   :  { %v1240_v50 = vadd.f32 %v2466_v35, %v1218_v58  ;;  %v1479_v55 = vpop.f32.mrb[24].mxu1  ;;  %v1158_v24 = vadd.f32 %v1441_v34, %v2395_v1  ;;  %v1444_v2 = vadd.f32 %v1443_v11, %v1442_v15 }
 0x33f   :  { %v1480_v63 = vpop.f32.mrb[25].mxu1 }
 0x340   :  { %v1393_v17 = vpack.c.bf16 %v1240_v50, %v1239_v49  ;;  %v1481_v18 = vadd.f32 %v1480_v63, %v1479_v55  ;;  %v1482_v8 = vpop.f32.mrb[26].mxu1  ;;  %v1161_v19 = vadd.f32 %v1444_v2, %v2395_v1 }
 0x341   :  { %v1483_v10 = vpop.f32.mrb[27].mxu1 }
 0x342   :  { %1408 = vst [vmem:[%s2432_s7 + $0x8] sm:$0xff] %v1393_v17   ;;  %v1223_v37 = vadd.f32 %v1481_v18, %v1158_v24  ;;  %v1484_v29 = vadd.f32 %v1483_v10, %v1482_v8  ;;  %v1445_v59 = vpop.f32.mrb[28].mxu0 }
 0x343   :  { %v1446_v39 = vpop.f32.mrb[29].mxu0 }
 0x344   :  { %v1226_v45 = vadd.f32 %v1484_v29, %v1161_v19  ;;  %v1447_v3 = vadd.f32 %v1446_v39, %v1445_v59  ;;  %v1448_v32 = vpop.f32.mrb[30].mxu0  ;;  %v1241_v43 = vadd.f32 %v2467_v52, %v1223_v37 }
 0x345   :  { %v1449_v48 = vpop.f32.mrb[31].mxu0 }
 0x346   :  { %v1242_v61 = vadd.f32 %v2468_v51, %v1226_v45  ;;  %v1485_v54 = vpop.f32.mrb[28].mxu1  ;;  %v1166_v47 = vadd.f32 %v1447_v3, %v2395_v1  ;;  %v1450_v20 = vadd.f32 %v1449_v48, %v1448_v32 }
 0x347   :  { %v1486_v9 = vpop.f32.mrb[29].mxu1 }
 0x348   :  { %v1398_v25 = vpack.c.bf16 %v1242_v61, %v1241_v43  ;;  %v1487_v44 = vadd.f32 %v1486_v9, %v1485_v54  ;;  %v1488_v60 = vpop.f32.mrb[30].mxu1  ;;  %v1169_v14 = vadd.f32 %v1450_v20, %v2395_v1 }
 0x349   :  { %v1489_v56 = vpop.f32.mrb[31].mxu1 }
 0x34a   :  { %1409 = vst [vmem:[%s2432_s7 + $0x10] sm:$0xff] %v1398_v25   ;;  %v1231_v62 = vadd.f32 %v1487_v44, %v1166_v47  ;;  %v1490_v28 = vadd.f32 %v1489_v56, %v1488_v60 }
 0x34c   :  { %v1234_v21 = vadd.f32 %v1490_v28, %v1169_v14  ;;  %v1243_v38 = vadd.f32 %v2469_v5, %v1231_v62 }
 0x34e   :  { %v1244_v30 = vadd.f32 %v2470_v41, %v1234_v21 }
 0x350   :  { %v1403_v42 = vpack.c.bf16 %v1244_v30, %v1243_v38 }
 0x352   :  { %1410 = vst [vmem:[%s2432_s7 + $0x18] sm:$0xff] %v1403_v42  }

// kernel: internvl_forward.24
= control target key start
LH: loop header
LB: loop body
LE: loop exit
PB: predicated region body
PF: predicated region fallthrough
CT: control target
= control target key end

     0   :  { %vm851_vm0 = vmmov 0   ;;  %s1093_s0 = inlined_call_operand.vmem [shape: bf16[16,512], index: 0, kind: input, shape index: {}]   ;;  %s1094_s3 = inlined_call_operand.vmem [shape: bf16[512,128], index: 3, kind: input, shape index: {}]   ;;  %s1095_s1 = inlined_call_operand.vmem [shape: bf16[1,512], index: 1, kind: input, shape index: {}]   ;;  %s1096_s2 = inlined_call_operand.vmem [shape: bf16[1,512], index: 2, kind: input, shape index: {}]   ;;  %s1097_s5 = inlined_call_operand.vmem [shape: bf16[128,128], index: 5, kind: input, shape index: {}]   ;;  %s1098_s4 = inlined_call_operand.vmem [shape: bf16[1,128], index: 4, kind: input, shape index: {}]   ;;  %s1099_s6 = inlined_call_operand.vmem [shape: bf16[1,128], index: 6, kind: input, shape index: {}]   ;;  %s1100_s7 = inlined_call_operand.vmem [shape: bf16[16,128], index: 7, kind: output, shape index: {}]  }
   0x1   :  { %v27_v0 = vld [vmem:[%s1093_s0] sm:$0xff]  ;;  %v28_v1 = vld [vmem:[%s1093_s0 + $0x8] sm:$0xff]  ;;  %v29_v2 = vld [vmem:[%s1093_s0 + $0x10] sm:$0xff] }
   0x2   :  { %v31_v3 = vunpack.c.l.bf16 %v27_v0  ;;  %v32_v4 = vunpack.c.h.bf16 %v27_v0  ;;  %v33_v5 = vunpack.c.l.bf16 %v28_v1  ;;  %v30_v6 = vld [vmem:[%s1093_s0 + $0x18] sm:$0xff]  ;;  %v35_v7 = vunpack.c.l.bf16 %v29_v2  ;;  %v802_v18 = vld [vmem:[%s1094_s3 + $0x40] sm:$0xff]   ;;  %v806_v48 = vld [vmem:[%s1094_s3 + $0x48] sm:$0xff]  }
   0x3   :  { %v36_v8 = vunpack.c.h.bf16 %v29_v2  ;;  %v37_v9 = vunpack.c.l.bf16 %v30_v6  ;;  %v34_v10 = vunpack.c.h.bf16 %v28_v1  ;;  %v38_v14 = vunpack.c.h.bf16 %v30_v6  ;;  %v803_v19 = vld [vmem:[%s1094_s3 + $0xc0] sm:$0xff]   ;;  %727 = vmatprep.subr.bf16.mxu0 %v802_v18  ;;  %v807_v49 = vld [vmem:[%s1094_s3 + $0xc8] sm:$0xff]   ;;  %v810_v52 = vld [vmem:[%s1094_s3 + $0x50] sm:$0xff]  }
   0x4   :  { %v43_v11 = vadd.f32 %v32_v4, %v31_v3  ;;  %v804_v20 = vld [vmem:[%s1094_s3] sm:$0xff]   ;;  %749 = vmatprep.subr.bf16.mxu1 %v803_v19  ;;  %v808_v50 = vld [vmem:[%s1094_s3 + $0x8] sm:$0xff]   ;;  %v811_v53 = vld [vmem:[%s1094_s3 + $0xd0] sm:$0xff]  }
   0x5   :  { %v48_v12 = vadd.f32 %v36_v8, %v35_v7  ;;  %v805_v21 = vld [vmem:[%s1094_s3 + $0x80] sm:$0xff]   ;;  %728 = vmatpush3.bf16.msra.mxu0 %v804_v20  ;;  %v809_v51 = vld [vmem:[%s1094_s3 + $0x88] sm:$0xff]   ;;  %v812_v54 = vld [vmem:[%s1094_s3 + $0x10] sm:$0xff]  }
   0x6   :  { %v44_v13 = vadd.f32 %v43_v11, %v33_v5  ;;  %750 = vmatpush3.bf16.msra.mxu1 %v805_v21  ;;  %729 = vmatprep.subr.bf16.mxu0 %v806_v48  ;;  %v813_v55 = vld [vmem:[%s1094_s3 + $0x90] sm:$0xff]   ;;  %v814_v56 = vld [vmem:[%s1094_s3 + $0x58] sm:$0xff]   ;;  %v818_v60 = vld [vmem:[%s1094_s3 + $0x60] sm:$0xff]  }
   0x7   :  { %v49_v15 = vadd.f32 %v48_v12, %v37_v9  ;;  %751 = vmatprep.subr.bf16.mxu1 %v807_v49  ;;  %v815_v57 = vld [vmem:[%s1094_s3 + $0xd8] sm:$0xff]   ;;  %v819_v61 = vld [vmem:[%s1094_s3 + $0xe0] sm:$0xff]   ;;  %v822_v0 = vld [vmem:[%s1094_s3 + $0x68] sm:$0xff]  }
   0x8   :  { %v45_v16 = vadd.f32 %v44_v13, %v34_v10  ;;  %v816_v58 = vld [vmem:[%s1094_s3 + $0x18] sm:$0xff]   ;;  %v820_v62 = vld [vmem:[%s1094_s3 + $0x20] sm:$0xff]   ;;  %v823_v1 = vld [vmem:[%s1094_s3 + $0xe8] sm:$0xff]   ;;  %v97_v13 = vlaneseq }
   0x9   :  { %v50_v17 = vadd.f32 %v49_v15, %v38_v14  ;;  %730 = vmatpush3.bf16.msra.mxu0 %v808_v50  ;;  %v817_v59 = vld [vmem:[%s1094_s3 + $0x98] sm:$0xff]   ;;  %v821_v63 = vld [vmem:[%s1094_s3 + $0xa0] sm:$0xff]   ;;  %v824_v2 = vld [vmem:[%s1094_s3 + $0x28] sm:$0xff]  }
   0xa   :  { %46 = vadd.xlane.f32.xlu0 %v45_v16  ;;  %752 = vmatpush3.bf16.msra.mxu1 %v809_v51  ;;  %v828_v6 = vld [vmem:[%s1094_s3 + $0x30] sm:$0xff]   ;;  %v833_v11 = vld [vmem:[%s1094_s3 + $0xb8] sm:$0xff]   ;;  %v39_v19 = vld [vmem:[%s1095_s1] sm:$0xf] }
   0xb   :  { %731 = vmatprep.subr.bf16.mxu0 %v810_v52  ;;  %753 = vmatprep.subr.bf16.mxu1 %v811_v53  ;;  %v40_v21 = vunpack.c.l.bf16 %v39_v19  ;;  %v254_v19 = vld [vmem:[%s1098_s4] sm:$0x1] }
   0xd   :  { %732 = vmatpush3.bf16.msra.mxu0 %v812_v54 }
   0xe   :  { %51 = vadd.xlane.f32.xlu0 %v50_v17  ;;  %754 = vmatpush3.bf16.msra.mxu1 %v813_v55  ;;  %v98_v17 = vshrl.u32 %v97_v13, 7  ;;  %v836_v13 = vld [vmem:[%s1097_s5 + $0x10] sm:$0xff]  }
   0xf   :  { %733 = vmatprep.subr.bf16.mxu0 %v814_v56  ;;  %755 = vmatprep.subr.bf16.mxu1 %v815_v57 }
  0x11   :  { %734 = vmatpush3.bf16.msra.mxu0 %v816_v58 }
  0x12   :  { %756 = vmatpush3.bf16.msra.mxu1 %v817_v59  ;;  %735 = vmatprep.subr.bf16.mxu0 %v818_v60 }
  0x13   :  { %757 = vmatprep.subr.bf16.mxu1 %v819_v61 }
  0x15   :  { %736 = vmatpush3.bf16.msra.mxu0 %v820_v62 }
  0x16   :  { %758 = vmatpush3.bf16.msra.mxu1 %v821_v63  ;;  %737 = vmatprep.subr.bf16.mxu0 %v822_v0 }
  0x17   :  { %759 = vmatprep.subr.bf16.mxu1 %v823_v1 }
  0x19   :  { %738 = vmatpush3.bf16.msra.mxu0 %v824_v2 }
  0x97   :  { %v47_v22 = vpop.xlane.xlu0 %46 }
  0x98   :  { %v54_v23 = vmul.f32 0.001953125, %v47_v22  ;;  %v41_v22 = vld [vmem:[%s1096_s2] sm:$0xf] }
  0x9a   :  { %v916_v24 = vsub.f32 %v31_v3, %v54_v23  ;;  %v918_v25 = vsub.f32 %v32_v4, %v54_v23  ;;  %v920_v26 = vsub.f32 %v33_v5, %v54_v23  ;;  %v922_v28 = vsub.f32 %v34_v10, %v54_v23  ;;  %v825_v3 = vld [vmem:[%s1094_s3 + $0xa8] sm:$0xff]   ;;  %v826_v4 = vld [vmem:[%s1094_s3 + $0x70] sm:$0xff]   ;;  %v832_v10 = vld [vmem:[%s1094_s3 + $0x38] sm:$0xff]  }
  0x9b   :  { %v52_v27 = vpop.xlane.xlu0 %51  ;;  %v827_v5 = vld [vmem:[%s1094_s3 + $0xf0] sm:$0xff]   ;;  %760 = vmatpush3.bf16.msra.mxu1 %v825_v3  ;;  %739 = vmatprep.subr.bf16.mxu0 %v826_v4  ;;  %v103_v23 = vsub.s32 2, %v98_v17 }
  0x9c   :  { %v55_v29 = vmul.f32 0.001953125, %v52_v27  ;;  %v64_v30 = vmul.f32 %v916_v24, %v916_v24  ;;  %v65_v31 = vmul.f32 %v918_v25, %v918_v25  ;;  %v66_v32 = vmul.f32 %v920_v26, %v920_v26  ;;  %761 = vmatprep.subr.bf16.mxu1 %v827_v5  ;;  %740 = vmatpush3.bf16.msra.mxu0 %v828_v6 }
  0x9d   :  { %v67_v37 = vmul.f32 %v922_v28, %v922_v28  ;;  %v111_v27 = vsub.s32 6, %v98_v17 }
  0x9e   :  { %v930_v33 = vsub.f32 %v35_v7, %v55_v29  ;;  %v932_v34 = vsub.f32 %v36_v8, %v55_v29  ;;  %v72_v35 = vadd.f32 %v65_v31, %v64_v30  ;;  %v934_v36 = vsub.f32 %v37_v9, %v55_v29  ;;  %v829_v7 = vld [vmem:[%s1094_s3 + $0xb0] sm:$0xff]   ;;  %v830_v8 = vld [vmem:[%s1094_s3 + $0x78] sm:$0xff]  }
  0x9f   :  { %v938_v39 = vsub.f32 %v38_v14, %v55_v29  ;;  %v831_v9 = vld [vmem:[%s1094_s3 + $0xf8] sm:$0xff]   ;;  %762 = vmatpush3.bf16.msra.mxu1 %v829_v7  ;;  %741 = vmatprep.subr.bf16.mxu0 %v830_v8  ;;  %v1038_v29 = vsub.s32 0, %v98_v17  ;;  %v107_v30 = vsub.s32 4, %v98_v17  ;;  %v42_v31 = vunpack.c.l.bf16 %v41_v22  ;;  %v840_v17 = vld [vmem:[%s1097_s5 + $0x30] sm:$0xff]  }
  0xa0   :  { %v73_v38 = vadd.f32 %v72_v35, %v66_v32  ;;  %v68_v40 = vmul.f32 %v930_v33, %v930_v33  ;;  %v69_v41 = vmul.f32 %v932_v34, %v932_v34  ;;  %v70_v43 = vmul.f32 %v934_v36, %v934_v36  ;;  %763 = vmatprep.subr.bf16.mxu1 %v831_v9 }
  0xa1   :  { %v71_v45 = vmul.f32 %v938_v39, %v938_v39  ;;  %742 = vmatpush3.bf16.msra.mxu0 %v832_v10  ;;  %v104_v32 = vrot.slane %v40_v21, %v103_v23  ;;  %v112_v35 = vrot.slane %v40_v21, %v111_v27 }
  0xa2   :  { %v74_v42 = vadd.f32 %v73_v38, %v67_v37  ;;  %v77_v44 = vadd.f32 %v69_v41, %v68_v40  ;;  %v100_v37 = vrot.slane %v40_v21, %v1038_v29  ;;  %v108_v38 = vrot.slane %v40_v21, %v107_v30 }
  0xa3   :  { %764 = vmatpush3.bf16.msra.mxu1 %v833_v11  ;;  %v149_v41 = vrot.slane %v42_v31, %v103_v23  ;;  %v132_v48 = vrot.slane %v112_v35, %v1038_v29  ;;  %v850_v11 = vmov 0.0  }
  0xa4   :  { %75 = vadd.xlane.f32.xlu1 %v74_v42  ;;  %v78_v46 = vadd.f32 %v77_v44, %v70_v43  ;;  %v157_v42 = vrot.slane %v42_v31, %v111_v27  ;;  %v145_v43 = vrot.slane %v42_v31, %v1038_v29  ;;  %v153_v44 = vrot.slane %v42_v31, %v107_v30 }
  0xa5   :  { %v120_v50 = vrot.slane %v100_v37, %v1038_v29  ;;  %v128_v52 = vrot.slane %v108_v38, %v1038_v29  ;;  %v169_v54 = vrot.slane %v149_v41, %v1038_v29  ;;  %780 = vmatprep.subr.bf16.mxu0 %v850_v11 }
  0xa6   :  { %v79_v47 = vadd.f32 %v78_v46, %v71_v45  ;;  %v124_v46 = vrot.slane %v104_v32, %v1038_v29  ;;  %v177_v55 = vrot.slane %v157_v42, %v1038_v29  ;;  %v173_v56 = vrot.slane %v153_v44, %v1038_v29 }
  0xa8   :  { %80 = vadd.xlane.f32.xlu1 %v79_v47 }
 0x131   :  { %v76_v12 = vpop.xlane.xlu1 %75 }
 0x132   :  { %v82_v14 = vmul.f32 0.001953125, %v76_v12  ;;  %v835_v12 = vld [vmem:[%s1097_s5 + $0x8] sm:$0xff]  }
 0x134   :  { %v84_v15 = vadd.f32 1e-06, %v82_v14  ;;  %v837_v14 = vld [vmem:[%s1097_s5 + $0x18] sm:$0xff]  }
 0x135   :  { %v81_v16 = vpop.xlane.xlu1 %80 }
 0x136   :  { %842 = vrsqrt.f32 %v84_v15  ;;  %v83_v18 = vmul.f32 0.001953125, %v81_v16  ;;  %v838_v15 = vld [vmem:[%s1097_s5 + $0x20] sm:$0xff]   ;;  %v839_v16 = vld [vmem:[%s1097_s5 + $0x28] sm:$0xff]  }
 0x138   :  { %v85_v20 = vadd.f32 1e-06, %v83_v18  ;;  %v841_v18 = vld [vmem:[%s1097_s5 + $0x38] sm:$0xff]  }
 0x13a   :  { %844 = vrsqrt.f32 %v85_v20  ;;  %v255_v20 = vunpack.c.l.bf16 %v254_v19 }
 0x13c   :  { %v259_v23 = vrot.slane %v255_v20, %v1038_v29 }
 0x140   :  { %v843_v40 = vpop.eup %842 }
 0x141   :  { %v89_v45 = vmul.f32 %v843_v40, %v918_v25  ;;  %v91_v47 = vmul.f32 %v843_v40, %v922_v28  ;;  %v88_v49 = vmul.f32 %v843_v40, %v916_v24  ;;  %v90_v51 = vmul.f32 %v843_v40, %v920_v26 }
 0x142   :  { %v165_v25 = vrot.slane %v145_v43, %v1038_v29 }
 0x143   :  { %v134_v57 = vmul.f32 %v124_v46, %v89_v45  ;;  %v136_v58 = vmul.f32 %v132_v48, %v91_v47  ;;  %v133_v26 = vmul.f32 %v120_v50, %v88_v49  ;;  %v135_v61 = vmul.f32 %v128_v52, %v90_v51 }
 0x144   :  { %v845_v53 = vpop.eup %844 }
 0x145   :  { %v93_v28 = vmul.f32 %v845_v53, %v932_v34  ;;  %v95_v24 = vmul.f32 %v845_v53, %v938_v39  ;;  %v92_v59 = vmul.f32 %v845_v53, %v930_v33  ;;  %v94_v60 = vmul.f32 %v845_v53, %v934_v36  ;;  %v834_v36 = vld [vmem:[%s1097_s5] sm:$0xff]  }
 0x146   :  { %v179_v2 = vadd.f32 %v169_v54, %v134_v57  ;;  %v181_v4 = vadd.f32 %v177_v55, %v136_v58  ;;  %v178_v6 = vadd.f32 %v165_v25, %v133_v26  ;;  %v180_v7 = vadd.f32 %v173_v56, %v135_v61 }
 0x147   :  { %v138_v62 = vmul.f32 %v124_v46, %v93_v28  ;;  %v140_v63 = vmul.f32 %v132_v48, %v95_v24  ;;  %v137_v0 = vmul.f32 %v120_v50, %v92_v59  ;;  %v139_v1 = vmul.f32 %v128_v52, %v94_v60 }
 0x149   :  { %v183_v3 = vadd.f32 %v169_v54, %v138_v62  ;;  %v185_v5 = vadd.f32 %v177_v55, %v140_v63  ;;  %v182_v34 = vadd.f32 %v165_v25, %v137_v0  ;;  %v184_v8 = vadd.f32 %v173_v56, %v139_v1  ;;  %v569_v62 = vld [vmem:[%s1099_s6] sm:$0x1] }
 0x14a   :  { %v570_v63 = vunpack.c.l.bf16 %v569_v62 }
 0x14b   :  { %v187_v39 = vpack.c.bf16 %v183_v3, %v179_v2  ;;  %v189_v9 = vpack.c.bf16 %v185_v5, %v181_v4  ;;  %v186_v10 = vpack.c.bf16 %v182_v34, %v178_v6  ;;  %v188_v33 = vpack.c.bf16 %v184_v8, %v180_v7 }
 0x14c   :  { %v574_v0 = vrot.slane %v570_v63, %v1038_v29 }
 0x14d   :  { %484 = vmatprep.mubr.bf16.mxu0 %v187_v39  ;;  %525 = vmatprep.mubr.bf16.mxu1 %v189_v9 }
 0x14e   :  { %485 = vmatmul.mubr.bf16.vlgmr.msra.gmra.mrb[0].mxu0 %v186_v10  ;;  %526 = vmatmul.mubr.bf16.vlgmr.msra.gmra.mrb[0].mxu1 %v188_v33 }
 0x14f   :  { %781 = vmatpush3.bf16.msra.mxu0 %v834_v36  ;;  %796 = vmatprep.mubr.msk.bf16.mxu0 %vm851_vm0, %v850_v11 }
 0x150   :  { %782 = vmatprep.subr.bf16.mxu0 %v850_v11 }
 0x153   :  { %783 = vmatpush3.bf16.msra.mxu0 %v835_v12 }
 0x154   :  { %784 = vmatprep.subr.bf16.mxu0 %v850_v11 }
 0x157   :  { %785 = vmatpush3.bf16.msra.mxu0 %v836_v13 }
 0x158   :  { %786 = vmatprep.subr.bf16.mxu0 %v850_v11 }
 0x15b   :  { %787 = vmatpush3.bf16.msra.mxu0 %v837_v14 }
 0x15c   :  { %788 = vmatprep.subr.bf16.mxu0 %v850_v11 }
 0x15f   :  { %789 = vmatpush3.bf16.msra.mxu0 %v838_v15 }
 0x160   :  { %790 = vmatprep.subr.bf16.mxu0 %v850_v11 }
 0x163   :  { %791 = vmatpush3.bf16.msra.mxu0 %v839_v16 }
 0x164   :  { %792 = vmatprep.subr.bf16.mxu0 %v850_v11 }
 0x167   :  { %793 = vmatpush3.bf16.msra.mxu0 %v840_v17 }
 0x168   :  { %794 = vmatprep.subr.bf16.mxu0 %v850_v11 }
 0x16b   :  { %795 = vmatpush3.bf16.msra.mxu0 %v841_v18 }
 0x221   :  { %v743_v21 = vpop.f32.mrb[0].mxu0  ;;  %v765_v22 = vpop.f32.mrb[0].mxu1 }
 0x222   :  { %v744_v27 = vpop.f32.mrb[1].mxu0  ;;  %v766_v30 = vpop.f32.mrb[1].mxu1 }
 0x223   :  { %v745_v31 = vadd.f32 %v744_v27, %v743_v21  ;;  %v767_v32 = vadd.f32 %v766_v30, %v765_v22  ;;  %v746_v35 = vpop.f32.mrb[2].mxu0  ;;  %v768_v37 = vpop.f32.mrb[2].mxu1 }
 0x224   :  { %v747_v38 = vpop.f32.mrb[3].mxu0  ;;  %v769_v40 = vpop.f32.mrb[3].mxu1 }
 0x225   :  { %v487_v41 = vadd.f32 %v745_v31, %v259_v23  ;;  %v748_v42 = vadd.f32 %v747_v38, %v746_v35  ;;  %v770_v43 = vadd.f32 %v769_v40, %v768_v37 }
 0x227   :  { %v528_v44 = vadd.f32 %v767_v32, %v487_v41  ;;  %v490_v45 = vadd.f32 %v748_v42, %v259_v23 }
 0x229   :  { %v534_v46 = vmul.f32 %v528_v44, %v528_v44  ;;  %v531_v47 = vadd.f32 %v770_v43, %v490_v45 }
 0x22b   :  { %v536_v48 = vmul.f32 %v534_v46, %v528_v44  ;;  %v535_v49 = vmul.f32 %v531_v47, %v531_v47 }
 0x22d   :  { %v538_v50 = vmul.f32 0.044715, %v536_v48  ;;  %v537_v51 = vmul.f32 %v535_v49, %v531_v47 }
 0x22f   :  { %v540_v52 = vadd.f32 %v538_v50, %v528_v44  ;;  %v539_v53 = vmul.f32 0.044715, %v537_v51 }
 0x231   :  { %v542_v54 = vmul.f32 0.7978846, %v540_v52  ;;  %v541_v55 = vadd.f32 %v539_v53, %v531_v47 }
 0x233   :  { %846 = vtanh.f32 %v542_v54  ;;  %v543_v25 = vmul.f32 0.7978846, %v541_v55 }
 0x235   :  { %848 = vtanh.f32 %v543_v25 }
 0x23d   :  { %v847_v56 = vpop.eup %846 }
 0x23e   :  { %v546_v28 = vadd.f32 1.0, %v847_v56 }
 0x23f   :  { %v849_v57 = vpop.eup %848 }
 0x240   :  { %v547_v24 = vadd.f32 1.0, %v849_v57  ;;  %v548_v58 = vmul.f32 0.5, %v546_v28 }
 0x242   :  { %v549_v59 = vmul.f32 0.5, %v547_v24  ;;  %v550_v26 = vmul.f32 %v548_v58, %v528_v44 }
 0x244   :  { %v551_v60 = vmul.f32 %v549_v59, %v531_v47 }
 0x246   :  { %v552_v61 = vpack.c.bf16 %v551_v60, %v550_v26 }
 0x248   :  { %797 = vmatmul.mubr.bf16.vlgmr.msra.gmra.mrb[4].mxu0 %v552_v61 }
 0x31b   :  { %v657_v1 = vpop.f32.mrb[4].mxu0 }
 0x31c   :  { %v798_v2 = vpop.f32.mrb[5].mxu0  ;;  %v658_v4 = vadd.f32 %v657_v1, %v574_v0 }
 0x31d   :  { %v660_v3 = vpop.f32.mrb[6].mxu0 }
 0x31e   :  { %v661_v5 = vadd.f32 %v660_v3, %v574_v0  ;;  %v799_v6 = vpop.f32.mrb[7].mxu0 }
 0x320   :  { %v725_v34 = vpack.c.bf16 %v661_v5, %v658_v4 }
 0x322   :  { %726 = vst [vmem:[%s1100_s7] sm:$0xff] %v725_v34  }

// kernel: internvl_forward.25
= control target key start
LH: loop header
LB: loop body
LE: loop exit
PB: predicated region body
PF: predicated region fallthrough
CT: control target
= control target key end

     0   :  { %v522_v37 = vmov 0   ;;  %v65_v49 = vlaneseq  ;;  %s673_s0 = inlined_call_operand.vmem [shape: bf16[24,128], index: 0, kind: input, shape index: {}]   ;;  %s674_s3 = inlined_call_operand.vmem [shape: bf16[128,384], index: 3, kind: input, shape index: {}]   ;;  %s675_s1 = inlined_call_operand.vmem [shape: bf16[1,128], index: 1, kind: input, shape index: {}]   ;;  %s676_s2 = inlined_call_operand.vmem [shape: bf16[1,128], index: 2, kind: input, shape index: {}]   ;;  %s677_s4 = inlined_call_operand.vmem [shape: bf16[1,384], index: 4, kind: input, shape index: {}]   ;;  %s678_s5 = inlined_call_operand.vmem [shape: bf16[24,384], index: 5, kind: output, shape index: {}]  }
   0x1   :  { %v450_v0 = vld [vmem:[%s673_s0] sm:$0xff]   ;;  %v23_v1 = vld [vmem:[%s673_s0 + $0x8] sm:$0xf]  ;;  %v494_v24 = vld [vmem:[%s674_s3 + $0x30] ss:$12 sps:$4 sm:$0xff]   ;;  %303 = vmatprep.mubr.bf16.mxu0 %v522_v37 }
   0x2   :  { %v451_v2 = vunpack.c.l.bf16 %v450_v0  ;;  %v26_v3 = vunpack.c.l.bf16 %v23_v1  ;;  %v452_v4 = vunpack.c.h.bf16 %v450_v0  ;;  %v484_v5 = vld [vmem:[%s674_s3 + $0x4] ss:$12 sps:$4 sm:$0xff]   ;;  %v486_v6 = vld [vmem:[%s674_s3] ss:$12 sps:$4 sm:$0xff]   ;;  %v487_v7 = vld [vmem:[%s674_s3 + $0x8] ss:$12 sps:$4 sm:$0xff]  }
   0x3   :  { %271 = vmatprep.subr.bf16.mxu0 %v484_v5  ;;  %v488_v8 = vld [vmem:[%s674_s3 + $0x1c] ss:$12 sps:$4 sm:$0xff]   ;;  %463 = vmatprep.subr.bf16.mxu1 %v487_v7  ;;  %v490_v21 = vld [vmem:[%s674_s3 + $0x18] ss:$12 sps:$4 sm:$0xff]   ;;  %v491_v22 = vld [vmem:[%s674_s3 + $0x20] ss:$12 sps:$4 sm:$0xff]  }
   0x4   :  { %31 = vadd.xlane.f32.xlu0 %v451_v2  ;;  %35 = vadd.xlane.f32.xlu1 %v26_v3  ;;  %v492_v23 = vld [vmem:[%s674_s3 + $0x34] ss:$12 sps:$4 sm:$0xff]   ;;  %v495_v25 = vld [vmem:[%s674_s3 + $0x38] ss:$12 sps:$4 sm:$0xff]   ;;  %v499_v28 = vld [vmem:[%s674_s3 + $0x50] ss:$12 sps:$4 sm:$0xff]  }
   0x5   :  { %272 = vmatpush1.bf16.msra.mxu0 %v486_v6  ;;  %464 = vmatpush3.bf16.msra.mxu1 %v487_v7  ;;  %v496_v26 = vld [vmem:[%s674_s3 + $0x4c] ss:$12 sps:$4 sm:$0xff]   ;;  %v498_v27 = vld [vmem:[%s674_s3 + $0x48] ss:$12 sps:$4 sm:$0xff]   ;;  %v500_v29 = vld [vmem:[%s674_s3 + $0x64] ss:$12 sps:$4 sm:$0xff]  }
   0x6   :  { %273 = vmatprep.subr.bf16.mxu0 %v488_v8  ;;  %465 = vmatprep.subr.bf16.mxu1 %v491_v22  ;;  %v502_v30 = vld [vmem:[%s674_s3 + $0x60] ss:$12 sps:$4 sm:$0xff]   ;;  %v503_v31 = vld [vmem:[%s674_s3 + $0x68] ss:$12 sps:$4 sm:$0xff]   ;;  %v506_v34 = vld [vmem:[%s674_s3 + $0x78] ss:$12 sps:$4 sm:$0xff]  }
   0x7   :  { %v504_v32 = vld [vmem:[%s674_s3 + $0x7c] ss:$12 sps:$4 sm:$0xff]   ;;  %v507_v33 = vld [vmem:[%s674_s3 + $0x80] ss:$12 sps:$4 sm:$0xff]   ;;  %v511_v36 = vld [vmem:[%s674_s3 + $0x98] ss:$12 sps:$4 sm:$0xff]  }
   0x8   :  { %33 = vadd.xlane.f32.xlu0 %v452_v4  ;;  %v508_v35 = vld [vmem:[%s674_s3 + $0x94] ss:$12 sps:$4 sm:$0xff]   ;;  %v510_v38 = vld [vmem:[%s674_s3 + $0x90] ss:$12 sps:$4 sm:$0xff]   ;;  %v512_v39 = vld [vmem:[%s674_s3 + $0xac] ss:$12 sps:$4 sm:$0xff]  }
   0x9   :  { %274 = vmatpush1.bf16.msra.mxu0 %v490_v21  ;;  %466 = vmatpush3.bf16.msra.mxu1 %v491_v22  ;;  %v515_v40 = vld [vmem:[%s674_s3 + $0xb0] ss:$12 sps:$4 sm:$0xff]   ;;  %v514_v41 = vld [vmem:[%s674_s3 + $0xa8] ss:$12 sps:$4 sm:$0xff]   ;;  %v66_v52 = vshrl.u32 %v65_v49, 7 }
   0xa   :  { %275 = vmatprep.subr.bf16.mxu0 %v492_v23  ;;  %467 = vmatprep.subr.bf16.mxu1 %v495_v25  ;;  %v27_v53 = vld [vmem:[%s675_s1] sm:$0x1] }
   0xb   :  { %v28_v54 = vunpack.c.l.bf16 %v27_v53  ;;  %v67_v55 = vsub.s32 0, %v66_v52  ;;  %v29_v56 = vld [vmem:[%s676_s2] sm:$0x1] }
   0xc   :  { %v30_v58 = vunpack.c.l.bf16 %v29_v56 }
   0xd   :  { %276 = vmatpush1.bf16.msra.mxu0 %v494_v24  ;;  %468 = vmatpush3.bf16.msra.mxu1 %v495_v25  ;;  %v68_v60 = vrot.slane %v28_v54, %v67_v55 }
   0xe   :  { %277 = vmatprep.subr.bf16.mxu0 %v496_v26  ;;  %469 = vmatprep.subr.bf16.mxu1 %v499_v28 }
  0x11   :  { %278 = vmatpush1.bf16.msra.mxu0 %v498_v27  ;;  %470 = vmatpush3.bf16.msra.mxu1 %v499_v28 }
  0x12   :  { %279 = vmatprep.subr.bf16.mxu0 %v500_v29  ;;  %471 = vmatprep.subr.bf16.mxu1 %v503_v31 }
  0x15   :  { %280 = vmatpush1.bf16.msra.mxu0 %v502_v30  ;;  %472 = vmatpush3.bf16.msra.mxu1 %v503_v31 }
  0x16   :  { %281 = vmatprep.subr.bf16.mxu0 %v504_v32  ;;  %473 = vmatprep.subr.bf16.mxu1 %v507_v33 }
  0x19   :  { %282 = vmatpush1.bf16.msra.mxu0 %v506_v34  ;;  %474 = vmatpush3.bf16.msra.mxu1 %v507_v33 }
  0x1a   :  { %283 = vmatprep.subr.bf16.mxu0 %v508_v35  ;;  %475 = vmatprep.subr.bf16.mxu1 %v511_v36 }
  0x1d   :  { %284 = vmatpush1.bf16.msra.mxu0 %v510_v38  ;;  %476 = vmatpush3.bf16.msra.mxu1 %v511_v36 }
  0x1e   :  { %285 = vmatprep.subr.bf16.mxu0 %v512_v39  ;;  %477 = vmatprep.subr.bf16.mxu1 %v515_v40 }
  0x21   :  { %286 = vmatpush1.bf16.msra.mxu0 %v514_v41  ;;  %478 = vmatpush3.bf16.msra.mxu1 %v515_v40 }
  0x91   :  { %v32_v9 = vpop.xlane.xlu0 %31  ;;  %v36_v10 = vpop.xlane.xlu1 %35 }
  0x92   :  { %v38_v11 = vmul.f32 0.0078125, %v32_v9  ;;  %v40_v12 = vmul.f32 0.0078125, %v36_v10  ;;  %v113_v10 = vld [vmem:[%s677_s4] sm:$0x7] }
  0x94   :  { %v571_v13 = vsub.f32 %v451_v2, %v38_v11  ;;  %v573_v14 = vsub.f32 %v26_v3, %v40_v12  ;;  %v75_v2 = vrot.slane %v30_v58, %v67_v55  ;;  %v114_v11 = vunpack.c.l.bf16 %v113_v10 }
  0x95   :  { %v34_v15 = vpop.xlane.xlu0 %33  ;;  %v122_v12 = vsub.s32 2, %v66_v52 }
  0x96   :  { %v39_v16 = vmul.f32 0.0078125, %v34_v15  ;;  %v44_v17 = vmul.f32 %v571_v13, %v571_v13  ;;  %v46_v19 = vmul.f32 %v573_v14, %v573_v14 }
  0x97   :  { %v123_v15 = vrot.slane %v114_v11, %v122_v12 }
  0x98   :  { %v577_v18 = vsub.f32 %v452_v4, %v39_v16  ;;  %47 = vadd.xlane.f32.xlu1 %v44_v17 }
  0x9a   :  { %v45_v20 = vmul.f32 %v577_v18, %v577_v18 }
  0x9c   :  { %51 = vadd.xlane.f32.xlu1 %v46_v19  ;;  %49 = vadd.xlane.f32.xlu0 %v45_v20 }
 0x125   :  { %v48_v42 = vpop.xlane.xlu1 %47 }
 0x126   :  { %v53_v43 = vmul.f32 0.0078125, %v48_v42 }
 0x128   :  { %v56_v44 = vadd.f32 1e-06, %v53_v43 }
 0x129   :  { %v52_v45 = vpop.xlane.xlu1 %51  ;;  %v50_v46 = vpop.xlane.xlu0 %49 }
 0x12a   :  { %516 = vrsqrt.f32 %v56_v44  ;;  %v55_v47 = vmul.f32 0.0078125, %v52_v45  ;;  %v54_v48 = vmul.f32 0.0078125, %v50_v46 }
 0x12c   :  { %v58_v50 = vadd.f32 1e-06, %v55_v47  ;;  %v57_v51 = vadd.f32 1e-06, %v54_v48 }
 0x12e   :  { %518 = vrsqrt.f32 %v58_v50 }
 0x12f   :  { %520 = vrsqrt.f32 %v57_v51 }
 0x134   :  { %v517_v57 = vpop.eup %516 }
 0x135   :  { %v62_v59 = vmul.f32 %v517_v57, %v571_v13  ;;  %v126_v13 = vsub.s32 4, %v66_v52 }
 0x137   :  { %v69_v1 = vmul.f32 %v68_v60, %v62_v59  ;;  %v127_v16 = vrot.slane %v114_v11, %v126_v13 }
 0x138   :  { %v519_v61 = vpop.eup %518 }
 0x139   :  { %v521_v62 = vpop.eup %520  ;;  %v64_v63 = vmul.f32 %v519_v61, %v573_v14  ;;  %v76_v6 = vadd.f32 %v75_v2, %v69_v1  ;;  %v119_v14 = vrot.slane %v114_v11, %v67_v55  ;;  %v142_v19 = vrot.slane %v127_v16, %v67_v55 }
 0x13a   :  { %v63_v0 = vmul.f32 %v521_v62, %v577_v18  ;;  %v138_v18 = vrot.slane %v123_v15, %v67_v55 }
 0x13b   :  { %v71_v3 = vmul.f32 %v68_v60, %v64_v63  ;;  %v134_v17 = vrot.slane %v119_v14, %v67_v55 }
 0x13c   :  { %v70_v4 = vmul.f32 %v68_v60, %v63_v0 }
 0x13d   :  { %v78_v5 = vadd.f32 %v75_v2, %v71_v3 }
 0x13e   :  { %v77_v7 = vadd.f32 %v75_v2, %v70_v4 }
 0x13f   :  { %v80_v8 = vpack.c.bf16 %v78_v5, %v78_v5 }
 0x140   :  { %v79_v9 = vpack.c.bf16 %v77_v7, %v76_v6 }
 0x142   :  { %304 = vmatmul.mubr.bf16.vlgmr.msra.gmra.mrb[0].mxu0 %v79_v9  ;;  %479 = vmatprep.mubr.bf16.mxu1 %v79_v9 }
 0x143   :  { %480 = vmatmul.mubr.bf16.vlgmr.msra.gmra.mrb[0].mxu1 %v80_v8  ;;  %313 = vmatprep.mubr.bf16.mxu0 %v522_v37 }
 0x14a   :  { %314 = vmatmul.mubr.bf16.gmra.mrb[4].mxu0 %v80_v8 }
 0x215   :  { %v305_v20 = vpop.f32.mrb[0].mxu0 }
 0x216   :  { %v306_v21 = vadd.f32 %v305_v20, %v134_v17  ;;  %v307_v22 = vpop.f32.mrb[1].mxu0  ;;  %v481_v23 = vpop.f32.mrb[0].mxu1 }
 0x217   :  { %v308_v24 = vadd.f32 %v307_v22, %v138_v18  ;;  %v365_v25 = vadd.f32 %v481_v23, %v142_v19  ;;  %v309_v26 = vpop.f32.mrb[2].mxu0  ;;  %v356_v27 = vpop.f32.mrb[1].mxu1 }
 0x218   :  { %v310_v28 = vadd.f32 %v309_v26, %v134_v17  ;;  %v357_v29 = vadd.f32 %v356_v27, %v142_v19  ;;  %v311_v30 = vpop.f32.mrb[3].mxu0  ;;  %v482_v31 = vpop.f32.mrb[2].mxu1 }
 0x219   :  { %v443_v32 = vpack.c.bf16 %v308_v24, %v306_v21  ;;  %v448_v33 = vpack.c.bf16 %v365_v25, %v365_v25  ;;  %v312_v34 = vadd.f32 %v311_v30, %v138_v18  ;;  %v359_v35 = vpop.f32.mrb[3].mxu1 }
 0x21a   :  { %v444_v36 = vpack.c.bf16 %v357_v29, %v357_v29  ;;  %v360_v37 = vadd.f32 %v359_v35, %v142_v19 }
 0x21b   :  { %403 = vst [vmem:[%s678_s5] sm:$0xff] %v443_v32  ;;  %408 = vst [vmem:[%s678_s5 + $0x20] sm:$0xf] %v448_v33  ;;  %v445_v38 = vpack.c.bf16 %v312_v34, %v310_v28 }
 0x21c   :  { %404 = vst [vmem:[%s678_s5 + $0x8] sm:$0xf] %v444_v36  ;;  %v446_v39 = vpack.c.bf16 %v360_v37, %v360_v37 }
 0x21d   :  { %405 = vst [vmem:[%s678_s5 + $0xc] sm:$0xff] %v445_v38  ;;  %v315_v40 = vpop.f32.mrb[4].mxu0 }
 0x21e   :  { %406 = vst [vmem:[%s678_s5 + $0x14] sm:$0xf] %v446_v39  ;;  %v316_v41 = vadd.f32 %v315_v40, %v134_v17  ;;  %v317_v42 = vpop.f32.mrb[5].mxu0 }
 0x21f   :  { %v318_v43 = vadd.f32 %v317_v42, %v138_v18  ;;  %v319_v44 = vpop.f32.mrb[6].mxu0 }
 0x220   :  { %v320_v45 = vpop.f32.mrb[7].mxu0 }
 0x221   :  { %v447_v46 = vpack.c.bf16 %v318_v43, %v316_v41 }
 0x223   :  { %407 = vst [vmem:[%s678_s5 + $0x18] sm:$0xff] %v447_v46 }

// kernel: internvl_forward.26
= control target key start
LH: loop header
LB: loop body
LE: loop exit
PB: predicated region body
PF: predicated region fallthrough
CT: control target
= control target key end

     0   :  { %vm28_vm0 = vcmask 261120   ;;  %v92_v7 = vlaneseq  ;;  %vm104_vm2 = vcmask 195584   ;;  %vm155_vm5 = vcmask 1043456   ;;  %s1001_s16 = smov 96   ;;  %s1003_s17 = smov 32   ;;  %s1245_s0 = inlined_call_operand.vmem [shape: bf16[1,24,384], index: 0, kind: input, shape index: {}]   ;;  %s1246_s1 = inlined_call_operand.vmem [shape: bf16[1,24,128], index: 1, kind: output, shape index: {}]  }
   0x1   :  { %v1017_v0 = vld [vmem:[%s1245_s0 + $0x4] ss:$12 sps:$4 sm:$0xff]   ;;  %v13_v1 = vld [vmem:[%s1245_s0 + $0x18] sm:$0xff]  ;;  %v1025_v2 = vld [vmem:[%s1245_s0] ss:$12 sps:$4 sm:$0xff]   ;;  %vm763_vm6 = vcmask 785408  }
   0x2   :  { %916 = vmatprep.subr.msk.bf16.mxu0 %vm28_vm0, %v1017_v0  ;;  %v36_v3 = vsel %vm28_vm0, %v1017_v0, 0  ;;  %v1031_v4 = vcombine.high %v13_v1, %v13_v1  ;;  %856 = vmatprep.mubr.msk.bf16.mxu0 %vm28_vm0, %v1025_v2  ;;  %v1039_v6 = vcombine.low %v13_v1, %v13_v1  ;;  %v1043_v8 = vshrl.u32 %v92_v7, 7  ;;  %v1077_v40 = vld [vmem:[%s1245_s0 + $0x8] ss:$12 sps:$4 sm:$0xff]   ;;  %v1082_v41 = vld [vmem:[%s1245_s0 + $0x20] ss:$0 sps:$4 sm:$0xff]  }
   0x3   :  { %853 = vmatpush3.bf16.xpose.msra.mxu0 %v36_v3  ;;  %v1048_v10 = vand.u32 127, %v92_v7  ;;  %860 = vmatprep.subr.bf16.mxu1 %v1077_v40  ;;  %v157_v42 = vsel %vm155_vm5, %v1082_v41, 0  ;;  %s1002_s0 = smov 64   ;;  %vm759_vm7 = vcmask 523264  }
   0x4   :  { %917 = vmatprep.subr.msk.bf16.mxu0 %vm28_vm0, %v1031_v4  ;;  %v39_v5 = vsel %vm28_vm0, %v1031_v4, 0  ;;  %v1046_v9 = vadd.s32 16, %v1043_v8  ;;  %v1051_v11 = vadd.s32 8, %v1043_v8  ;;  %861 = vmatpush3.bf16.msra.mxu1 %v1077_v40 }
   0x5   :  { %vm98_vm3 = vcmp.ge.s32.totalorder %v1043_v8, %v1048_v10  ;;  %918 = vmatprep.subr.msk.bf16.mxu1 %vm155_vm5, %v1082_v41 }
   0x6   :  { %vm100_vm1 = vcmp.ge.s32.totalorder %v1046_v9, %v1048_v10  ;;  %vm99_vm4 = vcmp.ge.s32.totalorder %v1051_v11, %v1048_v10 }
   0x8   :  { %863 = vmatpush3.bf16.msra.mxu1 %v157_v42 }
   0xb   :  { %855 = vmatpush3.bf16.xpose.msra.mxu0 %v39_v5 }
  0x12   :  { %857 = vmatmul.mubr.msk.bf16.vlgmr.msra.gmra.mrb[0].mxu0 %vm28_vm0, %v1039_v6 }
  0xe5   :  { %v858_v12 = vpop.f32.mrb[0].mxu0 }
  0xe6   :  { %v91_v13 = vmul.f32 0.17677669, %v858_v12  ;;  %v75_v14 = vpop.f32.mrb[1].mxu0 }
  0xe7   :  { %v89_v15 = vmul.f32 0.17677669, %v75_v14  ;;  %v859_v16 = vpop.f32.mrb[2].mxu0 }
  0xe8   :  { %v78_v17 = vpop.f32.mrb[3].mxu0  ;;  %v103_v18 = vsel %vm100_vm1, %v91_v13, -1e+30 }
  0xe9   :  { %v90_v19 = vmul.f32 0.17677669, %v78_v17  ;;  %v111_v20 = vsel %vm104_vm2, %v103_v18, -inf  ;;  %v101_v21 = vsel %vm98_vm3, %v89_v15, -1e+30 }
  0xea   :  { %112 = vmax.xlane.f32.xlu1 %v111_v20  ;;  %v105_v22 = vsel %vm104_vm2, %v101_v21, -inf }
  0xeb   :  { %106 = vmax.xlane.f32.xlu0 %v105_v22  ;;  %v102_v23 = vsel %vm99_vm4, %v90_v19, -1e+30 }
  0xec   :  { %v108_v24 = vsel %vm104_vm2, %v102_v23, -inf }
  0xef   :  { %109 = vmax.xlane.f32.xlu0 %v108_v24 }
 0x177   :  { %v113_v25 = vpop.xlane.xlu1 %112 }
 0x178   :  { %v116_v26 = vsub.f32 %v103_v18, %v113_v25  ;;  %v107_v27 = vpop.xlane.xlu0 %106 }
 0x179   :  { %v114_v28 = vsub.f32 %v101_v21, %v107_v27 }
 0x17a   :  { %v121_v29 = vmul.f32 1.442695, %v116_v26 }
 0x17b   :  { %v117_v30 = vmul.f32 1.442695, %v114_v28 }
 0x17c   :  { %v110_v31 = vpop.xlane.xlu0 %109 }
 0x17d   :  { %953 = vpow2.f32 %v117_v30  ;;  %v115_v32 = vsub.f32 %v102_v23, %v110_v31 }
 0x17e   :  { %955 = vpow2.f32 %v121_v29 }
 0x17f   :  { %v119_v33 = vmul.f32 1.442695, %v115_v32 }
 0x181   :  { %957 = vpow2.f32 %v119_v33 }
 0x187   :  { %v954_v34 = vpop.eup %953 }
 0x188   :  { %v123_v35 = vsel %vm104_vm2, %v954_v34, 0.0  ;;  %v956_v36 = vpop.eup %955 }
 0x189   :  { %124 = vadd.xlane.f32.xlu1 %v123_v35  ;;  %v129_v38 = vsel %vm104_vm2, %v956_v36, 0.0 }
 0x18b   :  { %v958_v37 = vpop.eup %957 }
 0x18c   :  { %v126_v39 = vsel %vm104_vm2, %v958_v37, 0.0 }
 0x18d   :  { %130 = vadd.xlane.f32.xlu1 %v129_v38  ;;  %127 = vadd.xlane.f32.xlu0 %v126_v39 }
 0x19e   :  { %213 = vrot.lane.b32.xlu1 %v1031_v4, %s1001_s16 }
 0x1a2   :  { %207 = vrot.lane.b32.xlu1 %v1025_v2, %s1001_s16 }
 0x1a3   :  { %211 = vrot.lane.b32.xlu0 %v1017_v0, %s1001_s16 }
 0x1a6   :  { %209 = vrot.lane.b32.xlu1 %v1039_v6, %s1001_s16 }
 0x216   :  { %v125_v43 = vpop.xlane.xlu1 %124 }
 0x217   :  { %959 = vrcp.f32 %v125_v43 }
 0x21a   :  { %v131_v44 = vpop.xlane.xlu1 %130  ;;  %v128_v45 = vpop.xlane.xlu0 %127 }
 0x21b   :  { %961 = vrcp.f32 %v131_v44 }
 0x21c   :  { %963 = vrcp.f32 %v128_v45 }
 0x21e   :  { %v212_v46 = vpop.permute.xlu0 %211  ;;  %v214_v48 = vpop.permute.xlu1 %213 }
 0x21f   :  { %919 = vmatprep.subr.msk.bf16.mxu1 %vm28_vm0, %v212_v46  ;;  %v222_v56 = vsel %vm28_vm0, %v212_v46, 0  ;;  %v225_v58 = vsel %vm28_vm0, %v214_v48, 0 }
 0x221   :  { %v960_v47 = vpop.eup %959 }
 0x222   :  { %v135_v52 = vmul.f32 %v960_v47, %v954_v34  ;;  %v208_v57 = vpop.permute.xlu1 %207 }
 0x225   :  { %v962_v49 = vpop.eup %961 }
 0x226   :  { %v964_v50 = vpop.eup %963  ;;  %v137_v51 = vmul.f32 %v962_v49, %v956_v36  ;;  %v210_v59 = vpop.permute.xlu1 %209 }
 0x227   :  { %v136_v53 = vmul.f32 %v964_v50, %v958_v37 }
 0x228   :  { %v139_v54 = vpack.c.bf16 %v137_v51, %v137_v51 }
 0x229   :  { %v138_v55 = vpack.c.bf16 %v136_v53, %v135_v52 }
 0x22b   :  { %864 = vmatprep.mubr.msk.bf16.mxu1 %vm104_vm2, %v138_v55 }
 0x22c   :  { %865 = vmatmul.mubr.msk.bf16.vlgmr.msra.gmra.mrb[0].mxu1 %vm104_vm2, %v139_v54 }
 0x22d   :  { %869 = vmatpush3.bf16.xpose.msra.mxu1 %v222_v56  ;;  %872 = vmatprep.mubr.msk.bf16.mxu1 %vm28_vm0, %v208_v57 }
 0x22e   :  { %920 = vmatprep.subr.msk.bf16.mxu1 %vm28_vm0, %v214_v48 }
 0x235   :  { %871 = vmatpush3.bf16.xpose.msra.mxu1 %v225_v58 }
 0x23c   :  { %873 = vmatmul.mubr.msk.bf16.vlgmr.msra.gmra.mrb[4].mxu1 %vm28_vm0, %v210_v59 }
 0x2ff   :  { %v1106_v60 = vpop.f32.mrb[0].mxu1 }
 0x300   :  { %v1108_v61 = vpop.f32.mrb[1].mxu1 }
 0x301   :  { %v867_v62 = vpop.f32.mrb[2].mxu1 }
 0x302   :  { %v1110_v63 = vpop.f32.mrb[3].mxu1 }
 0x30f   :  { %v874_v1 = vpop.f32.mrb[4].mxu1 }
 0x310   :  { %v261_v3 = vpop.f32.mrb[5].mxu1  ;;  %v277_v5 = vmul.f32 0.17677669, %v874_v1 }
 0x311   :  { %v275_v7 = vmul.f32 0.17677669, %v261_v3  ;;  %v875_v12 = vpop.f32.mrb[6].mxu1 }
 0x312   :  { %v264_v13 = vpop.f32.mrb[7].mxu1  ;;  %v280_v18 = vsel %vm100_vm1, %v277_v5, -1e+30 }
 0x313   :  { %v276_v14 = vmul.f32 0.17677669, %v264_v13  ;;  %v278_v15 = vsel %vm98_vm3, %v275_v7, -1e+30  ;;  %v287_v20 = vsel %vm104_vm2, %v280_v18, -inf }
 0x314   :  { %v281_v16 = vsel %vm104_vm2, %v278_v15, -inf }
 0x315   :  { %282 = vmax.xlane.f32.xlu0 %v281_v16  ;;  %v279_v17 = vsel %vm99_vm4, %v276_v14, -1e+30 }
 0x316   :  { %v284_v19 = vsel %vm104_vm2, %v279_v17, -inf }
 0x317   :  { %285 = vmax.xlane.f32.xlu1 %v284_v19 }
 0x319   :  { %288 = vmax.xlane.f32.xlu0 %v287_v20 }
 0x3a2   :  { %v283_v21 = vpop.xlane.xlu0 %282 }
 0x3a3   :  { %v290_v22 = vsub.f32 %v278_v15, %v283_v21 }
 0x3a4   :  { %v286_v23 = vpop.xlane.xlu1 %285 }
 0x3a5   :  { %v293_v24 = vmul.f32 1.442695, %v290_v22  ;;  %v291_v25 = vsub.f32 %v279_v17, %v286_v23 }
 0x3a6   :  { %v289_v26 = vpop.xlane.xlu0 %288 }
 0x3a7   :  { %965 = vpow2.f32 %v293_v24  ;;  %v295_v27 = vmul.f32 1.442695, %v291_v25  ;;  %v292_v28 = vsub.f32 %v280_v18, %v289_v26 }
 0x3a9   :  { %967 = vpow2.f32 %v295_v27  ;;  %v297_v29 = vmul.f32 1.442695, %v292_v28 }
 0x3ab   :  { %969 = vpow2.f32 %v297_v29 }
 0x3b1   :  { %v966_v30 = vpop.eup %965 }
 0x3b2   :  { %v299_v31 = vsel %vm104_vm2, %v966_v30, 0.0 }
 0x3b3   :  { %v968_v32 = vpop.eup %967  ;;  %300 = vadd.xlane.f32.xlu0 %v299_v31 }
 0x3b4   :  { %v302_v35 = vsel %vm104_vm2, %v968_v32, 0.0 }
 0x3b5   :  { %v970_v33 = vpop.eup %969 }
 0x3b6   :  { %v305_v34 = vsel %vm104_vm2, %v970_v33, 0.0 }
 0x3b7   :  { %306 = vadd.xlane.f32.xlu1 %v305_v34  ;;  %303 = vadd.xlane.f32.xlu0 %v302_v35 }
 0x3c8   :  { %318 = vrot.lane.b32.xlu1 %v1082_v41, %s1001_s16 }
 0x3cc   :  { %382 = vrot.lane.b32.xlu1 %v1017_v0, %s1002_s0 }
 0x3cd   :  { %316 = vrot.lane.b32.xlu0 %v1077_v40, %s1001_s16 }
 0x3d0   :  { %384 = vrot.lane.b32.xlu1 %v1031_v4, %s1002_s0 }
 0x3d1   :  { %378 = vrot.lane.b32.xlu0 %v1025_v2, %s1002_s0 }
 0x3d4   :  { %380 = vrot.lane.b32.xlu1 %v1039_v6, %s1002_s0 }
 0x440   :  { %v301_v36 = vpop.xlane.xlu0 %300 }
 0x441   :  { %971 = vrcp.f32 %v301_v36 }
 0x444   :  { %v304_v37 = vpop.xlane.xlu0 %303  ;;  %v307_v38 = vpop.xlane.xlu1 %306 }
 0x445   :  { %973 = vrcp.f32 %v304_v37 }
 0x446   :  { %975 = vrcp.f32 %v307_v38 }
 0x448   :  { %v317_v39 = vpop.permute.xlu0 %316  ;;  %v319_v42 = vpop.permute.xlu1 %318 }
 0x449   :  { %876 = vmatprep.subr.bf16.mxu0 %v317_v39  ;;  %v328_v43 = vsel %vm155_vm5, %v319_v42, 0 }
 0x44a   :  { %877 = vmatpush3.bf16.msra.mxu0 %v317_v39 }
 0x44b   :  { %921 = vmatprep.subr.msk.bf16.mxu0 %vm155_vm5, %v319_v42  ;;  %v972_v45 = vpop.eup %971 }
 0x44c   :  { %v383_v44 = vpop.permute.xlu1 %382  ;;  %v311_v48 = vmul.f32 %v972_v45, %v966_v30  ;;  %v379_v53 = vpop.permute.xlu0 %378 }
 0x44d   :  { %v393_v54 = vsel %vm28_vm0, %v383_v44, 0 }
 0x44e   :  { %879 = vmatpush3.bf16.msra.mxu0 %v328_v43 }
 0x44f   :  { %v974_v46 = vpop.eup %973  ;;  %922 = vmatprep.subr.msk.bf16.mxu0 %vm28_vm0, %v383_v44 }
 0x450   :  { %v976_v47 = vpop.eup %975  ;;  %v312_v49 = vmul.f32 %v974_v46, %v968_v32  ;;  %v385_v55 = vpop.permute.xlu1 %384 }
 0x451   :  { %v313_v50 = vmul.f32 %v976_v47, %v970_v33  ;;  %v396_v56 = vsel %vm28_vm0, %v385_v55, 0 }
 0x452   :  { %v314_v51 = vpack.c.bf16 %v312_v49, %v311_v48 }
 0x453   :  { %v315_v52 = vpack.c.bf16 %v313_v50, %v313_v50 }
 0x454   :  { %880 = vmatprep.mubr.msk.bf16.mxu0 %vm104_vm2, %v314_v51  ;;  %v381_v57 = vpop.permute.xlu1 %380 }
 0x455   :  { %881 = vmatmul.mubr.msk.bf16.vlgmr.msra.gmra.mrb[4].mxu0 %vm104_vm2, %v315_v52 }
 0x456   :  { %888 = vmatprep.mubr.msk.bf16.mxu0 %vm28_vm0, %v379_v53 }
 0x457   :  { %885 = vmatpush3.bf16.xpose.msra.mxu0 %v393_v54 }
 0x458   :  { %923 = vmatprep.subr.msk.bf16.mxu0 %vm28_vm0, %v385_v55 }
 0x45f   :  { %887 = vmatpush3.bf16.xpose.msra.mxu0 %v396_v56 }
 0x466   :  { %889 = vmatmul.mubr.msk.bf16.vlgmr.msra.gmra.mrb[8].mxu0 %vm28_vm0, %v381_v57 }
 0x528   :  { %v1149_v58 = vpop.f32.mrb[4].mxu0 }
 0x529   :  { %v1151_v59 = vpop.f32.mrb[5].mxu0 }
 0x52a   :  { %v883_v62 = vpop.f32.mrb[6].mxu0 }
 0x52b   :  { %v1153_v1 = vpop.f32.mrb[7].mxu0 }
 0x52c   :  { %v931_v3 = vpack.i.bf16 %v1153_v1, %v1151_v59 }
 0x539   :  { %v890_v5 = vpop.f32.mrb[8].mxu0 }
 0x53a   :  { %v432_v7 = vpop.f32.mrb[9].mxu0  ;;  %v448_v12 = vmul.f32 0.17677669, %v890_v5 }
 0x53b   :  { %v446_v13 = vmul.f32 0.17677669, %v432_v7  ;;  %v891_v14 = vpop.f32.mrb[10].mxu0 }
 0x53c   :  { %v435_v15 = vpop.f32.mrb[11].mxu0  ;;  %v451_v20 = vsel %vm100_vm1, %v448_v12, -1e+30 }
 0x53d   :  { %v447_v16 = vmul.f32 0.17677669, %v435_v15  ;;  %v449_v17 = vsel %vm98_vm3, %v446_v13, -1e+30  ;;  %v458_v22 = vsel %vm104_vm2, %v451_v20, -inf }
 0x53e   :  { %v452_v18 = vsel %vm104_vm2, %v449_v17, -inf }
 0x53f   :  { %453 = vmax.xlane.f32.xlu0 %v452_v18  ;;  %v450_v19 = vsel %vm99_vm4, %v447_v16, -1e+30 }
 0x540   :  { %v455_v21 = vsel %vm104_vm2, %v450_v19, -inf }
 0x541   :  { %456 = vmax.xlane.f32.xlu1 %v455_v21 }
 0x543   :  { %459 = vmax.xlane.f32.xlu0 %v458_v22 }
 0x5cc   :  { %v454_v23 = vpop.xlane.xlu0 %453 }
 0x5cd   :  { %v461_v24 = vsub.f32 %v449_v17, %v454_v23 }
 0x5ce   :  { %v457_v25 = vpop.xlane.xlu1 %456 }
 0x5cf   :  { %v464_v26 = vmul.f32 1.442695, %v461_v24  ;;  %v462_v27 = vsub.f32 %v450_v19, %v457_v25 }
 0x5d0   :  { %v460_v28 = vpop.xlane.xlu0 %459 }
 0x5d1   :  { %977 = vpow2.f32 %v464_v26  ;;  %v466_v29 = vmul.f32 1.442695, %v462_v27  ;;  %v463_v30 = vsub.f32 %v451_v20, %v460_v28 }
 0x5d3   :  { %979 = vpow2.f32 %v466_v29  ;;  %v468_v31 = vmul.f32 1.442695, %v463_v30 }
 0x5d5   :  { %981 = vpow2.f32 %v468_v31 }
 0x5db   :  { %v978_v32 = vpop.eup %977 }
 0x5dc   :  { %v470_v33 = vsel %vm104_vm2, %v978_v32, 0.0 }
 0x5dd   :  { %v980_v34 = vpop.eup %979  ;;  %471 = vadd.xlane.f32.xlu0 %v470_v33 }
 0x5de   :  { %v473_v37 = vsel %vm104_vm2, %v980_v34, 0.0 }
 0x5df   :  { %v982_v35 = vpop.eup %981 }
 0x5e0   :  { %v476_v36 = vsel %vm104_vm2, %v982_v35, 0.0 }
 0x5e1   :  { %477 = vadd.xlane.f32.xlu1 %v476_v36  ;;  %474 = vadd.xlane.f32.xlu0 %v473_v37 }
 0x5f2   :  { %489 = vrot.lane.b32.xlu1 %v1082_v41, %s1002_s0 }
 0x5f6   :  { %553 = vrot.lane.b32.xlu1 %v1017_v0, %s1003_s17 }
 0x5f7   :  { %487 = vrot.lane.b32.xlu0 %v1077_v40, %s1002_s0 }
 0x5fa   :  { %555 = vrot.lane.b32.xlu1 %v1031_v4, %s1003_s17 }
 0x5fb   :  { %549 = vrot.lane.b32.xlu0 %v1025_v2, %s1003_s17 }
 0x5fe   :  { %551 = vrot.lane.b32.xlu1 %v1039_v6, %s1003_s17 }
 0x66a   :  { %v472_v38 = vpop.xlane.xlu0 %471 }
 0x66b   :  { %983 = vrcp.f32 %v472_v38 }
 0x66e   :  { %v475_v39 = vpop.xlane.xlu0 %474  ;;  %v478_v42 = vpop.xlane.xlu1 %477 }
 0x66f   :  { %985 = vrcp.f32 %v475_v39 }
 0x670   :  { %987 = vrcp.f32 %v478_v42 }
 0x672   :  { %v488_v43 = vpop.permute.xlu0 %487  ;;  %v490_v0 = vpop.permute.xlu1 %489 }
 0x673   :  { %892 = vmatprep.subr.bf16.mxu1 %v488_v43  ;;  %v499_v44 = vsel %vm155_vm5, %v490_v0, 0 }
 0x674   :  { %893 = vmatpush3.bf16.msra.mxu1 %v488_v43 }
 0x675   :  { %924 = vmatprep.subr.msk.bf16.mxu1 %vm155_vm5, %v490_v0  ;;  %v984_v45 = vpop.eup %983 }
 0x676   :  { %v554_v4 = vpop.permute.xlu1 %553  ;;  %v482_v46 = vmul.f32 %v984_v45, %v978_v32  ;;  %v550_v51 = vpop.permute.xlu0 %549 }
 0x677   :  { %v564_v52 = vsel %vm28_vm0, %v554_v4, 0 }
 0x678   :  { %895 = vmatpush3.bf16.msra.mxu1 %v499_v44 }
 0x679   :  { %v986_v2 = vpop.eup %985  ;;  %925 = vmatprep.subr.msk.bf16.mxu1 %vm28_vm0, %v554_v4 }
 0x67a   :  { %v988_v6 = vpop.eup %987  ;;  %v483_v47 = vmul.f32 %v986_v2, %v980_v34  ;;  %v556_v53 = vpop.permute.xlu1 %555 }
 0x67b   :  { %v484_v48 = vmul.f32 %v988_v6, %v982_v35  ;;  %v567_v54 = vsel %vm28_vm0, %v556_v53, 0 }
 0x67c   :  { %v485_v49 = vpack.c.bf16 %v483_v47, %v482_v46 }
 0x67d   :  { %v486_v50 = vpack.c.bf16 %v484_v48, %v484_v48 }
 0x67e   :  { %896 = vmatprep.mubr.msk.bf16.mxu1 %vm104_vm2, %v485_v49  ;;  %v552_v55 = vpop.permute.xlu1 %551 }
 0x67f   :  { %897 = vmatmul.mubr.msk.bf16.vlgmr.msra.gmra.mrb[8].mxu1 %vm104_vm2, %v486_v50 }
 0x680   :  { %904 = vmatprep.mubr.msk.bf16.mxu1 %vm28_vm0, %v550_v51 }
 0x681   :  { %901 = vmatpush3.bf16.xpose.msra.mxu1 %v564_v52 }
 0x682   :  { %926 = vmatprep.subr.msk.bf16.mxu1 %vm28_vm0, %v556_v53 }
 0x689   :  { %903 = vmatpush3.bf16.xpose.msra.mxu1 %v567_v54 }
 0x690   :  { %905 = vmatmul.mubr.msk.bf16.vlgmr.msra.gmra.mrb[12].mxu1 %vm28_vm0, %v552_v55 }
 0x752   :  { %v898_v56 = vpop.f32.mrb[8].mxu1 }
 0x753   :  { %v535_v57 = vpop.f32.mrb[9].mxu1 }
 0x754   :  { %v899_v62 = vpop.f32.mrb[10].mxu1 }
 0x755   :  { %v538_v5 = vpop.f32.mrb[11].mxu1 }
 0x756   :  { %v936_v7 = vpack.i.bf16 %v538_v5, %v535_v57 }
 0x763   :  { %v906_v12 = vpop.f32.mrb[12].mxu1 }
 0x764   :  { %v603_v13 = vpop.f32.mrb[13].mxu1  ;;  %v619_v14 = vmul.f32 0.17677669, %v906_v12 }
 0x765   :  { %v617_v15 = vmul.f32 0.17677669, %v603_v13  ;;  %v907_v16 = vpop.f32.mrb[14].mxu1 }
 0x766   :  { %v606_v17 = vpop.f32.mrb[15].mxu1  ;;  %v622_v22 = vsel %vm100_vm1, %v619_v14, -1e+30 }
 0x767   :  { %v618_v18 = vmul.f32 0.17677669, %v606_v17  ;;  %v620_v19 = vsel %vm98_vm3, %v617_v15, -1e+30  ;;  %v629_v24 = vsel %vm104_vm2, %v622_v22, -inf }
 0x768   :  { %v623_v20 = vsel %vm104_vm2, %v620_v19, -inf }
 0x769   :  { %624 = vmax.xlane.f32.xlu0 %v623_v20  ;;  %v621_v21 = vsel %vm99_vm4, %v618_v18, -1e+30 }
 0x76a   :  { %v626_v23 = vsel %vm104_vm2, %v621_v21, -inf }
 0x76b   :  { %627 = vmax.xlane.f32.xlu1 %v626_v23 }
 0x76d   :  { %630 = vmax.xlane.f32.xlu0 %v629_v24 }
 0x7f6   :  { %v625_v25 = vpop.xlane.xlu0 %624 }
 0x7f7   :  { %v632_v8 = vsub.f32 %v620_v19, %v625_v25 }
 0x7f8   :  { %v628_v26 = vpop.xlane.xlu1 %627 }
 0x7f9   :  { %v635_v27 = vmul.f32 1.442695, %v632_v8  ;;  %v633_v28 = vsub.f32 %v621_v21, %v628_v26 }
 0x7fa   :  { %v631_v29 = vpop.xlane.xlu0 %630 }
 0x7fb   :  { %989 = vpow2.f32 %v635_v27  ;;  %v637_v30 = vmul.f32 1.442695, %v633_v28  ;;  %v634_v11 = vsub.f32 %v622_v22, %v631_v29 }
 0x7fd   :  { %991 = vpow2.f32 %v637_v30  ;;  %v639_v31 = vmul.f32 1.442695, %v634_v11 }
 0x7ff   :  { %993 = vpow2.f32 %v639_v31 }
 0x805   :  { %v990_v9 = vpop.eup %989 }
 0x806   :  { %v641_v10 = vsel %vm104_vm2, %v990_v9, 0.0 }
 0x807   :  { %v992_v32 = vpop.eup %991  ;;  %642 = vadd.xlane.f32.xlu0 %v641_v10 }
 0x808   :  { %v644_v35 = vsel %vm104_vm2, %v992_v32, 0.0 }
 0x809   :  { %v994_v33 = vpop.eup %993 }
 0x80a   :  { %v647_v34 = vsel %vm104_vm2, %v994_v33, 0.0 }
 0x80b   :  { %648 = vadd.xlane.f32.xlu1 %v647_v34  ;;  %645 = vadd.xlane.f32.xlu0 %v644_v35 }
 0x81c   :  { %660 = vrot.lane.b32.xlu1 %v1082_v41, %s1003_s17 }
 0x820   :  { %932 = vrot.lane.b32.xlu1 %v931_v3, %s1003_s17 }
 0x821   :  { %658 = vrot.lane.b32.xlu0 %v1077_v40, %s1003_s17 }
 0x824   :  { %727 = vrot.lane.b32.xlu1 %v1149_v58, %s1003_s17 }
 0x825   :  { %937 = vrot.lane.b32.xlu0 %v936_v7, %s1002_s0 }
 0x828   :  { %739 = vrot.lane.b32.xlu1 %v898_v56, %s1002_s0 }
 0x894   :  { %v643_v36 = vpop.xlane.xlu0 %642 }
 0x895   :  { %995 = vrcp.f32 %v643_v36 }
 0x898   :  { %v646_v37 = vpop.xlane.xlu0 %645  ;;  %v649_v38 = vpop.xlane.xlu1 %648 }
 0x899   :  { %997 = vrcp.f32 %v646_v37 }
 0x89a   :  { %999 = vrcp.f32 %v649_v38 }
 0x89c   :  { %v659_v41 = vpop.permute.xlu0 %658  ;;  %v661_v59 = vpop.permute.xlu1 %660 }
 0x89d   :  { %908 = vmatprep.subr.bf16.mxu0 %v659_v41  ;;  %v670_v1 = vsel %vm155_vm5, %v661_v59, 0 }
 0x89e   :  { %909 = vmatpush3.bf16.msra.mxu0 %v659_v41 }
 0x89f   :  { %927 = vmatprep.subr.msk.bf16.mxu0 %vm155_vm5, %v661_v59  ;;  %v996_v40 = vpop.eup %995 }
 0x8a0   :  { %v653_v39 = vmul.f32 %v996_v40, %v990_v9  ;;  %v933_v47 = vpop.permute.xlu1 %932  ;;  %v938_v51 = vpop.permute.xlu0 %937 }
 0x8a1   :  { %v935_v52 = vunpack.i.h.bf16 %v933_v47  ;;  %v934_v53 = vunpack.i.l.bf16 %v933_v47  ;;  %v940_v62 = vunpack.i.h.bf16 %v938_v51  ;;  %v939_v5 = vunpack.i.l.bf16 %v938_v51 }
 0x8a2   :  { %911 = vmatpush3.bf16.msra.mxu0 %v670_v1 }
 0x8a3   :  { %v998_v58 = vpop.eup %997  ;;  %v757_v7 = vsel %vm28_vm0, %v1110_v63, %v935_v52  ;;  %v756_v12 = vsel %vm28_vm0, %v1108_v61, %v934_v53 }
 0x8a4   :  { %v1000_v3 = vpop.eup %999  ;;  %v654_v42 = vmul.f32 %v998_v58, %v992_v32  ;;  %v728_v48 = vpop.permute.xlu1 %727  ;;  %v760_v15 = vsel %vm759_vm7, %v756_v12, %v939_v5  ;;  %v761_v16 = vsel %vm759_vm7, %v757_v7, %v940_v62 }
 0x8a5   :  { %v655_v43 = vmul.f32 %v1000_v3, %v994_v33  ;;  %v758_v50 = vsel %vm28_vm0, %v1106_v60, %v728_v48 }
 0x8a6   :  { %v656_v0 = vpack.c.bf16 %v654_v42, %v653_v39 }
 0x8a7   :  { %v657_v44 = vpack.c.bf16 %v655_v43, %v655_v43 }
 0x8a8   :  { %912 = vmatprep.mubr.msk.bf16.mxu0 %vm104_vm2, %v656_v0  ;;  %v740_v49 = vpop.permute.xlu1 %739 }
 0x8a9   :  { %913 = vmatmul.mubr.msk.bf16.vlgmr.msra.gmra.mrb[12].mxu0 %vm104_vm2, %v657_v44  ;;  %v762_v54 = vsel %vm759_vm7, %v758_v50, %v740_v49 }
 0x97c   :  { %v914_v4 = vpop.f32.mrb[12].mxu0 }
 0x97d   :  { %751 = vrot.lane.b32.xlu1 %v914_v4, %s1001_s16  ;;  %v706_v45 = vpop.f32.mrb[13].mxu0 }
 0x97e   :  { %v915_v2 = vpop.f32.mrb[14].mxu0 }
 0x97f   :  { %v709_v6 = vpop.f32.mrb[15].mxu0 }
 0x980   :  { %v941_v46 = vpack.i.bf16 %v709_v6, %v706_v45 }
 0x982   :  { %942 = vrot.lane.b32.xlu0 %v941_v46, %s1001_s16 }
 0x9ef   :  { %v752_v55 = vpop.permute.xlu1 %751 }
 0x9f0   :  { %v766_v56 = vsel %vm763_vm6, %v762_v54, %v752_v55 }
 0x9f1   :  { %v814_v57 = vpack.c.bf16 %v766_v56, %v766_v56 }
 0x9f3   :  { %782 = vst [vmem:[%s1246_s1 + $0x8] sm:$0xf] %v814_v57 }
 0x9f4   :  { %v943_v60 = vpop.permute.xlu0 %942 }
 0x9f5   :  { %v945_v13 = vunpack.i.h.bf16 %v943_v60  ;;  %v944_v14 = vunpack.i.l.bf16 %v943_v60 }
 0x9f7   :  { %v764_v17 = vsel %vm763_vm6, %v760_v15, %v944_v14  ;;  %v765_v18 = vsel %vm763_vm6, %v761_v16, %v945_v13 }
 0x9f8   :  { %v818_v19 = vpack.c.bf16 %v765_v18, %v764_v17 }
 0x9fa   :  { %819 = vst [vmem:[%s1246_s1] sm:$0xff] %v818_v19  }

// kernel: internvl_forward.27
= control target key start
LH: loop header
LB: loop body
LE: loop exit
PB: predicated region body
PF: predicated region fallthrough
CT: control target
= control target key end

     0   :  { %v39_v10 = vlaneseq  ;;  %s313_s1 = inlined_call_operand.vmem [shape: bf16[128,128], index: 1, kind: input, shape index: {}]   ;;  %s314_s0 = inlined_call_operand.vmem [shape: bf16[24,128], index: 0, kind: input, shape index: {}]   ;;  %s315_s2 = inlined_call_operand.vmem [shape: bf16[1,128], index: 2, kind: input, shape index: {}]   ;;  %s316_s3 = inlined_call_operand.vmem [shape: bf16[24,128], index: 3, kind: input, shape index: {}]   ;;  %s317_s4 = inlined_call_operand.vmem [shape: bf16[24,128], index: 4, kind: output, shape index: {}]  }
   0x1   :  { %v233_v0 = vld [vmem:[%s313_s1] sm:$0xff]   ;;  %v234_v1 = vld [vmem:[%s313_s1 + $0x8] sm:$0xff]   ;;  %v235_v2 = vld [vmem:[%s313_s1 + $0x10] sm:$0xff]  }
   0x2   :  { %213 = vmatprep.subr.bf16.mxu0 %v233_v0  ;;  %v236_v3 = vld [vmem:[%s313_s1 + $0x18] sm:$0xff]   ;;  %v241_v4 = vld [vmem:[%s314_s0] sm:$0xff]   ;;  %v238_v6 = vld [vmem:[%s313_s1 + $0x28] sm:$0xff]   ;;  %v40_v11 = vshrl.u32 %v39_v10, 7 }
   0x3   :  { %214 = vmatpush3.bf16.msra.mxu0 %v233_v0  ;;  %229 = vmatprep.mubr.bf16.mxu0 %v241_v4  ;;  %v237_v5 = vld [vmem:[%s313_s1 + $0x20] sm:$0xff]   ;;  %v239_v7 = vld [vmem:[%s313_s1 + $0x30] sm:$0xff]   ;;  %v240_v8 = vld [vmem:[%s313_s1 + $0x38] sm:$0xff]  }
   0x4   :  { %215 = vmatprep.subr.bf16.mxu0 %v234_v1  ;;  %v242_v9 = vld [vmem:[%s314_s0 + $0x8] ss:$0 sps:$4 sm:$0xff]   ;;  %v37_v12 = vld [vmem:[%s315_s2] sm:$0x1]  ;;  %v41_v14 = vsub.s32 0, %v40_v11 }
   0x5   :  { %v38_v13 = vunpack.c.l.bf16 %v37_v12  ;;  %v151_v15 = vld [vmem:[%s316_s3 + $0x8] sm:$0xf]  ;;  %v195_v18 = vld [vmem:[%s316_s3] sm:$0xff]  }
   0x6   :  { %v154_v17 = vunpack.c.l.bf16 %v151_v15  ;;  %v196_v23 = vunpack.c.l.bf16 %v195_v18  ;;  %v197_v25 = vunpack.c.h.bf16 %v195_v18 }
   0x7   :  { %216 = vmatpush3.bf16.msra.mxu0 %v234_v1  ;;  %v42_v16 = vrot.slane %v38_v13, %v41_v14 }
   0x8   :  { %217 = vmatprep.subr.bf16.mxu0 %v235_v2 }
   0xb   :  { %218 = vmatpush3.bf16.msra.mxu0 %v235_v2 }
   0xc   :  { %219 = vmatprep.subr.bf16.mxu0 %v236_v3 }
   0xf   :  { %220 = vmatpush3.bf16.msra.mxu0 %v236_v3 }
  0x10   :  { %221 = vmatprep.subr.bf16.mxu0 %v237_v5 }
  0x13   :  { %222 = vmatpush3.bf16.msra.mxu0 %v237_v5 }
  0x14   :  { %223 = vmatprep.subr.bf16.mxu0 %v238_v6 }
  0x17   :  { %224 = vmatpush3.bf16.msra.mxu0 %v238_v6 }
  0x18   :  { %225 = vmatprep.subr.bf16.mxu0 %v239_v7 }
  0x1b   :  { %226 = vmatpush3.bf16.msra.mxu0 %v239_v7 }
  0x1c   :  { %227 = vmatprep.subr.bf16.mxu0 %v240_v8 }
  0x1f   :  { %228 = vmatpush3.bf16.msra.mxu0 %v240_v8 }
  0x22   :  { %230 = vmatmul.mubr.bf16.vlgmr.msra.gmra.mrb[0].mxu0 %v242_v9 }
  0xf5   :  { %v231_v19 = vpop.f32.mrb[0].mxu0 }
  0xf6   :  { %v144_v20 = vadd.f32 %v231_v19, %v42_v16  ;;  %v135_v21 = vpop.f32.mrb[1].mxu0 }
  0xf7   :  { %v136_v22 = vadd.f32 %v135_v21, %v42_v16  ;;  %v232_v24 = vpop.f32.mrb[2].mxu0 }
  0xf8   :  { %v157_v26 = vadd.f32 %v154_v17, %v144_v20  ;;  %v138_v27 = vpop.f32.mrb[3].mxu0 }
  0xf9   :  { %v139_v28 = vadd.f32 %v138_v27, %v42_v16  ;;  %v155_v30 = vadd.f32 %v196_v23, %v136_v22 }
  0xfa   :  { %v193_v29 = vpack.c.bf16 %v157_v26, %v157_v26 }
  0xfb   :  { %v156_v31 = vadd.f32 %v197_v25, %v139_v28 }
  0xfc   :  { %173 = vst [vmem:[%s317_s4 + $0x8] sm:$0xf] %v193_v29 }
  0xfd   :  { %v201_v32 = vpack.c.bf16 %v156_v31, %v155_v30 }
  0xff   :  { %202 = vst [vmem:[%s317_s4] sm:$0xff] %v201_v32  }

// kernel: internvl_forward.29
= control target key start
LH: loop header
LB: loop body
LE: loop exit
PB: predicated region body
PF: predicated region fallthrough
CT: control target
= control target key end

     0   :  { %vm27_vm0 = vcmask 1040384   ;;  %v274_v19 = vmov 0   ;;  %v144_v37 = vlaneseq  ;;  %v275_v43 = vmov 1966171168   ;;  %s375_s0 = inlined_call_operand.vmem [shape: bf16[1,128], index: 0, kind: input, shape index: {}]   ;;  %s376_s3 = inlined_call_operand.vmem [shape: bf16[128,256], index: 3, kind: input, shape index: {}]   ;;  %s377_s1 = inlined_call_operand.vmem [shape: bf16[1,128], index: 1, kind: input, shape index: {}]   ;;  %s378_s2 = inlined_call_operand.vmem [shape: bf16[1,128], index: 2, kind: input, shape index: {}]   ;;  %s379_s4 = inlined_call_operand.vmem [shape: bf16[1,256], index: 4, kind: input, shape index: {}]   ;;  %s380_s5 = inlined_call_operand.vmem [shape: bf16[1,256], index: 5, kind: output, shape index: {}]  }
   0x1   :  { %v21_v0 = vld [vmem:[%s375_s0] sm:$0x1]  ;;  %v248_v3 = vld [vmem:[%s376_s3 + $0x4] ss:$8 sps:$4 sm:$0xff]   ;;  %v251_v5 = vld [vmem:[%s376_s3 + $0x14] ss:$8 sps:$4 sm:$0xff]   ;;  %186 = vmatprep.mubr.bf16.mxu0 %v274_v19  ;;  %v201_v44 = vunpack.c.l.s4 %v275_v43 }
   0x2   :  { %v22_v1 = vunpack.c.l.bf16 %v21_v0  ;;  %v250_v4 = vld [vmem:[%s376_s3] ss:$8 sps:$4 sm:$0xff]   ;;  %154 = vmatprep.subr.bf16.mxu0 %v248_v3  ;;  %v253_v6 = vld [vmem:[%s376_s3 + $0x10] ss:$8 sps:$4 sm:$0xff]   ;;  %v254_v7 = vld [vmem:[%s376_s3 + $0x24] ss:$8 sps:$4 sm:$0xff]  }
   0x3   :  { %155 = vmatpush1.bf16.msra.mxu0 %v250_v4  ;;  %v256_v13 = vld [vmem:[%s376_s3 + $0x20] ss:$8 sps:$4 sm:$0xff]   ;;  %v257_v14 = vld [vmem:[%s376_s3 + $0x34] ss:$8 sps:$4 sm:$0xff]   ;;  %v259_v15 = vld [vmem:[%s376_s3 + $0x30] ss:$8 sps:$4 sm:$0xff]   ;;  %v202_v47 = vunpack.c.0.s8 %v201_v44 }
   0x4   :  { %v28_v2 = vsel %vm27_vm0, %v22_v1, 0.0  ;;  %156 = vmatprep.subr.bf16.mxu0 %v251_v5  ;;  %v260_v16 = vld [vmem:[%s376_s3 + $0x44] ss:$8 sps:$4 sm:$0xff]   ;;  %v262_v17 = vld [vmem:[%s376_s3 + $0x40] ss:$8 sps:$4 sm:$0xff]   ;;  %v145_v38 = vshrl.u32 %v144_v37, 7 }
   0x5   :  { %29 = vadd.xlane.f32.xlu0 %v28_v2  ;;  %v263_v18 = vld [vmem:[%s376_s3 + $0x54] ss:$8 sps:$4 sm:$0xff]   ;;  %v265_v20 = vld [vmem:[%s376_s3 + $0x50] ss:$8 sps:$4 sm:$0xff]   ;;  %v266_v21 = vld [vmem:[%s376_s3 + $0x64] ss:$8 sps:$4 sm:$0xff]  }
   0x6   :  { %v268_v22 = vld [vmem:[%s376_s3 + $0x60] ss:$8 sps:$4 sm:$0xff]   ;;  %v269_v23 = vld [vmem:[%s376_s3 + $0x74] ss:$8 sps:$4 sm:$0xff]   ;;  %v271_v24 = vld [vmem:[%s376_s3 + $0x70] ss:$8 sps:$4 sm:$0xff]   ;;  %v205_v52 = vsub.s32 %v202_v47, %v145_v38 }
   0x7   :  { %157 = vmatpush1.bf16.msra.mxu0 %v253_v6  ;;  %v23_v28 = vld [vmem:[%s377_s1] sm:$0x1]  ;;  %v146_v41 = vsub.s32 0, %v145_v38  ;;  %v150_v42 = vsub.s32 2, %v145_v38  ;;  %vm216_vm1 = vsmask.f32 256 }
   0x8   :  { %158 = vmatprep.subr.bf16.mxu0 %v254_v7  ;;  %v25_v29 = vld [vmem:[%s378_s2] sm:$0x1]  ;;  %v24_v30 = vunpack.c.l.bf16 %v23_v28  ;;  %vm218_vm2 = vcmask 1041409   ;;  %vm219_vm3 = vsmask.f32 1280  ;;  %vm217_vm4 = vmand %vm27_vm0, %vm216_vm1 }
   0x9   :  { %v26_v32 = vunpack.c.l.bf16 %v25_v29  ;;  %v61_v39 = vld [vmem:[%s379_s4] sm:$0x3]  ;;  %vm220_vm5 = vmand %vm218_vm2, %vm219_vm3 }
   0xa   :  { %v62_v40 = vunpack.c.l.bf16 %v61_v39  ;;  %vm221_vm6 = vmor %vm220_vm5, %vm217_vm4  ;;  %v222_v57 = vld [vmem:[%s380_s5] sm:$0x3] }
   0xb   :  { %159 = vmatpush1.bf16.msra.mxu0 %v256_v13 }
   0xc   :  { %160 = vmatprep.subr.bf16.mxu0 %v257_v14  ;;  %v147_v45 = vrot.slane %v62_v40, %v146_v41  ;;  %v151_v46 = vrot.slane %v62_v40, %v150_v42 }
   0xf   :  { %161 = vmatpush1.bf16.msra.mxu0 %v259_v15 }
  0x10   :  { %162 = vmatprep.subr.bf16.mxu0 %v260_v16 }
  0x13   :  { %163 = vmatpush1.bf16.msra.mxu0 %v262_v17 }
  0x14   :  { %164 = vmatprep.subr.bf16.mxu0 %v263_v18 }
  0x17   :  { %165 = vmatpush1.bf16.msra.mxu0 %v265_v20 }
  0x18   :  { %166 = vmatprep.subr.bf16.mxu0 %v266_v21 }
  0x1b   :  { %167 = vmatpush1.bf16.msra.mxu0 %v268_v22 }
  0x1c   :  { %168 = vmatprep.subr.bf16.mxu0 %v269_v23 }
  0x1f   :  { %169 = vmatpush1.bf16.msra.mxu0 %v271_v24 }
  0x92   :  { %v30_v8 = vpop.xlane.xlu0 %29 }
  0x93   :  { %v32_v9 = vmul.f32 0.0078125, %v30_v8 }
  0x95   :  { %v33_v10 = vsub.f32 %v22_v1, %v32_v9 }
  0x97   :  { %v34_v11 = vmul.f32 %v33_v10, %v33_v10 }
  0x99   :  { %v35_v12 = vsel %vm27_vm0, %v34_v11, 0.0 }
  0x9a   :  { %36 = vadd.xlane.f32.xlu0 %v35_v12 }
 0x127   :  { %v37_v25 = vpop.xlane.xlu0 %36 }
 0x128   :  { %v38_v26 = vmul.f32 0.0078125, %v37_v25 }
 0x12a   :  { %v39_v27 = vadd.f32 1e-06, %v38_v26 }
 0x12c   :  { %272 = vrsqrt.f32 %v39_v27 }
 0x136   :  { %v273_v31 = vpop.eup %272 }
 0x137   :  { %v41_v33 = vmul.f32 %v273_v31, %v33_v10 }
 0x139   :  { %v42_v34 = vmul.f32 %v41_v33, %v24_v30 }
 0x13b   :  { %v43_v35 = vadd.f32 %v42_v34, %v26_v32 }
 0x13d   :  { %v44_v36 = vpack.c.bf16 %v43_v35, %v43_v35 }
 0x13f   :  { %187 = vmatmul.mubr.bf16.vlgmr.msra.gmra.mrb[0].mxu0 %v44_v36 }
 0x212   :  { %v188_v48 = vpop.f32.mrb[0].mxu0 }
 0x213   :  { %v189_v49 = vadd.f32 %v188_v48, %v147_v45  ;;  %v190_v50 = vpop.f32.mrb[1].mxu0 }
 0x214   :  { %v191_v51 = vadd.f32 %v190_v50, %v151_v46  ;;  %v192_v53 = vpop.f32.mrb[2].mxu0 }
 0x215   :  { %v193_v54 = vpop.f32.mrb[3].mxu0 }
 0x216   :  { %v245_v55 = vpack.c.bf16 %v191_v51, %v189_v49 }
 0x218   :  { %v206_v56 = vrot.slane %v245_v55, %v205_v52 }
 0x21a   :  { %v213_v58 = vrot.slane %v206_v56, %v205_v52 }
 0x21c   :  { %v223_v59 = vsel %vm221_vm6, %v213_v58, %v222_v57 }
 0x21d   :  { %224 = vst [vmem:[%s380_s5] sm:$0x3] %v223_v59 }

// kernel: internvl_forward.28
= control target key start
LH: loop header
LB: loop body
LE: loop exit
PB: predicated region body
PF: predicated region fallthrough
CT: control target
= control target key end

     0   :  { %v1163_v43 = vmov 0   ;;  %v71_v57 = vlaneseq  ;;  %s1570_s0 = inlined_call_operand.vmem [shape: bf16[24,128], index: 0, kind: input, shape index: {}]   ;;  %s1571_s3 = inlined_call_operand.vmem [shape: bf16[128,512], index: 3, kind: input, shape index: {}]   ;;  %s1572_s1 = inlined_call_operand.vmem [shape: bf16[1,128], index: 1, kind: input, shape index: {}]   ;;  %s1573_s2 = inlined_call_operand.vmem [shape: bf16[1,128], index: 2, kind: input, shape index: {}]   ;;  %s1574_s5 = inlined_call_operand.vmem [shape: bf16[512,128], index: 5, kind: input, shape index: {}]   ;;  %s1575_s4 = inlined_call_operand.vmem [shape: bf16[1,512], index: 4, kind: input, shape index: {}]   ;;  %s1576_s6 = inlined_call_operand.vmem [shape: bf16[1,128], index: 6, kind: input, shape index: {}]   ;;  %s1577_s7 = inlined_call_operand.vmem [shape: bf16[24,128], index: 7, kind: output, shape index: {}]  }
   0x1   :  { %v988_v0 = vld [vmem:[%s1570_s0] sm:$0xff]   ;;  %v29_v1 = vld [vmem:[%s1570_s0 + $0x8] sm:$0xf]  ;;  %v1055_v6 = vld [vmem:[%s1571_s3 + $0xc] ss:$16 sps:$4 sm:$0xff]   ;;  %350 = vmatprep.mubr.bf16.mxu0 %v1163_v43  ;;  %401 = vmatprep.mubr.bf16.mxu1 %v1163_v43 }
   0x2   :  { %v1210_v2 = vunpack.c.l.bf16 %v988_v0  ;;  %v1212_v3 = vunpack.c.l.bf16 %v29_v1  ;;  %v1216_v4 = vunpack.c.h.bf16 %v988_v0  ;;  %v1053_v5 = vld [vmem:[%s1571_s3 + $0x4] ss:$16 sps:$4 sm:$0xff]   ;;  %v1057_v7 = vld [vmem:[%s1571_s3] ss:$16 sps:$4 sm:$0xff]   ;;  %v1058_v8 = vld [vmem:[%s1571_s3 + $0x8] ss:$16 sps:$4 sm:$0xff]   ;;  %369 = vmatprep.subr.bf16.mxu1 %v1055_v6 }
   0x3   :  { %318 = vmatprep.subr.bf16.mxu0 %v1053_v5  ;;  %v1059_v9 = vld [vmem:[%s1571_s3 + $0x24] ss:$16 sps:$4 sm:$0xff]   ;;  %370 = vmatpush1.bf16.msra.mxu1 %v1058_v8  ;;  %v1061_v10 = vld [vmem:[%s1571_s3 + $0x2c] ss:$16 sps:$4 sm:$0xff]   ;;  %v1063_v23 = vld [vmem:[%s1571_s3 + $0x20] ss:$16 sps:$4 sm:$0xff]  }
   0x4   :  { %37 = vadd.xlane.f32.xlu0 %v1210_v2  ;;  %41 = vadd.xlane.f32.xlu1 %v1212_v3  ;;  %v1064_v24 = vld [vmem:[%s1571_s3 + $0x28] ss:$16 sps:$4 sm:$0xff]   ;;  %v1065_v25 = vld [vmem:[%s1571_s3 + $0x44] ss:$16 sps:$4 sm:$0xff]   ;;  %v1067_v26 = vld [vmem:[%s1571_s3 + $0x4c] ss:$16 sps:$4 sm:$0xff]  }
   0x5   :  { %319 = vmatpush1.bf16.msra.mxu0 %v1057_v7  ;;  %371 = vmatprep.subr.bf16.mxu1 %v1061_v10  ;;  %v1069_v27 = vld [vmem:[%s1571_s3 + $0x40] ss:$16 sps:$4 sm:$0xff]   ;;  %v1070_v28 = vld [vmem:[%s1571_s3 + $0x48] ss:$16 sps:$4 sm:$0xff]   ;;  %v1071_v29 = vld [vmem:[%s1571_s3 + $0x64] ss:$16 sps:$4 sm:$0xff]  }
   0x6   :  { %320 = vmatprep.subr.bf16.mxu0 %v1059_v9  ;;  %v1073_v30 = vld [vmem:[%s1571_s3 + $0x6c] ss:$16 sps:$4 sm:$0xff]   ;;  %v1075_v31 = vld [vmem:[%s1571_s3 + $0x60] ss:$16 sps:$4 sm:$0xff]   ;;  %v1076_v32 = vld [vmem:[%s1571_s3 + $0x68] ss:$16 sps:$4 sm:$0xff]  }
   0x7   :  { %372 = vmatpush1.bf16.msra.mxu1 %v1064_v24  ;;  %v1077_v33 = vld [vmem:[%s1571_s3 + $0x84] ss:$16 sps:$4 sm:$0xff]   ;;  %v1079_v34 = vld [vmem:[%s1571_s3 + $0x8c] ss:$16 sps:$4 sm:$0xff]   ;;  %v1081_v35 = vld [vmem:[%s1571_s3 + $0x80] ss:$16 sps:$4 sm:$0xff]  }
   0x8   :  { %39 = vadd.xlane.f32.xlu0 %v1216_v4  ;;  %373 = vmatprep.subr.bf16.mxu1 %v1067_v26  ;;  %v1082_v36 = vld [vmem:[%s1571_s3 + $0x88] ss:$16 sps:$4 sm:$0xff]   ;;  %v1083_v37 = vld [vmem:[%s1571_s3 + $0xa4] ss:$16 sps:$4 sm:$0xff]   ;;  %v1085_v38 = vld [vmem:[%s1571_s3 + $0xac] ss:$16 sps:$4 sm:$0xff]  }
   0x9   :  { %321 = vmatpush1.bf16.msra.mxu0 %v1063_v23  ;;  %v1087_v39 = vld [vmem:[%s1571_s3 + $0xa0] ss:$16 sps:$4 sm:$0xff]   ;;  %v1088_v40 = vld [vmem:[%s1571_s3 + $0xa8] ss:$16 sps:$4 sm:$0xff]   ;;  %v1089_v41 = vld [vmem:[%s1571_s3 + $0xc4] ss:$16 sps:$4 sm:$0xff]  }
   0xa   :  { %322 = vmatprep.subr.bf16.mxu0 %v1065_v25  ;;  %v1091_v42 = vld [vmem:[%s1571_s3 + $0xcc] ss:$16 sps:$4 sm:$0xff]   ;;  %v1093_v44 = vld [vmem:[%s1571_s3 + $0xc0] ss:$16 sps:$4 sm:$0xff]   ;;  %v1094_v45 = vld [vmem:[%s1571_s3 + $0xc8] ss:$16 sps:$4 sm:$0xff]  }
   0xb   :  { %374 = vmatpush1.bf16.msra.mxu1 %v1070_v28  ;;  %v1095_v46 = vld [vmem:[%s1571_s3 + $0xe4] ss:$16 sps:$4 sm:$0xff]   ;;  %v1097_v47 = vld [vmem:[%s1571_s3 + $0xec] ss:$16 sps:$4 sm:$0xff]   ;;  %v1099_v48 = vld [vmem:[%s1571_s3 + $0xe0] ss:$16 sps:$4 sm:$0xff]  }
   0xc   :  { %375 = vmatprep.subr.bf16.mxu1 %v1073_v30  ;;  %v1100_v49 = vld [vmem:[%s1571_s3 + $0xe8] ss:$16 sps:$4 sm:$0xff]   ;;  %v1330_v60 = vshrl.u32 %v71_v57, 7  ;;  %v33_v61 = vld [vmem:[%s1572_s1] sm:$0x1]  ;;  %v1110_v30 = vld [vmem:[%s1574_s5 + $0xd0] sm:$0xff]  }
   0xd   :  { %323 = vmatpush1.bf16.msra.mxu0 %v1069_v27  ;;  %v34_v62 = vunpack.c.l.bf16 %v33_v61  ;;  %v35_v0 = vld [vmem:[%s1573_s2] sm:$0x1]  ;;  %v1105_v25 = vld [vmem:[%s1574_s5 + $0x48] sm:$0xff]  }
   0xe   :  { %324 = vmatprep.subr.bf16.mxu0 %v1071_v29  ;;  %v1336_v63 = vsub.s32 0, %v1330_v60  ;;  %v36_v5 = vunpack.c.l.bf16 %v35_v0  ;;  %v1103_v23 = vld [vmem:[%s1574_s5] sm:$0xff]   ;;  %v1106_v26 = vld [vmem:[%s1574_s5 + $0xc8] sm:$0xff]   ;;  %v1109_v29 = vld [vmem:[%s1574_s5 + $0x50] sm:$0xff]   ;;  %v136_v57 = vsub.s32 6, %v1330_v60 }
   0xf   :  { %376 = vmatpush1.bf16.msra.mxu1 %v1076_v32  ;;  %v1104_v24 = vld [vmem:[%s1574_s5 + $0x80] sm:$0xff]   ;;  %v1107_v27 = vld [vmem:[%s1574_s5 + $0x8] sm:$0xff]   ;;  %v1112_v32 = vld [vmem:[%s1574_s5 + $0x90] sm:$0xff]  }
  0x10   :  { %377 = vmatprep.subr.bf16.mxu1 %v1079_v34  ;;  %v74_v7 = vrot.slane %v34_v62, %v1336_v63  ;;  %v1108_v28 = vld [vmem:[%s1574_s5 + $0x88] sm:$0xff]   ;;  %v1114_v34 = vld [vmem:[%s1574_s5 + $0xd8] sm:$0xff]  }
  0x11   :  { %325 = vmatpush1.bf16.msra.mxu0 %v1075_v31  ;;  %v1111_v31 = vld [vmem:[%s1574_s5 + $0x10] sm:$0xff]  }
  0x12   :  { %326 = vmatprep.subr.bf16.mxu0 %v1077_v33  ;;  %v1113_v33 = vld [vmem:[%s1574_s5 + $0x58] sm:$0xff]  }
  0x13   :  { %378 = vmatpush1.bf16.msra.mxu1 %v1082_v36  ;;  %v1116_v36 = vld [vmem:[%s1574_s5 + $0x98] sm:$0xff]  }
  0x14   :  { %379 = vmatprep.subr.bf16.mxu1 %v1085_v38  ;;  %v1118_v38 = vld [vmem:[%s1574_s5 + $0xe0] sm:$0xff]  }
  0x15   :  { %327 = vmatpush1.bf16.msra.mxu0 %v1081_v35  ;;  %v1115_v35 = vld [vmem:[%s1574_s5 + $0x18] sm:$0xff]  }
  0x16   :  { %328 = vmatprep.subr.bf16.mxu0 %v1083_v37  ;;  %v1117_v37 = vld [vmem:[%s1574_s5 + $0x60] sm:$0xff]  }
  0x17   :  { %380 = vmatpush1.bf16.msra.mxu1 %v1088_v40  ;;  %v1120_v40 = vld [vmem:[%s1574_s5 + $0xa0] sm:$0xff]  }
  0x18   :  { %381 = vmatprep.subr.bf16.mxu1 %v1091_v42  ;;  %v1122_v42 = vld [vmem:[%s1574_s5 + $0xe8] sm:$0xff]  }
  0x19   :  { %329 = vmatpush1.bf16.msra.mxu0 %v1087_v39  ;;  %v1119_v39 = vld [vmem:[%s1574_s5 + $0x20] sm:$0xff]  }
  0x1a   :  { %330 = vmatprep.subr.bf16.mxu0 %v1089_v41  ;;  %v1121_v41 = vld [vmem:[%s1574_s5 + $0x68] sm:$0xff]  }
  0x1b   :  { %382 = vmatpush1.bf16.msra.mxu1 %v1094_v45  ;;  %v1125_v45 = vld [vmem:[%s1574_s5 + $0x70] sm:$0xff]  }
  0x1c   :  { %383 = vmatprep.subr.bf16.mxu1 %v1097_v47  ;;  %v1127_v47 = vld [vmem:[%s1574_s5 + $0x30] sm:$0xff]  }
  0x1d   :  { %331 = vmatpush1.bf16.msra.mxu0 %v1093_v44  ;;  %v1124_v44 = vld [vmem:[%s1574_s5 + $0xa8] sm:$0xff]  }
  0x1e   :  { %332 = vmatprep.subr.bf16.mxu0 %v1095_v46  ;;  %v1126_v46 = vld [vmem:[%s1574_s5 + $0xf0] sm:$0xff]  }
  0x1f   :  { %384 = vmatpush1.bf16.msra.mxu1 %v1100_v49  ;;  %v1129_v49 = vld [vmem:[%s1574_s5 + $0x78] sm:$0xff]  }
  0x21   :  { %333 = vmatpush1.bf16.msra.mxu0 %v1099_v48  ;;  %v1128_v48 = vld [vmem:[%s1574_s5 + $0xb0] sm:$0xff]  }
  0x91   :  { %v38_v11 = vpop.xlane.xlu0 %37  ;;  %v42_v12 = vpop.xlane.xlu1 %41 }
  0x92   :  { %v44_v13 = vmul.f32 0.0078125, %v38_v11  ;;  %v46_v14 = vmul.f32 0.0078125, %v42_v12  ;;  %v81_v12 = vrot.slane %v36_v5, %v1336_v63 }
  0x94   :  { %v1238_v15 = vsub.f32 %v1210_v2, %v44_v13  ;;  %v1241_v16 = vsub.f32 %v1212_v3, %v46_v14 }
  0x95   :  { %v40_v17 = vpop.xlane.xlu0 %39 }
  0x96   :  { %v45_v18 = vmul.f32 0.0078125, %v40_v17  ;;  %v50_v19 = vmul.f32 %v1238_v15, %v1238_v15  ;;  %v52_v21 = vmul.f32 %v1241_v16, %v1241_v16 }
  0x98   :  { %v1246_v20 = vsub.f32 %v1216_v4, %v45_v18  ;;  %53 = vadd.xlane.f32.xlu1 %v50_v19 }
  0x9a   :  { %v51_v22 = vmul.f32 %v1246_v20, %v1246_v20 }
  0x9c   :  { %57 = vadd.xlane.f32.xlu1 %v52_v21  ;;  %55 = vadd.xlane.f32.xlu0 %v51_v22 }
 0x125   :  { %v54_v50 = vpop.xlane.xlu1 %53 }
 0x126   :  { %v59_v51 = vmul.f32 0.0078125, %v54_v50  ;;  %v1130_v50 = vld [vmem:[%s1574_s5 + $0xf8] sm:$0xff]  }
 0x128   :  { %v62_v52 = vadd.f32 1e-06, %v59_v51  ;;  %v1131_v51 = vld [vmem:[%s1574_s5 + $0x38] sm:$0xff]  }
 0x129   :  { %v58_v53 = vpop.xlane.xlu1 %57  ;;  %v56_v54 = vpop.xlane.xlu0 %55 }
 0x12a   :  { %1133 = vrsqrt.f32 %v62_v52  ;;  %v61_v55 = vmul.f32 0.0078125, %v58_v53  ;;  %v60_v56 = vmul.f32 0.0078125, %v56_v54  ;;  %v1132_v52 = vld [vmem:[%s1574_s5 + $0xb8] sm:$0xff]   ;;  %v119_v53 = vld [vmem:[%s1575_s4] sm:$0xf] }
 0x12b   :  { %v120_v54 = vunpack.c.l.bf16 %v119_v53 }
 0x12c   :  { %v64_v58 = vadd.f32 1e-06, %v61_v55  ;;  %v63_v59 = vadd.f32 1e-06, %v60_v56  ;;  %v132_v55 = vsub.s32 4, %v1330_v60  ;;  %v128_v56 = vsub.s32 2, %v1330_v60 }
 0x12d   :  { %v137_v62 = vrot.slane %v120_v54, %v136_v57 }
 0x12e   :  { %1135 = vrsqrt.f32 %v64_v58  ;;  %v125_v58 = vrot.slane %v120_v54, %v1336_v63  ;;  %v129_v61 = vrot.slane %v120_v54, %v128_v56 }
 0x12f   :  { %1137 = vrsqrt.f32 %v63_v59  ;;  %v133_v59 = vrot.slane %v120_v54, %v132_v55 }
 0x130   :  { %v1450_v0 = vrot.slane %v125_v58, %v1336_v63  ;;  %v1456_v5 = vrot.slane %v129_v61, %v1336_v63 }
 0x134   :  { %v1134_v1 = vpop.eup %1133 }
 0x135   :  { %v68_v6 = vmul.f32 %v1134_v1, %v1238_v15  ;;  %v1453_v1 = vrot.slane %v133_v59, %v1336_v63 }
 0x137   :  { %v75_v11 = vmul.f32 %v74_v7, %v68_v6  ;;  %v1459_v6 = vrot.slane %v137_v62, %v1336_v63 }
 0x138   :  { %v1136_v8 = vpop.eup %1135 }
 0x139   :  { %v1138_v9 = vpop.eup %1137  ;;  %v70_v14 = vmul.f32 %v1136_v8, %v1241_v16  ;;  %v82_v17 = vadd.f32 %v81_v12, %v75_v11  ;;  %v1102_v16 = vld [vmem:[%s1574_s5 + $0xc0] sm:$0xff]  }
 0x13a   :  { %v69_v10 = vmul.f32 %v1138_v9, %v1246_v20  ;;  %v1101_v20 = vld [vmem:[%s1574_s5 + $0x40] sm:$0xff]   ;;  %1024 = vmatprep.subr.bf16.mxu1 %v1102_v16 }
 0x13b   :  { %v77_v21 = vmul.f32 %v74_v7, %v70_v14  ;;  %996 = vmatprep.subr.bf16.mxu0 %v1101_v20 }
 0x13c   :  { %v76_v13 = vmul.f32 %v74_v7, %v69_v10 }
 0x13d   :  { %v84_v15 = vadd.f32 %v81_v12, %v77_v21 }
 0x13e   :  { %v83_v18 = vadd.f32 %v81_v12, %v76_v13 }
 0x13f   :  { %v86_v22 = vpack.c.bf16 %v84_v15, %v84_v15 }
 0x140   :  { %v85_v19 = vpack.c.bf16 %v83_v18, %v82_v17 }
 0x142   :  { %351 = vmatmul.mubr.bf16.vlgmr.msra.gmra.mrb[0].mxu0 %v85_v19  ;;  %402 = vmatmul.mubr.bf16.vlgmr.msra.gmra.mrb[0].mxu1 %v85_v19 }
 0x143   :  { %360 = vmatprep.mubr.bf16.mxu0 %v1163_v43  ;;  %411 = vmatprep.mubr.bf16.mxu1 %v1163_v43  ;;  %v1123_v43 = vld [vmem:[%s1574_s5 + $0x28] sm:$0xff]  }
 0x144   :  { %997 = vmatpush3.bf16.msra.mxu0 %v1103_v23  ;;  %1025 = vmatpush3.bf16.msra.mxu1 %v1104_v24 }
 0x145   :  { %998 = vmatprep.subr.bf16.mxu0 %v1105_v25  ;;  %1026 = vmatprep.subr.bf16.mxu1 %v1106_v26 }
 0x148   :  { %999 = vmatpush3.bf16.msra.mxu0 %v1107_v27  ;;  %1027 = vmatpush3.bf16.msra.mxu1 %v1108_v28 }
 0x149   :  { %1000 = vmatprep.subr.bf16.mxu0 %v1109_v29  ;;  %1028 = vmatprep.subr.bf16.mxu1 %v1110_v30 }
 0x14a   :  { %361 = vmatmul.mubr.bf16.gmra.mrb[4].mxu0 %v86_v22  ;;  %412 = vmatmul.mubr.bf16.gmra.mrb[4].mxu1 %v86_v22 }
 0x14c   :  { %1001 = vmatpush3.bf16.msra.mxu0 %v1111_v31  ;;  %1029 = vmatpush3.bf16.msra.mxu1 %v1112_v32 }
 0x14d   :  { %1002 = vmatprep.subr.bf16.mxu0 %v1113_v33  ;;  %1030 = vmatprep.subr.bf16.mxu1 %v1114_v34 }
 0x150   :  { %1003 = vmatpush3.bf16.msra.mxu0 %v1115_v35  ;;  %1031 = vmatpush3.bf16.msra.mxu1 %v1116_v36 }
 0x151   :  { %1004 = vmatprep.subr.bf16.mxu0 %v1117_v37  ;;  %1032 = vmatprep.subr.bf16.mxu1 %v1118_v38 }
 0x154   :  { %1005 = vmatpush3.bf16.msra.mxu0 %v1119_v39  ;;  %1033 = vmatpush3.bf16.msra.mxu1 %v1120_v40 }
 0x155   :  { %1006 = vmatprep.subr.bf16.mxu0 %v1121_v41  ;;  %1034 = vmatprep.subr.bf16.mxu1 %v1122_v42 }
 0x158   :  { %1007 = vmatpush3.bf16.msra.mxu0 %v1123_v43  ;;  %1035 = vmatpush3.bf16.msra.mxu1 %v1124_v44 }
 0x159   :  { %1008 = vmatprep.subr.bf16.mxu0 %v1125_v45  ;;  %1036 = vmatprep.subr.bf16.mxu1 %v1126_v46 }
 0x15c   :  { %1009 = vmatpush3.bf16.msra.mxu0 %v1127_v47  ;;  %1037 = vmatpush3.bf16.msra.mxu1 %v1128_v48 }
 0x15d   :  { %1010 = vmatprep.subr.bf16.mxu0 %v1129_v49  ;;  %1038 = vmatprep.subr.bf16.mxu1 %v1130_v50 }
 0x160   :  { %1011 = vmatpush3.bf16.msra.mxu0 %v1131_v51  ;;  %1039 = vmatpush3.bf16.msra.mxu1 %v1132_v52 }
 0x215   :  { %v352_v7 = vpop.f32.mrb[0].mxu0  ;;  %v403_v8 = vpop.f32.mrb[0].mxu1 }
 0x216   :  { %v1462_v60 = vadd.f32 %v352_v7, %v1450_v0  ;;  %v1465_v9 = vadd.f32 %v403_v8, %v1453_v1  ;;  %v354_v10 = vpop.f32.mrb[1].mxu0  ;;  %v405_v11 = vpop.f32.mrb[1].mxu1 }
 0x217   :  { %v1468_v12 = vadd.f32 %v354_v10, %v1456_v5  ;;  %v1471_v13 = vadd.f32 %v405_v11, %v1459_v6  ;;  %v356_v14 = vpop.f32.mrb[2].mxu0  ;;  %v407_v17 = vpop.f32.mrb[2].mxu1 }
 0x218   :  { %v420_v18 = vmul.f32 %v1462_v60, %v1462_v60  ;;  %v422_v19 = vmul.f32 %v1465_v9, %v1465_v9  ;;  %v1478_v21 = vadd.f32 %v356_v14, %v1450_v0  ;;  %v1481_v15 = vadd.f32 %v407_v17, %v1453_v1  ;;  %v358_v22 = vpop.f32.mrb[3].mxu0  ;;  %v409_v20 = vpop.f32.mrb[3].mxu1 }
 0x219   :  { %v421_v16 = vmul.f32 %v1468_v12, %v1468_v12  ;;  %v423_v23 = vmul.f32 %v1471_v13, %v1471_v13  ;;  %v1488_v24 = vadd.f32 %v358_v22, %v1456_v5  ;;  %v1491_v25 = vadd.f32 %v409_v20, %v1459_v6 }
 0x21a   :  { %v432_v26 = vmul.f32 %v420_v18, %v1462_v60  ;;  %v434_v27 = vmul.f32 %v422_v19, %v1465_v9  ;;  %v424_v28 = vmul.f32 %v1478_v21, %v1478_v21  ;;  %v426_v29 = vmul.f32 %v1481_v15, %v1481_v15 }
 0x21b   :  { %v433_v30 = vmul.f32 %v421_v16, %v1468_v12  ;;  %v435_v31 = vmul.f32 %v423_v23, %v1471_v13  ;;  %v425_v32 = vmul.f32 %v1488_v24, %v1488_v24  ;;  %v427_v33 = vmul.f32 %v1491_v25, %v1491_v25 }
 0x21c   :  { %v444_v34 = vmul.f32 0.044715, %v432_v26  ;;  %v446_v35 = vmul.f32 0.044715, %v434_v27  ;;  %v436_v36 = vmul.f32 %v424_v28, %v1478_v21  ;;  %v438_v37 = vmul.f32 %v426_v29, %v1481_v15 }
 0x21d   :  { %v445_v38 = vmul.f32 0.044715, %v433_v30  ;;  %v447_v39 = vmul.f32 0.044715, %v435_v31  ;;  %v437_v40 = vmul.f32 %v425_v32, %v1488_v24  ;;  %v439_v41 = vmul.f32 %v427_v33, %v1491_v25  ;;  %v362_v42 = vpop.f32.mrb[4].mxu0  ;;  %v413_v43 = vpop.f32.mrb[4].mxu1 }
 0x21e   :  { %v456_v44 = vadd.f32 %v444_v34, %v1462_v60  ;;  %v458_v45 = vadd.f32 %v446_v35, %v1465_v9  ;;  %v448_v46 = vmul.f32 0.044715, %v436_v36  ;;  %v450_v47 = vmul.f32 0.044715, %v438_v37  ;;  %v364_v48 = vpop.f32.mrb[5].mxu0  ;;  %v415_v49 = vpop.f32.mrb[5].mxu1 }
 0x21f   :  { %v457_v50 = vadd.f32 %v445_v38, %v1468_v12  ;;  %v459_v51 = vadd.f32 %v447_v39, %v1471_v13  ;;  %v449_v52 = vmul.f32 0.044715, %v437_v40  ;;  %v451_v53 = vmul.f32 0.044715, %v439_v41  ;;  %v366_v54 = vpop.f32.mrb[6].mxu0  ;;  %v417_v55 = vpop.f32.mrb[6].mxu1 }
 0x220   :  { %v468_v56 = vmul.f32 0.7978846, %v456_v44  ;;  %v470_v57 = vmul.f32 0.7978846, %v458_v45  ;;  %v460_v58 = vadd.f32 %v448_v46, %v1478_v21  ;;  %v462_v59 = vadd.f32 %v450_v47, %v1481_v15  ;;  %v367_v61 = vpop.f32.mrb[7].mxu0  ;;  %v418_v62 = vpop.f32.mrb[7].mxu1 }
 0x221   :  { %v469_v7 = vmul.f32 0.7978846, %v457_v50  ;;  %v471_v8 = vmul.f32 0.7978846, %v459_v51  ;;  %v461_v10 = vadd.f32 %v449_v52, %v1488_v24  ;;  %v463_v11 = vadd.f32 %v451_v53, %v1491_v25 }
 0x222   :  { %1139 = vtanh.f32 %v468_v56  ;;  %v472_v14 = vmul.f32 0.7978846, %v460_v58  ;;  %v1518_v17 = vadd.f32 %v362_v42, %v1450_v0  ;;  %v474_v18 = vmul.f32 0.7978846, %v462_v59 }
 0x223   :  { %1141 = vtanh.f32 %v470_v57  ;;  %v473_v19 = vmul.f32 0.7978846, %v461_v10  ;;  %v1521_v22 = vadd.f32 %v413_v43, %v1453_v1  ;;  %v1526_v16 = vadd.f32 %v364_v48, %v1456_v5 }
 0x224   :  { %1143 = vtanh.f32 %v469_v7  ;;  %v428_v20 = vmul.f32 %v1518_v17, %v1518_v17  ;;  %v1529_v23 = vadd.f32 %v415_v49, %v1459_v6  ;;  %v475_v26 = vmul.f32 0.7978846, %v463_v11 }
 0x225   :  { %1145 = vtanh.f32 %v471_v8  ;;  %v430_v0 = vmul.f32 %v1521_v22, %v1521_v22  ;;  %v429_v1 = vmul.f32 %v1526_v16, %v1526_v16 }
 0x226   :  { %1147 = vtanh.f32 %v472_v14  ;;  %v440_v27 = vmul.f32 %v428_v20, %v1518_v17  ;;  %v431_v28 = vmul.f32 %v1529_v23, %v1529_v23 }
 0x227   :  { %1149 = vtanh.f32 %v474_v18  ;;  %v442_v5 = vmul.f32 %v430_v0, %v1521_v22  ;;  %v441_v29 = vmul.f32 %v429_v1, %v1526_v16 }
 0x228   :  { %1151 = vtanh.f32 %v473_v19  ;;  %v452_v6 = vmul.f32 0.044715, %v440_v27  ;;  %v443_v30 = vmul.f32 %v431_v28, %v1529_v23 }
 0x229   :  { %1153 = vtanh.f32 %v475_v26  ;;  %v454_v31 = vmul.f32 0.044715, %v442_v5  ;;  %v453_v33 = vmul.f32 0.044715, %v441_v29 }
 0x22a   :  { %v464_v32 = vadd.f32 %v452_v6, %v1518_v17  ;;  %v455_v34 = vmul.f32 0.044715, %v443_v30 }
 0x22b   :  { %v466_v35 = vadd.f32 %v454_v31, %v1521_v22  ;;  %v465_v38 = vadd.f32 %v453_v33, %v1526_v16 }
 0x22c   :  { %v1140_v36 = vpop.eup %1139  ;;  %v476_v37 = vmul.f32 0.7978846, %v464_v32  ;;  %v467_v39 = vadd.f32 %v455_v34, %v1529_v23 }
 0x22d   :  { %v1142_v40 = vpop.eup %1141  ;;  %v492_v41 = vadd.f32 1.0, %v1140_v36  ;;  %v478_v42 = vmul.f32 0.7978846, %v466_v35  ;;  %v477_v45 = vmul.f32 0.7978846, %v465_v38 }
 0x22e   :  { %v1144_v43 = vpop.eup %1143  ;;  %v494_v44 = vadd.f32 1.0, %v1142_v40  ;;  %1155 = vtanh.f32 %v476_v37  ;;  %v479_v46 = vmul.f32 0.7978846, %v467_v39 }
 0x22f   :  { %v1146_v47 = vpop.eup %1145  ;;  %1157 = vtanh.f32 %v478_v42  ;;  %v493_v48 = vadd.f32 1.0, %v1144_v43  ;;  %v504_v52 = vmul.f32 0.5, %v492_v41  ;;  %v600_v42 = vld [vmem:[%s1576_s6] sm:$0x1] }
 0x230   :  { %v1148_v49 = vpop.eup %1147  ;;  %1159 = vtanh.f32 %v477_v45  ;;  %v495_v50 = vadd.f32 1.0, %v1146_v47  ;;  %v506_v55 = vmul.f32 0.5, %v494_v44  ;;  %v601_v43 = vunpack.c.l.bf16 %v600_v42 }
 0x231   :  { %v1150_v51 = vpop.eup %1149  ;;  %v496_v53 = vadd.f32 1.0, %v1148_v49  ;;  %1161 = vtanh.f32 %v479_v46  ;;  %v505_v61 = vmul.f32 0.5, %v493_v48  ;;  %v516_v10 = vmul.f32 %v504_v52, %v1462_v60 }
 0x232   :  { %v1152_v54 = vpop.eup %1151  ;;  %v498_v56 = vadd.f32 1.0, %v1150_v51  ;;  %v507_v8 = vmul.f32 0.5, %v495_v50  ;;  %v518_v18 = vmul.f32 %v506_v55, %v1465_v9 }
 0x233   :  { %v1154_v57 = vpop.eup %1153  ;;  %v508_v58 = vmul.f32 0.5, %v496_v53  ;;  %v497_v59 = vadd.f32 1.0, %v1152_v54  ;;  %v517_v0 = vmul.f32 %v505_v61, %v1468_v12 }
 0x234   :  { %v510_v62 = vmul.f32 0.5, %v498_v56  ;;  %v499_v7 = vadd.f32 1.0, %v1154_v57  ;;  %v519_v5 = vmul.f32 %v507_v8, %v1471_v13 }
 0x235   :  { %v520_v11 = vmul.f32 %v508_v58, %v1478_v21  ;;  %v509_v14 = vmul.f32 0.5, %v497_v59 }
 0x236   :  { %v522_v19 = vmul.f32 %v510_v62, %v1481_v15  ;;  %v511_v20 = vmul.f32 0.5, %v499_v7 }
 0x237   :  { %v528_v26 = vpack.c.bf16 %v520_v11, %v516_v10  ;;  %v521_v27 = vmul.f32 %v509_v14, %v1488_v24 }
 0x238   :  { %v1156_v1 = vpop.eup %1155  ;;  %v530_v28 = vpack.c.bf16 %v522_v19, %v518_v18  ;;  %v523_v6 = vmul.f32 %v511_v20, %v1491_v25 }
 0x239   :  { %v1158_v60 = vpop.eup %1157  ;;  %v529_v29 = vpack.c.bf16 %v521_v27, %v517_v0  ;;  %v500_v21 = vadd.f32 1.0, %v1156_v1 }
 0x23a   :  { %v1160_v30 = vpop.eup %1159  ;;  %v531_v31 = vpack.c.bf16 %v523_v6, %v519_v5  ;;  %v502_v9 = vadd.f32 1.0, %v1158_v60 }
 0x23b   :  { %v1162_v32 = vpop.eup %1161  ;;  %830 = vmatprep.mubr.bf16.mxu0 %v529_v29  ;;  %v501_v15 = vadd.f32 1.0, %v1160_v30  ;;  %v512_v33 = vmul.f32 0.5, %v500_v21 }
 0x23c   :  { %878 = vmatprep.mubr.bf16.mxu1 %v531_v31  ;;  %831 = vmatmul.mubr.bf16.vlgmr.msra.gmra.mrb[8].mxu0 %v528_v26  ;;  %v503_v12 = vadd.f32 1.0, %v1162_v32  ;;  %v514_v24 = vmul.f32 0.5, %v502_v9 }
 0x23d   :  { %879 = vmatmul.mubr.bf16.vlgmr.msra.gmra.mrb[8].mxu1 %v530_v28  ;;  %v513_v34 = vmul.f32 0.5, %v501_v15  ;;  %v524_v13 = vmul.f32 %v512_v33, %v1518_v17 }
 0x23e   :  { %v515_v35 = vmul.f32 0.5, %v503_v12  ;;  %v526_v36 = vmul.f32 %v514_v24, %v1521_v22 }
 0x23f   :  { %v525_v25 = vmul.f32 %v513_v34, %v1526_v16  ;;  %v532_v40 = vpack.c.bf16 %v524_v13, %v524_v13  ;;  %v605_v16 = vrot.slane %v601_v43, %v1336_v63 }
 0x240   :  { %v527_v37 = vmul.f32 %v515_v35, %v1529_v23  ;;  %v534_v41 = vpack.c.bf16 %v526_v36, %v526_v36 }
 0x241   :  { %v533_v38 = vpack.c.bf16 %v525_v25, %v525_v25 }
 0x242   :  { %v535_v39 = vpack.c.bf16 %v527_v37, %v527_v37 }
 0x243   :  { %838 = vmatprep.mubr.bf16.mxu0 %v533_v38 }
 0x244   :  { %886 = vmatprep.mubr.bf16.mxu1 %v535_v39  ;;  %839 = vmatmul.mubr.bf16.gmra.mrb[12].mxu0 %v532_v40 }
 0x245   :  { %887 = vmatmul.mubr.bf16.gmra.mrb[12].mxu1 %v534_v41 }
 0x30f   :  { %v1012_v17 = vpop.f32.mrb[8].mxu0 }
 0x310   :  { %v1040_v44 = vpop.f32.mrb[8].mxu1  ;;  %v1013_v22 = vpop.f32.mrb[9].mxu0 }
 0x311   :  { %v1014_v45 = vadd.f32 %v1013_v22, %v1012_v17  ;;  %v1041_v23 = vpop.f32.mrb[9].mxu1  ;;  %v1015_v46 = vpop.f32.mrb[10].mxu0 }
 0x312   :  { %v1042_v47 = vadd.f32 %v1041_v23, %v1040_v44  ;;  %v1043_v48 = vpop.f32.mrb[10].mxu1  ;;  %v1016_v49 = vpop.f32.mrb[11].mxu0 }
 0x313   :  { %v833_v50 = vadd.f32 %v1014_v45, %v605_v16  ;;  %v1017_v51 = vadd.f32 %v1016_v49, %v1015_v46  ;;  %v1044_v52 = vpop.f32.mrb[11].mxu1 }
 0x314   :  { %v1045_v53 = vadd.f32 %v1044_v52, %v1043_v48 }
 0x315   :  { %v881_v54 = vadd.f32 %v1042_v47, %v833_v50  ;;  %v836_v55 = vadd.f32 %v1017_v51, %v605_v16 }
 0x317   :  { %v884_v56 = vadd.f32 %v1045_v53, %v836_v55  ;;  %v1018_v57 = vpop.f32.mrb[12].mxu0  ;;  %v894_v63 = vadd.f32 %v1210_v2, %v881_v54 }
 0x318   :  { %v1046_v58 = vpop.f32.mrb[12].mxu1  ;;  %v1019_v59 = vpop.f32.mrb[13].mxu0 }
 0x319   :  { %v895_v61 = vadd.f32 %v1216_v4, %v884_v56  ;;  %v1020_v62 = vadd.f32 %v1019_v59, %v1018_v57  ;;  %v1047_v7 = vpop.f32.mrb[13].mxu1  ;;  %v1021_v8 = vpop.f32.mrb[14].mxu0 }
 0x31a   :  { %v1048_v10 = vadd.f32 %v1047_v7, %v1046_v58  ;;  %v1049_v11 = vpop.f32.mrb[14].mxu1  ;;  %v1022_v14 = vpop.f32.mrb[15].mxu0 }
 0x31b   :  { %v994_v18 = vpack.c.bf16 %v895_v61, %v894_v63  ;;  %v841_v19 = vadd.f32 %v1020_v62, %v605_v16  ;;  %v1050_v20 = vpop.f32.mrb[15].mxu1 }
 0x31d   :  { %v889_v26 = vadd.f32 %v1048_v10, %v841_v19  ;;  %995 = vst [vmem:[%s1577_s7] sm:$0xff] %v994_v18  }
 0x31f   :  { %v896_v0 = vadd.f32 %v889_v26, %v1212_v3 }
 0x321   :  { %v986_v27 = vpack.c.bf16 %v896_v0, %v896_v0 }
 0x323   :  { %912 = vst [vmem:[%s1577_s7 + $0x8] sm:$0xf] %v986_v27 }

</bundles_post_ra>
